<compile_context>
chip_gen: v5e
topology: v5e:2x2
jax: 0.10.0
libtpu: 0.0.40
codegen_flags: <defaults>
</compile_context>

<pallas_src>
import jax
import jax.numpy as jnp
from jax.experimental import pallas as pl
from jax.experimental.pallas import tpu as pltpu


_EPS = 1e-5
_STATS_BLOCK_ELEMS = 1024 * 1024   # f32 elems per tile of the stats reduction


# --------------------------------------------------------------------------- tiling helpers

def _largest_divisor(n, cap, multiple_of=1):
    """Largest t <= cap with n % t == 0 and t % multiple_of == 0, else None."""
    best = None
    t = multiple_of
    cap = min(cap, n)
    while t <= cap:
        if n % t == 0:
            best = t
        t += multiple_of
    return best


def _chip_config():
    """(input-block budget in f32 elems, vmem_limit_bytes), per TPU generation.

    v5e/v6e: 128 MiB VMEM, slower HBM -> big double-buffered blocks.
    v7x / unknown: 64 MiB VMEM per TC, faster HBM -> moderate blocks, limit <= 48 MiB.
    """
    try:
        phys = int(pltpu.get_tpu_info().vmem_capacity_bytes)
    except Exception:
        phys = 64 * 1024 * 1024
    if phys >= 100 * 1024 * 1024:           # v5e / v6e class
        return 512 * 1024, 96 * 1024 * 1024
    return 256 * 1024, 48 * 1024 * 1024     # v7x class / conservative fallback


def _pick_hf(H, W):
    """Smallest hf dividing H with 4*hf*W >= 128 (lane-dense output rows)."""
    target = max(1, -(-32 // W))            # ceil(128 / (4W)) = ceil(32 / W)
    for hf in range(target, H + 1):
        if H % hf == 0:
            return hf
    return H


def _pick_up_tiles(R, G, K, budget):
    """(TR, TG): TG | G (mult of 8 or == G); TR | R (mult of 8 or == R)."""
    if G * K <= budget:
        tg = G
    else:
        tg = _largest_divisor(G, max(8, budget // K), 8) or G
    cap_r = max(8, budget // max(tg * K, 1))
    # TR must be a multiple of 8 or the full extent so the (R, 1) per-row
    # scale/shift blocks stay legal.
    tr = _largest_divisor(R, cap_r, 8) or R
    return tr, tg


def _pick_stats_tiles(NC, L, budget=_STATS_BLOCK_ELEMS):
    """(TR, TC): TR | NC (TR == NC or mult of 8), TC | L (TC == L or mult of 128)."""
    if NC <= 512:
        tr = NC
    else:
        tr = _largest_divisor(NC, 512, 8) or NC
    cap = max(128, budget // max(tr, 1))
    if L <= cap:
        tc = L
    else:
        tc = _largest_divisor(L, cap, 128) or L
    return tr, tc


# --------------------------------------------------------------------------- kernels

def _stats_kernel(x_ref, s_ref, q_ref):
    """Per-row (= per (n,c) slab) sum and sum-of-squares, accumulated over column blocks."""
    @pl.when(pl.program_id(1) == 0)
    def _():
        s_ref[...] = jnp.zeros_like(s_ref)
        q_ref[...] = jnp.zeros_like(q_ref)

    x = x_ref[...].astype(jnp.float32)                 # (TR, TC)
    s_ref[...] += jnp.sum(x, axis=1, keepdims=True)
    q_ref[...] += jnp.sum(x * x, axis=1, keepdims=True)


def _upsample_bn_kernel(a_ref, b_ref, x_ref, rep_ref, o_ref):
    """Fused BN affine + nearest-2x upsample for a block of (n, c, d) slabs.

    a_ref/b_ref: (TR, 1) per-row (= per (n,c,d)) scale / shift.
    x_ref:       (TR, TG, K) input block, K = hf*W columns per h-group.
    rep_ref:     (K, 4K) exact 0/1 replication matrix (lane-flattened interleave).
    o_ref:       (TR, 2, TG, 4K) output block; the size-2 axis is the D parity.
    """
    tr, tg, k = x_ref.shape
    n_out = rep_ref.shape[1]

    a = a_ref[...][:, :, None]                          # (TR, 1, 1)
    b = b_ref[...][:, :, None]
    y = x_ref[...] * a + b                              # BN affine once, f32, VPU

    # One MXU matmul performs the whole (h-parity, w-parity) interleave into a
    # lane-dense row.  rep is a 0/1 selection matrix; HIGHEST precision keeps
    # the copy exact in f32 (default precision would round operands to bf16).
    z = jnp.dot(y.reshape(tr * tg, k), rep_ref[...],
                precision=jax.lax.Precision.HIGHEST,
                preferred_element_type=jnp.float32)     # (TR*TG, 4K)
    z = z.reshape(tr, tg, n_out)

    o_ref[:, 0, :, :] = z                               # d_out = 2*d
    o_ref[:, 1, :, :] = z                               # d_out = 2*d + 1


# --------------------------------------------------------------------------- wrappers

def _batch_stats(x, vmem_limit):
    """Per-channel mean and biased variance over (N, D, H, W) via a Pallas reduction."""
    N, C, D, H, W = x.shape
    NC, L = N * C, D * H * W
    tr, tc = _pick_stats_tiles(NC, L)
    xr = x.reshape(NC, L)

    s, q = pl.pallas_call(
        _stats_kernel,
        out_shape=(jax.ShapeDtypeStruct((NC, 1), jnp.float32),
                   jax.ShapeDtypeStruct((NC, 1), jnp.float32)),
        grid=(NC // tr, L // tc),
        in_specs=[pl.BlockSpec((tr, tc), lambda i, j: (i, j))],
        out_specs=(pl.BlockSpec((tr, 1), lambda i, j: (i, 0)),
                   pl.BlockSpec((tr, 1), lambda i, j: (i, 0))),
        compiler_params=pltpu.CompilerParams(
            dimension_semantics=("parallel", "arbitrary"),
            vmem_limit_bytes=vmem_limit),
    )(xr)

    cnt = jnp.float32(N * D * H * W)
    mean = s.reshape(N, C).sum(axis=0) / cnt
    ex2 = q.reshape(N, C).sum(axis=0) / cnt
    # Single-pass E[x^2]-E[x]^2 in f32; fine for activation-scale data.
    var = jnp.maximum(ex2 - mean * mean, 0.0)           # biased variance (training BN)
    return mean, var


def up_bn3d(x, gamma, beta, eps=_EPS):
    """Up_Bn3D.forward: x (N,C,D,H,W) f32 -> (N,C,2D,2H,2W) f32 (training-mode BN)."""
    N, C, D, H, W = x.shape
    R = N * C * D

    budget, vmem_limit = _chip_config()

    # Nearest-2x replication does not change per-channel mean / biased variance,
    # so compute BN statistics on x directly (8x less HBM traffic).
    mean, var = _batch_stats(x, vmem_limit)
    a_c = gamma.astype(jnp.float32) * jax.lax.rsqrt(var + eps)
    b_c = beta.astype(jnp.float32) - mean * a_c
    # Per-(n, c, d) row coefficients: row index = (n*C + c)*D + d.
    a_r = jnp.tile(jnp.repeat(a_c, D), N).reshape(R, 1)
    b_r = jnp.tile(jnp.repeat(b_c, D), N).reshape(R, 1)

    hf = _pick_hf(H, W)          # fold hf h-rows into lanes so 4*hf*W >= 128
    G = H // hf
    K = hf * W
    tr, tg = _pick_up_tiles(R, G, K, budget)

    # Exact 0/1 replication matrix: output column v = (2r + ph)*2W + 2w + pw
    # copies input column u = r*W + w (r = h within the h-group).
    u = jnp.arange(K)[:, None]
    v = jnp.arange(4 * K)[None, :]
    rep = ((u // W == v // (4 * W)) &
           (u % W == (v % (2 * W)) // 2)).astype(jnp.float32)

    x3 = x.reshape(R, G, K)      # free reshape of the contiguous input

    # Output (R, 2, G, 4K) flattens row-major exactly like (N, C, 2D, 2H, 2W),
    # so the final reshape is free -- no transposes of the big tensor.
    y = pl.pallas_call(
        _upsample_bn_kernel,
        out_shape=jax.ShapeDtypeStruct((R, 2, G, 4 * K), jnp.float32),
        grid=(R // tr, G // tg),
        in_specs=[
            pl.BlockSpec((tr, 1), lambda i, g: (i, 0)),            # a (per row)
            pl.BlockSpec((tr, 1), lambda i, g: (i, 0)),            # b (per row)
            pl.BlockSpec((tr, tg, K), lambda i, g: (i, g, 0)),     # x block
            pl.BlockSpec((K, 4 * K), lambda i, g: (0, 0)),         # rep (resident)
        ],
        out_specs=pl.BlockSpec((tr, 2, tg, 4 * K), lambda i, g: (i, 0, g, 0)),
        compiler_params=pltpu.CompilerParams(
            dimension_semantics=("parallel", "parallel"),
            vmem_limit_bytes=vmem_limit),
    )(a_r, b_r, x3, rep)

    return y.reshape(N, C, 2 * D, 2 * H, 2 * W)


# TODO(synk): BatchNorm3d's running_mean/running_var buffer updates (a training-time
# side effect) are not produced; they do not affect the returned tensor.


# --------------------------------------------------------------------------- main

if __name__ == "__main__":
    key = jax.random.PRNGKey(0)
    kx, kg, kb = jax.random.split(key, 3)

    N, C, D, H, W = 2, 4, 8, 16, 16
    x = jax.random.normal(kx, (N, C, D, H, W), jnp.float32)
    gamma = 1.0 + 0.1 * jax.random.normal(kg, (C,), jnp.float32)   # bn.weight
    beta = 0.1 * jax.random.normal(kb, (C,), jnp.float32)          # bn.bias

    out = jax.jit(up_bn3d)(x, gamma, beta)
    out = jax.block_until_ready(out)

    # Pure-JAX reference: exactly the PyTorch forward (nearest 2x, then training-mode BN).
    up = jnp.repeat(jnp.repeat(jnp.repeat(x, 2, axis=2), 2, axis=3), 2, axis=4)
    mu = up.mean(axis=(0, 2, 3, 4), keepdims=True)
    var = ((up - mu) ** 2).mean(axis=(0, 2, 3, 4), keepdims=True)
    ref = ((up - mu) / jnp.sqrt(var + _EPS) * gamma.reshape(1, C, 1, 1, 1)
           + beta.reshape(1, C, 1, 1, 1))

    assert out.shape == (N, C, 2 * D, 2 * H, 2 * W), out.shape
    err = float(jnp.max(jnp.abs(out - ref)))
    if err > 1e-3:
        raise SystemExit(f"mismatch vs reference: max abs err = {err}")
    print("KERNEL_OK")
</pallas_src>

<mosaic_0001>
module attributes {stable_mosaic.version = 11 : i64} {
  func.func @_stats_kernel(%arg0: i32, %arg1: i32, %arg2: memref<8x2048xf32, #tpu.memory_space<vmem>>, %arg3: memref<8x1xf32, #tpu.memory_space<vmem>>, %arg4: memref<8x1xf32, #tpu.memory_space<vmem>>) attributes {dimension_semantics = [#tpu.dimension_semantics<parallel>, #tpu.dimension_semantics<arbitrary>], iteration_bounds = array<i64: 1, 1>, scalar_prefetch = 0 : i64, scratch_operands = 0 : i64, tpu.core_type = #tpu.core_type<tc>, window_params = [{transform_indices = @transform_0, window_bounds = array<i64: 8, 2048>}, {transform_indices = @transform_1, window_bounds = array<i64: 8, 1>}, {transform_indices = @transform_2, window_bounds = array<i64: 8, 1>}]} {
    %c0_i32 = arith.constant 0 : i32
    %0 = arith.cmpi eq, %arg1, %c0_i32 : i32
    %1 = arith.extui %0 : i1 to i32
    %c0_i32_0 = arith.constant 0 : i32
    %2 = arith.cmpi ne, %1, %c0_i32_0 : i32
    scf.if %2 {
      %cst_11 = arith.constant 0.000000e+00 : f32
      %15 = vector.broadcast %cst_11 : f32 to vector<8x1xf32>
      %c0_12 = arith.constant 0 : index
      %c0_13 = arith.constant 0 : index
      %16 = vector.load %arg3[%c0_12, %c0_13] : memref<8x1xf32, #tpu.memory_space<vmem>>, vector<8x1xf32>
      tpu.vector_store %arg3[%c0_12, %c0_13], %15 {strides = array<i32>} : memref<8x1xf32, #tpu.memory_space<vmem>>, vector<8x1xf32>,
      %cst_14 = arith.constant 0.000000e+00 : f32
      %17 = vector.broadcast %cst_14 : f32 to vector<8x1xf32>
      %c0_15 = arith.constant 0 : index
      %c0_16 = arith.constant 0 : index
      %18 = vector.load %arg4[%c0_15, %c0_16] : memref<8x1xf32, #tpu.memory_space<vmem>>, vector<8x1xf32>
      tpu.vector_store %arg4[%c0_15, %c0_16], %17 {strides = array<i32>} : memref<8x1xf32, #tpu.memory_space<vmem>>, vector<8x1xf32>,
    } else {
    }
    %c0 = arith.constant 0 : index
    %c0_1 = arith.constant 0 : index
    %3 = vector.load %arg2[%c0, %c0_1] : memref<8x2048xf32, #tpu.memory_space<vmem>>, vector<8x2048xf32>
    %c0_2 = arith.constant 0 : index
    %c0_3 = arith.constant 0 : index
    %4 = vector.load %arg3[%c0_2, %c0_3] : memref<8x1xf32, #tpu.memory_space<vmem>>, vector<8x1xf32>
    %cst = arith.constant dense<0.000000e+00> : vector<8xf32>
    %5 = vector.multi_reduction <add>, %3, %cst [1] : vector<8x2048xf32> to vector<8xf32>
    %6 = vector.shape_cast %5 : vector<8xf32> to vector<8x1xf32>
    %7 = arith.addf %4, %6 : vector<8x1xf32>
    %c0_4 = arith.constant 0 : index
    %c0_5 = arith.constant 0 : index
    %8 = vector.load %arg3[%c0_4, %c0_5] : memref<8x1xf32, #tpu.memory_space<vmem>>, vector<8x1xf32>
    tpu.vector_store %arg3[%c0_4, %c0_5], %7 {strides = array<i32>} : memref<8x1xf32, #tpu.memory_space<vmem>>, vector<8x1xf32>,
    %c0_6 = arith.constant 0 : index
    %c0_7 = arith.constant 0 : index
    %9 = vector.load %arg4[%c0_6, %c0_7] : memref<8x1xf32, #tpu.memory_space<vmem>>, vector<8x1xf32>
    %10 = arith.mulf %3, %3 : vector<8x2048xf32>
    %cst_8 = arith.constant dense<0.000000e+00> : vector<8xf32>
    %11 = vector.multi_reduction <add>, %10, %cst_8 [1] : vector<8x2048xf32> to vector<8xf32>
    %12 = vector.shape_cast %11 : vector<8xf32> to vector<8x1xf32>
    %13 = arith.addf %9, %12 : vector<8x1xf32>
    %c0_9 = arith.constant 0 : index
    %c0_10 = arith.constant 0 : index
    %14 = vector.load %arg4[%c0_9, %c0_10] : memref<8x1xf32, #tpu.memory_space<vmem>>, vector<8x1xf32>
    tpu.vector_store %arg4[%c0_9, %c0_10], %13 {strides = array<i32>} : memref<8x1xf32, #tpu.memory_space<vmem>>, vector<8x1xf32>,
    return
  }
  func.func @transform_0(%arg0: i32, %arg1: i32) -> (i32, i32) {
    %c0_i32 = arith.constant 0 : i32
    return %arg0, %arg1 : i32, i32
  }
  func.func @transform_1(%arg0: i32, %arg1: i32) -> (i32, i32) {
    %c0_i32 = arith.constant 0 : i32
    %c0_i32_0 = arith.constant 0 : i32
    return %arg0, %c0_i32 : i32, i32
  }
  func.func @transform_2(%arg0: i32, %arg1: i32) -> (i32, i32) {
    %c0_i32 = arith.constant 0 : i32
    %c0_i32_0 = arith.constant 0 : i32
    return %arg0, %c0_i32 : i32, i32
  }
}

module attributes {stable_mosaic.version = 11 : i64} {
  func.func @_upsample_bn_kernel(%arg0: i32, %arg1: i32, %arg2: memref<64x1xf32, #tpu.memory_space<vmem>>, %arg3: memref<64x1xf32, #tpu.memory_space<vmem>>, %arg4: memref<64x8x32xf32, #tpu.memory_space<vmem>>, %arg5: memref<32x128xf32, #tpu.memory_space<vmem>>, %arg6: memref<64x2x8x128xf32, #tpu.memory_space<vmem>>) attributes {dimension_semantics = [#tpu.dimension_semantics<parallel>, #tpu.dimension_semantics<parallel>], iteration_bounds = array<i64: 1, 1>, scalar_prefetch = 0 : i64, scratch_operands = 0 : i64, tpu.core_type = #tpu.core_type<tc>, window_params = [{transform_indices = @transform_0, window_bounds = array<i64: 64, 1>}, {transform_indices = @transform_1, window_bounds = array<i64: 64, 1>}, {transform_indices = @transform_2, window_bounds = array<i64: 64, 8, 32>}, {pipeline_mode = #tpu.pipeline_mode<synchronous>, transform_indices = @transform_3, window_bounds = array<i64: 32, 128>}, {transform_indices = @transform_4, window_bounds = array<i64: 64, 2, 8, 128>}]} {
    %c0 = arith.constant 0 : index
    %c0_0 = arith.constant 0 : index
    %0 = vector.load %arg2[%c0, %c0_0] : memref<64x1xf32, #tpu.memory_space<vmem>>, vector<64x1xf32>
    %1 = vector.shape_cast %0 : vector<64x1xf32> to vector<64x1x1xf32>
    %c0_1 = arith.constant 0 : index
    %c0_2 = arith.constant 0 : index
    %2 = vector.load %arg3[%c0_1, %c0_2] : memref<64x1xf32, #tpu.memory_space<vmem>>, vector<64x1xf32>
    %3 = vector.shape_cast %2 : vector<64x1xf32> to vector<64x1x1xf32>
    %c0_3 = arith.constant 0 : index
    %c0_4 = arith.constant 0 : index
    %c0_5 = arith.constant 0 : index
    %4 = vector.load %arg4[%c0_3, %c0_4, %c0_5] : memref<64x8x32xf32, #tpu.memory_space<vmem>>, vector<64x8x32xf32>
    %5 = vector.broadcast %1 : vector<64x1x1xf32> to vector<64x8x32xf32>
    %6 = arith.mulf %4, %5 : vector<64x8x32xf32>
    %7 = vector.broadcast %3 : vector<64x1x1xf32> to vector<64x8x32xf32>
    %8 = arith.addf %6, %7 : vector<64x8x32xf32>
    %9 = vector.shape_cast %8 : vector<64x8x32xf32> to vector<512x32xf32>
    %c0_6 = arith.constant 0 : index
    %c0_7 = arith.constant 0 : index
    %10 = vector.load %arg5[%c0_6, %c0_7] : memref<32x128xf32, #tpu.memory_space<vmem>>, vector<32x128xf32>
    %cst = arith.constant dense<0.000000e+00> : vector<512x128xf32>
    %11 = tpu.matmul %9, %10, %cst {dimension_numbers = #tpu.dot_dimension_numbers<[1], [0], [0], [1], [0, 0, 1, 1], [], []>, precision = #tpu.contract_precision<fp32>} : vector<512x32xf32>, vector<32x128xf32>, vector<512x128xf32> -> vector<512x128xf32>
    %12 = vector.shape_cast %11 : vector<512x128xf32> to vector<64x8x128xf32>
    %c0_8 = arith.constant 0 : index
    %c0_9 = arith.constant 0 : index
    %c0_10 = arith.constant 0 : index
    %c0_11 = arith.constant 0 : index
    %13 = vector.load %arg6[%c0_8, %c0_9, %c0_10, %c0_11] : memref<64x2x8x128xf32, #tpu.memory_space<vmem>>, vector<64x1x8x128xf32>
    %14 = vector.shape_cast %13 : vector<64x1x8x128xf32> to vector<64x8x128xf32>
    %15 = vector.shape_cast %12 : vector<64x8x128xf32> to vector<64x1x8x128xf32>
    tpu.vector_store %arg6[%c0_8, %c0_9, %c0_10, %c0_11], %15 {strides = array<i32>} : memref<64x2x8x128xf32, #tpu.memory_space<vmem>>, vector<64x1x8x128xf32>,
    %c0_12 = arith.constant 0 : index
    %c1 = arith.constant 1 : index
    %c0_13 = arith.constant 0 : index
    %c0_14 = arith.constant 0 : index
    %16 = vector.load %arg6[%c0_12, %c1, %c0_13, %c0_14] : memref<64x2x8x128xf32, #tpu.memory_space<vmem>>, vector<64x1x8x128xf32>
    %17 = vector.shape_cast %16 : vector<64x1x8x128xf32> to vector<64x8x128xf32>
    %18 = vector.shape_cast %12 : vector<64x8x128xf32> to vector<64x1x8x128xf32>
    tpu.vector_store %arg6[%c0_12, %c1, %c0_13, %c0_14], %18 {strides = array<i32>} : memref<64x2x8x128xf32, #tpu.memory_space<vmem>>, vector<64x1x8x128xf32>,
    return
  }
  func.func @transform_0(%arg0: i32, %arg1: i32) -> (i32, i32) {
    %c0_i32 = arith.constant 0 : i32
    %c0_i32_0 = arith.constant 0 : i32
    return %arg0, %c0_i32 : i32, i32
  }
  func.func @transform_1(%arg0: i32, %arg1: i32) -> (i32, i32) {
    %c0_i32 = arith.constant 0 : i32
    %c0_i32_0 = arith.constant 0 : i32
    return %arg0, %c0_i32 : i32, i32
  }
  func.func @transform_2(%arg0: i32, %arg1: i32) -> (i32, i32, i32) {
    %c0_i32 = arith.constant 0 : i32
    %c0_i32_0 = arith.constant 0 : i32
    return %arg0, %arg1, %c0_i32 : i32, i32, i32
  }
  func.func @transform_3(%arg0: i32, %arg1: i32) -> (i32, i32) {
    %c0_i32 = arith.constant 0 : i32
    %c0_i32_0 = arith.constant 0 : i32
    %c0_i32_1 = arith.constant 0 : i32
    return %c0_i32, %c0_i32_0 : i32, i32
  }
  func.func @transform_4(%arg0: i32, %arg1: i32) -> (i32, i32, i32, i32) {
    %c0_i32 = arith.constant 0 : i32
    %c0_i32_0 = arith.constant 0 : i32
    %c0_i32_1 = arith.constant 0 : i32
    return %arg0, %c0_i32, %arg1, %c0_i32_0 : i32, i32, i32, i32
  }
}

</mosaic_0001>

<bundles_post_ra>
// kernel: tile.13
= control target key start
LH: loop header
LB: loop body
LE: loop exit
PB: predicated region body
PF: predicated region fallthrough
CT: control target
= control target key end

     0   :  { %s37_s8 = smov 8   ;;  %s38_s9 = smov 16   ;;  %vm7_vm0 = vcmask 64512   ;;  %vm13_vm1 = vcmask 261312   ;;  %vm19_vm2 = vcmask 195712   ;;  %vm25_vm3 = vcmask 130112   ;;  %s55_s0 = inlined_call_operand.vmem [shape: f32[4,8], index: 0, kind: input, shape index: {}]   ;;  %s56_s1 = inlined_call_operand.vmem [shape: f32[32], index: 1, kind: output, shape index: {}]  }
   0x1   :  { %v4_v0 = vld [vmem:[%s55_s0] sm:$0xf]  ;;  %s36_s0 = smov 24  }
   0x2   :  { %5 = vst [vmem:[#allocation1] sm:$0xf] %v4_v0 }
   0x9   :  { %v10_v1 = vld [vmem:[#allocation1 + $0x3] sm:$0x1]   ;;  %v22_v2 = vld [vmem:[#allocation1 + $0x1] sm:$0x1]   ;;  %v16_v3 = vld [vmem:[#allocation1 + $0x2] sm:$0x1]  }
   0xa   :  { %11 = vrot.lane.b32.xlu0 %v10_v1, %s36_s0  ;;  %23 = vrot.lane.b32.xlu1 %v22_v2, %s37_s8  ;;  %v6_v4 = vld [vmem:[#allocation1] sm:$0x1]  }
   0xb   :  { %8 = vst.msk [vmem:[#allocation0] sm:$0x1] %vm7_vm0, %v6_v4  }
  0x12   :  { %17 = vrot.lane.b32.xlu0 %v16_v3, %s38_s9 }
  0x7c   :  { %v12_v5 = vpop.permute.xlu0 %11   ;;  %v24_v6 = vpop.permute.xlu1 %23  }
  0x7d   :  { %14 = vst.msk [vmem:[#allocation0] sm:$0x1] %vm13_vm1, %v12_v5  }
  0x84   :  { %v18_v7 = vpop.permute.xlu0 %17  }
  0x85   :  { %20 = vst.msk [vmem:[#allocation0] sm:$0x1] %vm19_vm2, %v18_v7  }
  0x86   :  { %26 = vst.msk [vmem:[#allocation0] sm:$0x1] %vm25_vm3, %v24_v6  }
  0x8d   :  { %v29_v8 = vld [vmem:[#allocation0] sm:$0x1] }
  0x8e   :  { %32 = vst [vmem:[%s56_s1] sm:$0x1] %v29_v8 }

// kernel: tile.14
= control target key start
LH: loop header
LB: loop body
LE: loop exit
PB: predicated region body
PF: predicated region fallthrough
CT: control target
= control target key end

     0   :  { %s22_s0 = inlined_call_operand.vmem [shape: f32[32], index: 0, kind: input, shape index: {}]   ;;  %s23_s1 = inlined_call_operand.vmem [shape: f32[2,32], index: 1, kind: output, shape index: {}]  }
   0x1   :  { %v4_v0 = vld [vmem:[%s22_s0] ss:$0 sm:$0xff] }
   0x2   :  { %5 = vst [vmem:[%s23_s1] sm:$0x3] %v4_v0 }

// kernel: tile.0
= control target key start
LH: loop header
LB: loop body
LE: loop exit
PB: predicated region body
PF: predicated region fallthrough
CT: control target
= control target key end

     0   :  { %s354_s8 = smov 125   ;;  %s355_s9 = smov 123   ;;  %vm7_vm0 = vcmask 7168   ;;  %s653_s0 = inlined_call_operand.vmem [shape: f32[2,32], index: 0, kind: input, shape index: {}]   ;;  %s654_s1 = inlined_call_operand.vmem [shape: f32[64,1], index: 1, kind: output, shape index: {}]  }
   0x1   :  { %v4_v0 = vld [vmem:[%s653_s0] sm:$0x3]  ;;  %s353_s0 = smov 127   ;;  %s356_s10 = smov 126  }
   0x2   :  { %5 = vst [vmem:[#allocation0] sm:$0x3] %v4_v0  ;;  %s357_s11 = smov 124   ;;  %s358_s12 = smov 122  }
   0x3   :  { %s359_s13 = smov 121   ;;  %s360_s14 = smov 120  }
   0x4   :  { %s361_s15 = smov 119   ;;  %s362_s16 = smov 118  }
   0x5   :  { %s363_s17 = smov 117   ;;  %s364_s18 = smov 116  }
   0x6   :  { %s365_s19 = smov 115   ;;  %s366_s20 = smov 114  }
   0x7   :  { %s367_s21 = smov 113   ;;  %s368_s22 = smov 112  }
   0x8   :  { %s369_s23 = smov 111   ;;  %s370_s24 = smov 110  }
   0x9   :  { %v11_v1 = vld [vmem:[#allocation0] sm:$0x3]   ;;  %s371_s25 = smov 109   ;;  %s372_s26 = smov 108  }
   0xa   :  { %v27_v2 = vld [vmem:[#allocation0] sm:$0x3]   ;;  %12 = vrot.lane.b32.xlu0 %v11_v1, %s353_s0  ;;  %s373_s27 = smov 107   ;;  %s374_s28 = smov 106  }
   0xb   :  { %28 = vrot.lane.b32.xlu1 %v27_v2, %s354_s8  ;;  %v43_v3 = vld [vmem:[#allocation0] sm:$0x3]   ;;  %s375_s29 = smov 105   ;;  %s376_s30 = smov 104  }
   0xc   :  { %44 = vrot.lane.b32.xlu2 %v43_v3, %s355_s9  ;;  %v19_v4 = vld [vmem:[#allocation0] sm:$0x3]   ;;  %s377_s2 = smov 103   ;;  %s378_s3 = smov 102  }
   0xd   :  { %v35_v5 = vld [vmem:[#allocation0] sm:$0x3]   ;;  %s379_s4 = smov 101   ;;  %s380_s5 = smov 100  }
   0xe   :  { %v51_v6 = vld [vmem:[#allocation0] sm:$0x3]   ;;  %s381_s6 = smov 99   ;;  %s382_s7 = smov 98  }
   0xf   :  { %v59_v7 = vld [vmem:[#allocation0] sm:$0x3]   ;;  %s383_s0 = smov 97  }
  0x10   :  { %v67_v8 = vld [vmem:[#allocation0] sm:$0x3]  }
  0x11   :  { %v75_v9 = vld [vmem:[#allocation0] sm:$0x3]  }
  0x12   :  { %20 = vrot.lane.b32.xlu0 %v19_v4, %s356_s10  ;;  %v83_v10 = vld [vmem:[#allocation0] sm:$0x3]  }
  0x13   :  { %36 = vrot.lane.b32.xlu1 %v35_v5, %s357_s11  ;;  %v91_v11 = vld [vmem:[#allocation0] sm:$0x3]  }
  0x14   :  { %52 = vrot.lane.b32.xlu2 %v51_v6, %s358_s12  ;;  %v99_v12 = vld [vmem:[#allocation0] sm:$0x3]  }
  0x15   :  { %v107_v13 = vld [vmem:[#allocation0] sm:$0x3]  }
  0x16   :  { %v115_v14 = vld [vmem:[#allocation0] sm:$0x3]  }
  0x17   :  { %v123_v15 = vld [vmem:[#allocation0] sm:$0x3]  }
  0x18   :  { %v131_v16 = vld [vmem:[#allocation0] sm:$0x3]  }
  0x19   :  { %v139_v17 = vld [vmem:[#allocation0] sm:$0x3]  }
  0x1a   :  { %60 = vrot.lane.b32.xlu0 %v59_v7, %s359_s13  ;;  %v147_v18 = vld [vmem:[#allocation0] sm:$0x3]  }
  0x1b   :  { %68 = vrot.lane.b32.xlu1 %v67_v8, %s360_s14  ;;  %v155_v19 = vld [vmem:[#allocation0] sm:$0x3]  }
  0x1c   :  { %76 = vrot.lane.b32.xlu2 %v75_v9, %s361_s15  ;;  %v163_v20 = vld [vmem:[#allocation0] sm:$0x3]  }
  0x1d   :  { %v171_v21 = vld [vmem:[#allocation0] sm:$0x3]  }
  0x1e   :  { %v179_v22 = vld [vmem:[#allocation0] sm:$0x3]  }
  0x1f   :  { %v187_v23 = vld [vmem:[#allocation0] sm:$0x3]  }
  0x20   :  { %v195_v24 = vld [vmem:[#allocation0] sm:$0x3]  }
  0x21   :  { %v203_v25 = vld [vmem:[#allocation0] sm:$0x3]  }
  0x22   :  { %84 = vrot.lane.b32.xlu0 %v83_v10, %s362_s16  ;;  %v211_v26 = vld [vmem:[#allocation0] sm:$0x3]  }
  0x23   :  { %92 = vrot.lane.b32.xlu1 %v91_v11, %s363_s17  ;;  %v219_v27 = vld [vmem:[#allocation0] sm:$0x3]  }
  0x24   :  { %100 = vrot.lane.b32.xlu2 %v99_v12, %s364_s18  ;;  %v227_v28 = vld [vmem:[#allocation0] sm:$0x3]  }
  0x25   :  { %v235_v29 = vld [vmem:[#allocation0] sm:$0x3]  }
  0x26   :  { %v243_v30 = vld [vmem:[#allocation0] sm:$0x3]  }
  0x27   :  { %v251_v31 = vld [vmem:[#allocation0] sm:$0x3]  }
  0x28   :  { %v6_v56 = vld [vmem:[#allocation0] sm:$0x3]  }
  0x29   :  { %8 = vst.msk [vmem:[%s654_s1] sm:$0x1] %vm7_vm0, %v6_v56  }
  0x2a   :  { %108 = vrot.lane.b32.xlu0 %v107_v13, %s365_s19  ;;  %259 = vst.msk [vmem:[%s654_s1 + $0x1f] sm:$0x2] %vm7_vm0, %v6_v56  }
  0x2b   :  { %116 = vrot.lane.b32.xlu1 %v115_v14, %s366_s20 }
  0x2c   :  { %124 = vrot.lane.b32.xlu2 %v123_v15, %s367_s21 }
  0x32   :  { %132 = vrot.lane.b32.xlu0 %v131_v16, %s368_s22 }
  0x33   :  { %140 = vrot.lane.b32.xlu1 %v139_v17, %s369_s23 }
  0x34   :  { %148 = vrot.lane.b32.xlu2 %v147_v18, %s370_s24 }
  0x3a   :  { %156 = vrot.lane.b32.xlu0 %v155_v19, %s371_s25 }
  0x3b   :  { %164 = vrot.lane.b32.xlu1 %v163_v20, %s372_s26 }
  0x3c   :  { %172 = vrot.lane.b32.xlu2 %v171_v21, %s373_s27 }
  0x42   :  { %180 = vrot.lane.b32.xlu0 %v179_v22, %s374_s28 }
  0x43   :  { %188 = vrot.lane.b32.xlu1 %v187_v23, %s375_s29 }
  0x44   :  { %196 = vrot.lane.b32.xlu2 %v195_v24, %s376_s30 }
  0x4a   :  { %204 = vrot.lane.b32.xlu0 %v203_v25, %s377_s2 }
  0x4b   :  { %212 = vrot.lane.b32.xlu1 %v211_v26, %s378_s3 }
  0x4c   :  { %220 = vrot.lane.b32.xlu2 %v219_v27, %s379_s4 }
  0x52   :  { %228 = vrot.lane.b32.xlu0 %v227_v28, %s380_s5 }
  0x53   :  { %236 = vrot.lane.b32.xlu1 %v235_v29, %s381_s6 }
  0x54   :  { %244 = vrot.lane.b32.xlu2 %v243_v30, %s382_s7 }
  0x5a   :  { %252 = vrot.lane.b32.xlu0 %v251_v31, %s383_s0 }
  0x66   :  { %v45_v32 = vpop.permute.xlu2 %44  }
  0x67   :  { %268 = vst.msk [vmem:[%s654_s1 + $0x5] sm:$0x1] %vm7_vm0, %v45_v32  }
  0x68   :  { %269 = vst.msk [vmem:[%s654_s1 + $0x24] sm:$0x2] %vm7_vm0, %v45_v32  }
  0x6e   :  { %v53_v33 = vpop.permute.xlu2 %52  }
  0x6f   :  { %270 = vst.msk [vmem:[%s654_s1 + $0x6] sm:$0x1] %vm7_vm0, %v53_v33  }
  0x70   :  { %271 = vst.msk [vmem:[%s654_s1 + $0x25] sm:$0x2] %vm7_vm0, %v53_v33  }
  0x76   :  { %v77_v34 = vpop.permute.xlu2 %76  }
  0x77   :  { %276 = vst.msk [vmem:[%s654_s1 + $0x9] sm:$0x1] %vm7_vm0, %v77_v34  }
  0x78   :  { %277 = vst.msk [vmem:[%s654_s1 + $0x28] sm:$0x2] %vm7_vm0, %v77_v34  }
  0x7c   :  { %v13_v35 = vpop.permute.xlu0 %12  }
  0x7d   :  { %v29_v36 = vpop.permute.xlu1 %28   ;;  %260 = vst.msk [vmem:[%s654_s1 + $0x1] sm:$0x1] %vm7_vm0, %v13_v35  }
  0x7e   :  { %261 = vst.msk [vmem:[%s654_s1 + $0x20] sm:$0x2] %vm7_vm0, %v13_v35   ;;  %v101_v37 = vpop.permute.xlu2 %100  }
  0x7f   :  { %264 = vst.msk [vmem:[%s654_s1 + $0x3] sm:$0x1] %vm7_vm0, %v29_v36  }
  0x80   :  { %265 = vst.msk [vmem:[%s654_s1 + $0x22] sm:$0x2] %vm7_vm0, %v29_v36  }
  0x81   :  { %282 = vst.msk [vmem:[%s654_s1 + $0xc] sm:$0x1] %vm7_vm0, %v101_v37  }
  0x82   :  { %283 = vst.msk [vmem:[%s654_s1 + $0x2b] sm:$0x2] %vm7_vm0, %v101_v37  }
  0x84   :  { %v21_v38 = vpop.permute.xlu0 %20  }
  0x85   :  { %v37_v39 = vpop.permute.xlu1 %36   ;;  %262 = vst.msk [vmem:[%s654_s1 + $0x2] sm:$0x1] %vm7_vm0, %v21_v38  }
  0x86   :  { %263 = vst.msk [vmem:[%s654_s1 + $0x21] sm:$0x2] %vm7_vm0, %v21_v38   ;;  %v125_v40 = vpop.permute.xlu2 %124  }
  0x87   :  { %266 = vst.msk [vmem:[%s654_s1 + $0x4] sm:$0x1] %vm7_vm0, %v37_v39  }
  0x88   :  { %267 = vst.msk [vmem:[%s654_s1 + $0x23] sm:$0x2] %vm7_vm0, %v37_v39  }
  0x89   :  { %288 = vst.msk [vmem:[%s654_s1 + $0xf] sm:$0x1] %vm7_vm0, %v125_v40  }
  0x8a   :  { %289 = vst.msk [vmem:[%s654_s1 + $0x2e] sm:$0x2] %vm7_vm0, %v125_v40  }
  0x8c   :  { %v61_v41 = vpop.permute.xlu0 %60  }
  0x8d   :  { %v69_v42 = vpop.permute.xlu1 %68   ;;  %272 = vst.msk [vmem:[%s654_s1 + $0x7] sm:$0x1] %vm7_vm0, %v61_v41  }
  0x8e   :  { %273 = vst.msk [vmem:[%s654_s1 + $0x26] sm:$0x2] %vm7_vm0, %v61_v41   ;;  %v149_v43 = vpop.permute.xlu2 %148  }
  0x8f   :  { %274 = vst.msk [vmem:[%s654_s1 + $0x8] sm:$0x1] %vm7_vm0, %v69_v42  }
  0x90   :  { %275 = vst.msk [vmem:[%s654_s1 + $0x27] sm:$0x2] %vm7_vm0, %v69_v42  }
  0x91   :  { %294 = vst.msk [vmem:[%s654_s1 + $0x12] sm:$0x1] %vm7_vm0, %v149_v43  }
  0x92   :  { %295 = vst.msk [vmem:[%s654_s1 + $0x31] sm:$0x2] %vm7_vm0, %v149_v43  }
  0x94   :  { %v85_v44 = vpop.permute.xlu0 %84  }
  0x95   :  { %v93_v45 = vpop.permute.xlu1 %92   ;;  %278 = vst.msk [vmem:[%s654_s1 + $0xa] sm:$0x1] %vm7_vm0, %v85_v44  }
  0x96   :  { %279 = vst.msk [vmem:[%s654_s1 + $0x29] sm:$0x2] %vm7_vm0, %v85_v44   ;;  %v173_v46 = vpop.permute.xlu2 %172  }
  0x97   :  { %280 = vst.msk [vmem:[%s654_s1 + $0xb] sm:$0x1] %vm7_vm0, %v93_v45  }
  0x98   :  { %281 = vst.msk [vmem:[%s654_s1 + $0x2a] sm:$0x2] %vm7_vm0, %v93_v45  }
  0x99   :  { %300 = vst.msk [vmem:[%s654_s1 + $0x15] sm:$0x1] %vm7_vm0, %v173_v46  }
  0x9a   :  { %301 = vst.msk [vmem:[%s654_s1 + $0x34] sm:$0x2] %vm7_vm0, %v173_v46  }
  0x9c   :  { %v109_v47 = vpop.permute.xlu0 %108  }
  0x9d   :  { %v117_v48 = vpop.permute.xlu1 %116   ;;  %284 = vst.msk [vmem:[%s654_s1 + $0xd] sm:$0x1] %vm7_vm0, %v109_v47  }
  0x9e   :  { %285 = vst.msk [vmem:[%s654_s1 + $0x2c] sm:$0x2] %vm7_vm0, %v109_v47   ;;  %v197_v49 = vpop.permute.xlu2 %196  }
  0x9f   :  { %286 = vst.msk [vmem:[%s654_s1 + $0xe] sm:$0x1] %vm7_vm0, %v117_v48  }
  0xa0   :  { %287 = vst.msk [vmem:[%s654_s1 + $0x2d] sm:$0x2] %vm7_vm0, %v117_v48  }
  0xa1   :  { %306 = vst.msk [vmem:[%s654_s1 + $0x18] sm:$0x1] %vm7_vm0, %v197_v49  }
  0xa2   :  { %307 = vst.msk [vmem:[%s654_s1 + $0x37] sm:$0x2] %vm7_vm0, %v197_v49  }
  0xa4   :  { %v133_v50 = vpop.permute.xlu0 %132  }
  0xa5   :  { %v141_v51 = vpop.permute.xlu1 %140   ;;  %290 = vst.msk [vmem:[%s654_s1 + $0x10] sm:$0x1] %vm7_vm0, %v133_v50  }
  0xa6   :  { %291 = vst.msk [vmem:[%s654_s1 + $0x2f] sm:$0x2] %vm7_vm0, %v133_v50   ;;  %v221_v52 = vpop.permute.xlu2 %220  }
  0xa7   :  { %292 = vst.msk [vmem:[%s654_s1 + $0x11] sm:$0x1] %vm7_vm0, %v141_v51  }
  0xa8   :  { %293 = vst.msk [vmem:[%s654_s1 + $0x30] sm:$0x2] %vm7_vm0, %v141_v51  }
  0xa9   :  { %312 = vst.msk [vmem:[%s654_s1 + $0x1b] sm:$0x1] %vm7_vm0, %v221_v52  }
  0xaa   :  { %313 = vst.msk [vmem:[%s654_s1 + $0x3a] sm:$0x2] %vm7_vm0, %v221_v52  }
  0xac   :  { %v157_v53 = vpop.permute.xlu0 %156  }
  0xad   :  { %v165_v54 = vpop.permute.xlu1 %164   ;;  %296 = vst.msk [vmem:[%s654_s1 + $0x13] sm:$0x1] %vm7_vm0, %v157_v53  }
  0xae   :  { %297 = vst.msk [vmem:[%s654_s1 + $0x32] sm:$0x2] %vm7_vm0, %v157_v53   ;;  %v245_v55 = vpop.permute.xlu2 %244  }
  0xaf   :  { %298 = vst.msk [vmem:[%s654_s1 + $0x14] sm:$0x1] %vm7_vm0, %v165_v54  }
  0xb0   :  { %299 = vst.msk [vmem:[%s654_s1 + $0x33] sm:$0x2] %vm7_vm0, %v165_v54  }
  0xb1   :  { %318 = vst.msk [vmem:[%s654_s1 + $0x1e] sm:$0x1] %vm7_vm0, %v245_v55  }
  0xb2   :  { %319 = vst.msk [vmem:[%s654_s1 + $0x3d] sm:$0x2] %vm7_vm0, %v245_v55  }
  0xb4   :  { %v181_v57 = vpop.permute.xlu0 %180  }
  0xb5   :  { %v189_v58 = vpop.permute.xlu1 %188   ;;  %302 = vst.msk [vmem:[%s654_s1 + $0x16] sm:$0x1] %vm7_vm0, %v181_v57  }
  0xb6   :  { %303 = vst.msk [vmem:[%s654_s1 + $0x35] sm:$0x2] %vm7_vm0, %v181_v57  }
  0xb7   :  { %304 = vst.msk [vmem:[%s654_s1 + $0x17] sm:$0x1] %vm7_vm0, %v189_v58  }
  0xb8   :  { %305 = vst.msk [vmem:[%s654_s1 + $0x36] sm:$0x2] %vm7_vm0, %v189_v58  }
  0xbc   :  { %v205_v59 = vpop.permute.xlu0 %204  }
  0xbd   :  { %v213_v60 = vpop.permute.xlu1 %212   ;;  %308 = vst.msk [vmem:[%s654_s1 + $0x19] sm:$0x1] %vm7_vm0, %v205_v59  }
  0xbe   :  { %309 = vst.msk [vmem:[%s654_s1 + $0x38] sm:$0x2] %vm7_vm0, %v205_v59  }
  0xbf   :  { %310 = vst.msk [vmem:[%s654_s1 + $0x1a] sm:$0x1] %vm7_vm0, %v213_v60  }
  0xc0   :  { %311 = vst.msk [vmem:[%s654_s1 + $0x39] sm:$0x2] %vm7_vm0, %v213_v60  }
  0xc4   :  { %v229_v61 = vpop.permute.xlu0 %228  }
  0xc5   :  { %v237_v62 = vpop.permute.xlu1 %236   ;;  %314 = vst.msk [vmem:[%s654_s1 + $0x1c] sm:$0x1] %vm7_vm0, %v229_v61  }
  0xc6   :  { %315 = vst.msk [vmem:[%s654_s1 + $0x3b] sm:$0x2] %vm7_vm0, %v229_v61  }
  0xc7   :  { %316 = vst.msk [vmem:[%s654_s1 + $0x1d] sm:$0x1] %vm7_vm0, %v237_v62  }
  0xc8   :  { %317 = vst.msk [vmem:[%s654_s1 + $0x3c] sm:$0x2] %vm7_vm0, %v237_v62  }
  0xcc   :  { %v253_v63 = vpop.permute.xlu0 %252  }
  0xcd   :  { %320 = vst.msk [vmem:[%s654_s1 + $0x1f] sm:$0x1] %vm7_vm0, %v253_v63  }
  0xce   :  { %321 = vst.msk [vmem:[%s654_s1 + $0x3e] sm:$0x2] %vm7_vm0, %v253_v63  }

// kernel: up_bn3d.2
= control target key start
LH: loop header
LB: loop body
LE: loop exit
PB: predicated region body
PF: predicated region fallthrough
CT: control target
= control target key end

     0   :  { %vm14_vm0 = vcmask 7168   ;;  %v99_v20 = vmov 0.0   ;;  %s185_s0 = inlined_call_operand.vmem [shape: f32[8,2048], index: 0, kind: input, shape index: {}]   ;;  %s186_s1 = inlined_call_operand.vmem [shape: f32[8,1], index: 1, kind: output, shape index: {0}]   ;;  %s187_s2 = inlined_call_operand.vmem [shape: f32[8,1], index: 2, kind: output, shape index: {1}]  }
   0x1   :  { %v17_v0 = vld [vmem:[%s185_s0] sm:$0xff]  ;;  %v18_v1 = vld [vmem:[%s185_s0 + $0x8] sm:$0xff]  ;;  %v19_v2 = vld [vmem:[%s185_s0 + $0x10] sm:$0xff]  ;;  %15 = vst.msk [vmem:[%s186_s1] sm:$0xff] %vm14_vm0, %v99_v20 }
   0x2   :  { %v34_v3 = vadd.f32 %v18_v1, %v17_v0  ;;  %v55_v4 = vmul.f32 %v17_v0, %v17_v0  ;;  %v56_v5 = vmul.f32 %v18_v1, %v18_v1  ;;  %v20_v6 = vld [vmem:[%s185_s0 + $0x18] sm:$0xff]  ;;  %v57_v7 = vmul.f32 %v19_v2, %v19_v2  ;;  %v21_v9 = vld [vmem:[%s185_s0 + $0x20] sm:$0xff]  ;;  %v22_v13 = vld [vmem:[%s185_s0 + $0x28] sm:$0xff]  ;;  %16 = vst.msk [vmem:[%s187_s2] sm:$0xff] %vm14_vm0, %v99_v20 }
   0x3   :  { %v58_v10 = vmul.f32 %v20_v6, %v20_v6  ;;  %v59_v14 = vmul.f32 %v21_v9, %v21_v9  ;;  %v23_v17 = vld [vmem:[%s185_s0 + $0x30] sm:$0xff]  ;;  %v60_v18 = vmul.f32 %v22_v13, %v22_v13  ;;  %v24_v22 = vld [vmem:[%s185_s0 + $0x38] sm:$0xff]  ;;  %v25_v26 = vld [vmem:[%s185_s0 + $0x40] sm:$0xff] }
   0x4   :  { %v35_v8 = vadd.f32 %v34_v3, %v19_v2  ;;  %v71_v11 = vadd.f32 %v56_v5, %v55_v4  ;;  %v61_v23 = vmul.f32 %v23_v17, %v23_v17  ;;  %v62_v27 = vmul.f32 %v24_v22, %v24_v22  ;;  %v26_v30 = vld [vmem:[%s185_s0 + $0x48] sm:$0xff]  ;;  %v27_v34 = vld [vmem:[%s185_s0 + $0x50] sm:$0xff]  ;;  %v28_v38 = vld [vmem:[%s185_s0 + $0x58] sm:$0xff] }
   0x5   :  { %v63_v31 = vmul.f32 %v25_v26, %v25_v26  ;;  %v64_v35 = vmul.f32 %v26_v30, %v26_v30  ;;  %v65_v39 = vmul.f32 %v27_v34, %v27_v34  ;;  %v29_v42 = vld [vmem:[%s185_s0 + $0x60] sm:$0xff]  ;;  %v66_v43 = vmul.f32 %v28_v38, %v28_v38  ;;  %v30_v46 = vld [vmem:[%s185_s0 + $0x68] sm:$0xff]  ;;  %v31_v50 = vld [vmem:[%s185_s0 + $0x70] sm:$0xff] }
   0x6   :  { %v36_v12 = vadd.f32 %v35_v8, %v20_v6  ;;  %v72_v15 = vadd.f32 %v71_v11, %v57_v7  ;;  %v67_v47 = vmul.f32 %v29_v42, %v29_v42  ;;  %v68_v51 = vmul.f32 %v30_v46, %v30_v46  ;;  %v32_v54 = vld [vmem:[%s185_s0 + $0x78] sm:$0xff] }
   0x7   :  { %v69_v57 = vmul.f32 %v31_v50, %v31_v50  ;;  %v70_v60 = vmul.f32 %v32_v54, %v32_v54 }
   0x8   :  { %v37_v16 = vadd.f32 %v36_v12, %v21_v9  ;;  %v73_v19 = vadd.f32 %v72_v15, %v58_v10  ;;  %v33_v63 = vld [vmem:[%s186_s1] sm:$0xff] }
   0x9   :  { %v54_v2 = vld [vmem:[%s187_s2] sm:$0xff] }
   0xa   :  { %v38_v21 = vadd.f32 %v37_v16, %v22_v13  ;;  %v74_v24 = vadd.f32 %v73_v19, %v59_v14 }
   0xc   :  { %v39_v25 = vadd.f32 %v38_v21, %v23_v17  ;;  %v75_v28 = vadd.f32 %v74_v24, %v60_v18 }
   0xe   :  { %v40_v29 = vadd.f32 %v39_v25, %v24_v22  ;;  %v76_v32 = vadd.f32 %v75_v28, %v61_v23 }
  0x10   :  { %v41_v33 = vadd.f32 %v40_v29, %v25_v26  ;;  %v77_v36 = vadd.f32 %v76_v32, %v62_v27 }
  0x12   :  { %v42_v37 = vadd.f32 %v41_v33, %v26_v30  ;;  %v78_v40 = vadd.f32 %v77_v36, %v63_v31 }
  0x14   :  { %v43_v41 = vadd.f32 %v42_v37, %v27_v34  ;;  %v79_v44 = vadd.f32 %v78_v40, %v64_v35 }
  0x16   :  { %v44_v45 = vadd.f32 %v43_v41, %v28_v38  ;;  %v80_v48 = vadd.f32 %v79_v44, %v65_v39 }
  0x18   :  { %v45_v49 = vadd.f32 %v44_v45, %v29_v42  ;;  %v81_v52 = vadd.f32 %v80_v48, %v66_v43 }
  0x1a   :  { %v46_v53 = vadd.f32 %v45_v49, %v30_v46  ;;  %v82_v55 = vadd.f32 %v81_v52, %v67_v47 }
  0x1c   :  { %v47_v56 = vadd.f32 %v46_v53, %v31_v50  ;;  %v83_v58 = vadd.f32 %v82_v55, %v68_v51 }
  0x1e   :  { %v48_v59 = vadd.f32 %v47_v56, %v32_v54  ;;  %v84_v61 = vadd.f32 %v83_v58, %v69_v57 }
  0x20   :  { %49 = vadd.xlane.f32.xlu0 %v48_v59  ;;  %v85_v62 = vadd.f32 %v84_v61, %v70_v60 }
  0x28   :  { %86 = vadd.xlane.f32.xlu0 %v85_v62 }
  0x93   :  { %v50_v0 = vpop.xlane.xlu0 %49 }
  0x94   :  { %v51_v1 = vadd.f32 %v50_v0, %v33_v63 }
  0x96   :  { %53 = vst.msk [vmem:[%s186_s1] sm:$0xff] %vm14_vm0, %v51_v1 }
  0x9b   :  { %v87_v3 = vpop.xlane.xlu0 %86 }
  0x9c   :  { %v88_v4 = vadd.f32 %v87_v3, %v54_v2 }
  0x9e   :  { %89 = vst.msk [vmem:[%s187_s2] sm:$0xff] %vm14_vm0, %v88_v4 }

// kernel: up_bn3d.3
= control target key start
LH: loop header
LB: loop body
LE: loop exit
PB: predicated region body
PF: predicated region fallthrough
CT: control target
= control target key end

     0   :  { %v3537_v0 = vmov 0   ;;  %vm997_vm0 = vcmask 261120   ;;  %s5875_s0 = inlined_call_operand.vmem [shape: f32[64,1], index: 0, kind: input, shape index: {}]   ;;  %s5876_s1 = inlined_call_operand.vmem [shape: f32[64,1], index: 1, kind: input, shape index: {}]   ;;  %s5877_s3 = inlined_call_operand.vmem [shape: f32[32,128], index: 3, kind: input, shape index: {}]   ;;  %s5878_s2 = inlined_call_operand.vmem [shape: f32[64,8,32], index: 2, kind: input, shape index: {}]   ;;  %s5879_s4 = inlined_call_operand.vmem [shape: f32[64,2,8,128], index: 4, kind: output, shape index: {}]  }
   0x1   :  { %3534 = vset.pattern.permute.xlu0 %v3537_v0  ;;  %v3566_v1 = vld [vmem:[%s5875_s0 + $0x20] sm:$0xff]  ;;  %3536 = vset.pattern.permute.xlu2 %v3537_v0  ;;  %v3616_v61 = vld [vmem:[%s5875_s0 + $0x28] sm:$0xff] }
   0x2   :  { %v3571_v2 = vld [vmem:[%s5876_s1 + $0x20] sm:$0xff]  ;;  %v257_v3 = vperm.slane %v3566_v1, 0  ;;  %3535 = vset.pattern.permute.xlu1 %v3537_v0  ;;  %v61_v5 = vrot.slane %v3566_v1, 1  ;;  %v62_v13 = vrot.slane %v3566_v1, 2  ;;  %v63_v21 = vrot.slane %v3566_v1, 3  ;;  %v3622_v63 = vld [vmem:[%s5876_s1 + $0x28] sm:$0xff] }
   0x3   :  { %v133_v4 = vrot.slane %v3571_v2, 1  ;;  %v3579_v8 = vld [vmem:[%s5876_s1] sm:$0xff]  ;;  %v641_v10 = vperm.slane %v3571_v2, 0  ;;  %v134_v14 = vrot.slane %v3571_v2, 2  ;;  %v135_v25 = vrot.slane %v3571_v2, 3 }
   0x4   :  { %418 = vperm.xlu0 %3534, %v257_v3   ;;  %v258_v7 = vperm.slane %v61_v5, 0  ;;  %v3584_v9 = vld [vmem:[%s5875_s0] sm:$0xff]  ;;  %v609_v11 = vperm.slane %v3579_v8, 0  ;;  %v259_v16 = vperm.slane %v62_v13, 0  ;;  %v105_v19 = vrot.slane %v3579_v8, 1  ;;  %v996_v3 = vld [vmem:[%s5877_s3 + $0x18] sm:$0xff] }
   0x5   :  { %v642_v6 = vperm.slane %v133_v4, 0  ;;  %v225_v12 = vperm.slane %v3584_v9, 0  ;;  %v33_v15 = vrot.slane %v3584_v9, 1  ;;  %v643_v17 = vperm.slane %v134_v14, 0 }
   0x6   :  { %422 = vperm.xlu1 %3535, %v258_v7   ;;  %v34_v20 = vrot.slane %v3584_v9, 2  ;;  %v610_v22 = vperm.slane %v105_v19, 0  ;;  %v260_v24 = vperm.slane %v63_v21, 0  ;;  %v64_v26 = vrot.slane %v3566_v1, 4 }
   0x7   :  { %806 = vperm.xlu2 %3536, %v642_v6   ;;  %v226_v18 = vperm.slane %v33_v15, 0  ;;  %v106_v27 = vrot.slane %v3579_v8, 2  ;;  %v644_v28 = vperm.slane %v135_v25, 0  ;;  %v35_v31 = vrot.slane %v3584_v9, 3  ;;  %v995_v6 = vld [vmem:[%s5877_s3 + $0x10] sm:$0xff] }
   0x8   :  { %v227_v23 = vperm.slane %v34_v20, 0  ;;  %v261_v29 = vperm.slane %v64_v26, 0  ;;  %v107_v32 = vrot.slane %v3579_v8, 3  ;;  %v136_v33 = vrot.slane %v3571_v2, 4 }
   0x9   :  { %v611_v30 = vperm.slane %v106_v27, 0  ;;  %v228_v34 = vperm.slane %v35_v31, 0  ;;  %v65_v37 = vrot.slane %v3566_v1, 5  ;;  %v137_v38 = vrot.slane %v3571_v2, 5 }
   0xa   :  { %v612_v35 = vperm.slane %v107_v32, 0  ;;  %v645_v36 = vperm.slane %v136_v33, 0  ;;  %v36_v39 = vrot.slane %v3584_v9, 4  ;;  %v108_v43 = vrot.slane %v3579_v8, 4  ;;  %v3666_v32 = vld [vmem:[%s5876_s1 + $0x8] sm:$0xff] }
   0xb   :  { %v262_v40 = vperm.slane %v65_v37, 0  ;;  %v646_v41 = vperm.slane %v137_v38, 0  ;;  %v37_v44 = vrot.slane %v3584_v9, 5  ;;  %v66_v45 = vrot.slane %v3566_v1, 6 }
   0xc   :  { %802 = vperm.xlu0 %3534, %v641_v10   ;;  %v229_v42 = vperm.slane %v36_v39, 0  ;;  %v613_v46 = vperm.slane %v108_v43, 0  ;;  %v138_v49 = vrot.slane %v3571_v2, 6  ;;  %v67_v50 = vrot.slane %v3566_v1, 7 }
   0xd   :  { %v230_v47 = vperm.slane %v37_v44, 0  ;;  %v263_v48 = vperm.slane %v66_v45, 0  ;;  %v109_v51 = vrot.slane %v3579_v8, 5  ;;  %v38_v55 = vrot.slane %v3584_v9, 6 }
   0xe   :  { %290 = vperm.xlu1 %3535, %v225_v12   ;;  %v647_v52 = vperm.slane %v138_v49, 0  ;;  %v264_v53 = vperm.slane %v67_v50, 0  ;;  %v110_v56 = vrot.slane %v3579_v8, 6  ;;  %v139_v57 = vrot.slane %v3571_v2, 7 }
   0xf   :  { %674 = vperm.xlu2 %3536, %v609_v11   ;;  %v614_v54 = vperm.slane %v109_v51, 0  ;;  %v231_v58 = vperm.slane %v38_v55, 0  ;;  %v39_v62 = vrot.slane %v3584_v9, 7  ;;  %v265_v0 = vperm.slane %v3616_v61, 0  ;;  %v3647_v11 = vld [vmem:[%s5875_s0 + $0x8] sm:$0xff] }
  0x10   :  { %v615_v59 = vperm.slane %v110_v56, 0  ;;  %v648_v60 = vperm.slane %v139_v57, 0  ;;  %v649_v1 = vperm.slane %v3622_v63, 0  ;;  %v3629_v4 = vand.u32 4294901760, %v996_v3  ;;  %v194_v56 = vld [vmem:[%s5878_s2 + $0x108] sm:$0xff] }
  0x11   :  { %v232_v2 = vperm.slane %v39_v62, 0  ;;  %v111_v5 = vrot.slane %v3579_v8, 7  ;;  %v3636_v9 = vand.u32 4294901760, %v995_v6  ;;  %v68_v10 = vrot.slane %v3616_v61, 1  ;;  %v994_v8 = vld [vmem:[%s5877_s3 + $0x8] sm:$0xff] }
  0x12   :  { %v1736_v7 = vsub.f32 %v996_v3, %v3629_v4  ;;  %3525 = vmatpush.msra.mxu2 %v3629_v4  ;;  %1203 = vmatpush.msra.mxu0 %v3629_v4  ;;  %v3650_v14 = vand.u32 4294901760, %v994_v8  ;;  %v233_v21 = vperm.slane %v3647_v11, 0  ;;  %v140_v27 = vrot.slane %v3622_v63, 1 }
  0x13   :  { %v1742_v13 = vsub.f32 %v995_v6, %v3636_v9  ;;  %v616_v15 = vperm.slane %v111_v5, 0  ;;  %v69_v31 = vrot.slane %v3616_v61, 2  ;;  %v617_v39 = vperm.slane %v3666_v32, 0 }
  0x14   :  { %426 = vperm.xlu0 %3534, %v259_v16   ;;  %v1737_v12 = vand.u32 4294901760, %v1736_v7  ;;  %3526 = vmatpush.msra.mxu2 %v3636_v9  ;;  %v993_v16 = vld [vmem:[%s5877_s3] sm:$0xff]  ;;  %v1748_v19 = vsub.f32 %v994_v8, %v3650_v14  ;;  %v41_v49 = vrot.slane %v3647_v11, 2  ;;  %v42_v57 = vrot.slane %v3647_v11, 3 }
  0x15   :  { %1205 = vmatpush.msra.mxu0 %v3636_v9  ;;  %v1208_v20 = vand.u32 4294901760, %v993_v16  ;;  %v267_v38 = vperm.slane %v69_v31, 0  ;;  %v143_v5 = vrot.slane %v3622_v63, 4  ;;  %v114_v8 = vrot.slane %v3666_v32, 3 }
  0x16   :  { %294 = vperm.xlu1 %3535, %v226_v18   ;;  %v1743_v18 = vand.u32 4294901760, %v1742_v13  ;;  %3527 = vmatpush.msra.mxu2 %v3650_v14  ;;  %v1749_v25 = vand.u32 4294901760, %v1748_v19 }
  0x17   :  { %810 = vperm.xlu2 %3536, %v643_v17   ;;  %v1738_v17 = vsub.f32 %v1736_v7, %v1737_v12  ;;  %1207 = vmatpush.msra.mxu0 %v3650_v14  ;;  %v1754_v26 = vsub.f32 %v993_v16, %v1208_v20  ;;  %v653_v16 = vperm.slane %v143_v5, 0  ;;  %v196_v5 = vld [vmem:[%s5878_s2 + $0x118] sm:$0xff] }
  0x18   :  { %3528 = vmatpush.msra.mxu2 %v1208_v20 }
  0x19   :  { %1209 = vmatpush.msra.mxu0 %v1208_v20 }
  0x1a   :  { %2030 = vmatpush.msrb.mxu2 %v1736_v7 }
  0x1b   :  { %2781 = vmatpush.msrb.mxu0 %v1737_v12 }
  0x1c   :  { %678 = vperm.xlu0 %3534, %v610_v22   ;;  %v266_v22 = vperm.slane %v68_v10, 0  ;;  %2033 = vmatpush.msrb.mxu2 %v1742_v13  ;;  %v72_v10 = vrot.slane %v3616_v61, 5 }
  0x1d   :  { %2785 = vmatpush.msrb.mxu0 %v1743_v18 }
  0x1e   :  { %430 = vperm.xlu1 %3535, %v260_v24   ;;  %v1744_v24 = vsub.f32 %v1742_v13, %v1743_v18  ;;  %2036 = vmatpush.msrb.mxu2 %v1748_v19 }
  0x1f   :  { %298 = vperm.xlu2 %3536, %v227_v23   ;;  %v1739_v23 = vand.u32 4294901760, %v1738_v17  ;;  %2789 = vmatpush.msrb.mxu0 %v1749_v25 }
  0x20   :  { %2039 = vmatpush.msrb.mxu2 %v1754_v26 }
  0x21   :  { %3529 = vmatpush.msra.mxu3 %v1739_v23  ;;  %1740 = vmatpush.msra.mxu1 %v1739_v23 }
  0x24   :  { %814 = vperm.xlu0 %3534, %v644_v28   ;;  %v1745_v28 = vand.u32 4294901760, %v1744_v24 }
  0x26   :  { %682 = vperm.xlu1 %3535, %v611_v30   ;;  %v1755_v30 = vand.u32 4294901760, %v1754_v26  ;;  %3530 = vmatpush.msra.mxu3 %v1745_v28 }
  0x27   :  { %434 = vperm.xlu2 %3536, %v261_v29   ;;  %v1750_v29 = vsub.f32 %v1748_v19, %v1749_v25  ;;  %1746 = vmatpush.msra.mxu1 %v1745_v28  ;;  %v195_v25 = vld [vmem:[%s5878_s2 + $0x110] sm:$0xff]  ;;  %v115_v28 = vrot.slane %v3666_v32, 4 }
  0x28   :  { %2793 = vmatpush.msrb.mxu0 %v1755_v30 }
  0x29   :  { %v1751_v33 = vand.u32 4294901760, %v1750_v29 }
  0x2b   :  { %3531 = vmatpush.msra.mxu3 %v1751_v33  ;;  %1752 = vmatpush.msra.mxu1 %v1751_v33 }
  0x2c   :  { %302 = vperm.xlu0 %3534, %v228_v34   ;;  %v1756_v34 = vsub.f32 %v1754_v26, %v1755_v30 }
  0x2e   :  { %818 = vperm.xlu1 %3535, %v645_v36   ;;  %v650_v36 = vperm.slane %v140_v27, 0  ;;  %v1757_v37 = vand.u32 4294901760, %v1756_v34  ;;  %v43_v27 = vrot.slane %v3647_v11, 4  ;;  %v144_v34 = vrot.slane %v3622_v63, 5 }
  0x2f   :  { %686 = vperm.xlu2 %3536, %v612_v35  }
  0x30   :  { %3532 = vmatpush.msra.mxu3 %v1757_v37  ;;  %1758 = vmatpush.msra.mxu1 %v1757_v37 }
  0x32   :  { %2374 = vmatpush.msrb.mxu3 %v3629_v4  ;;  %3064 = vmatpush.msrb.mxu1 %v3629_v4 }
  0x34   :  { %438 = vperm.xlu0 %3534, %v262_v40   ;;  %v40_v40 = vrot.slane %v3647_v11, 1  ;;  %2376 = vmatpush.msrb.mxu3 %v3636_v9 }
  0x35   :  { %3066 = vmatpush.msrb.mxu1 %v3636_v9  ;;  %v161_v9 = vld [vmem:[%s5878_s2] sm:$0xff] }
  0x36   :  { %306 = vperm.xlu1 %3535, %v229_v42   ;;  %v141_v42 = vrot.slane %v3622_v63, 2  ;;  %v234_v44 = vperm.slane %v40_v40, 0  ;;  %2378 = vmatpush.msrb.mxu3 %v3650_v14 }
  0x37   :  { %822 = vperm.xlu2 %3536, %v646_v41   ;;  %v112_v41 = vrot.slane %v3666_v32, 1  ;;  %3068 = vmatpush.msrb.mxu1 %v3650_v14 }
  0x38   :  { %2380 = vmatpush.msrb.mxu3 %v1208_v20 }
  0x39   :  { %v618_v45 = vperm.slane %v112_v41, 0  ;;  %3070 = vmatpush.msrb.mxu1 %v1208_v20  ;;  %v237_v41 = vperm.slane %v43_v27, 0 }
  0x3c   :  { %690 = vperm.xlu0 %3534, %v613_v46   ;;  %v651_v46 = vperm.slane %v141_v42, 0  ;;  %v621_v42 = vperm.slane %v115_v28, 0 }
  0x3e   :  { %442 = vperm.xlu1 %3535, %v263_v48   ;;  %v142_v48 = vrot.slane %v3622_v63, 3 }
  0x3f   :  { %310 = vperm.xlu2 %3536, %v230_v47   ;;  %v70_v47 = vrot.slane %v3616_v61, 3 }
  0x41   :  { %v268_v51 = vperm.slane %v70_v47, 0 }
  0x44   :  { %826 = vperm.xlu0 %3534, %v647_v52   ;;  %v652_v52 = vperm.slane %v142_v48, 0 }
  0x46   :  { %694 = vperm.xlu1 %3535, %v614_v54   ;;  %v113_v54 = vrot.slane %v3666_v32, 2 }
  0x47   :  { %446 = vperm.xlu2 %3536, %v264_v53   ;;  %v235_v53 = vperm.slane %v41_v49, 0 }
  0x48   :  { %v619_v62 = vperm.slane %v113_v54, 0 }
  0x4c   :  { %314 = vperm.xlu0 %3534, %v231_v58   ;;  %v71_v58 = vrot.slane %v3616_v61, 4 }
  0x4e   :  { %830 = vperm.xlu1 %3535, %v648_v60   ;;  %v269_v3 = vperm.slane %v71_v58, 0  ;;  %v44_v58 = vrot.slane %v3647_v11, 5 }
  0x4f   :  { %698 = vperm.xlu2 %3536, %v615_v59  }
  0x54   :  { %450 = vperm.xlu0 %3534, %v265_v0  }
  0x56   :  { %318 = vperm.xlu1 %3535, %v232_v2   ;;  %v236_v2 = vperm.slane %v42_v57, 0 }
  0x57   :  { %834 = vperm.xlu2 %3536, %v649_v1   ;;  %v193_v1 = vld [vmem:[%s5878_s2 + $0x100] sm:$0xff] }
  0x5c   :  { %702 = vperm.xlu0 %3534, %v616_v15  }
  0x5e   :  { %454 = vperm.xlu1 %3535, %v266_v22   ;;  %v620_v22 = vperm.slane %v114_v8, 0 }
  0x5f   :  { %322 = vperm.xlu2 %3536, %v233_v21   ;;  %v270_v21 = vperm.slane %v72_v10, 0  ;;  %v163_v10 = vld [vmem:[%s5878_s2 + $0x10] sm:$0xff] }
  0x61   :  { %v807_v35 = vpop.permute.xlu2 %806 }
  0x64   :  { %838 = vperm.xlu0 %3534, %v650_v36  }
  0x66   :  { %706 = vperm.xlu1 %3535, %v617_v39  }
  0x67   :  { %458 = vperm.xlu2 %3536, %v267_v38  }
  0x69   :  { %v675_v43 = vpop.permute.xlu2 %674 }
  0x6c   :  { %326 = vperm.xlu0 %3534, %v234_v44  }
  0x6e   :  { %842 = vperm.xlu1 %3535, %v651_v46  }
  0x6f   :  { %710 = vperm.xlu2 %3536, %v618_v45   ;;  %v654_v45 = vperm.slane %v144_v34, 0 }
  0x71   :  { %v3681_v50 = vpop.permute.xlu2 %810 }
  0x74   :  { %462 = vperm.xlu0 %3534, %v268_v51  }
  0x76   :  { %v419_v55 = vpop.permute.xlu0 %418  ;;  %330 = vperm.xlu1 %3535, %v235_v53   ;;  %v145_v53 = vrot.slane %v3622_v63, 6 }
  0x77   :  { %846 = vperm.xlu2 %3536, %v652_v52   ;;  %v577_v6 = vmul.f32 %v419_v55, %v193_v1  ;;  %v73_v52 = vrot.slane %v3616_v61, 6 }
  0x78   :  { %v423_v59 = vpop.permute.xlu1 %422 }
  0x79   :  { %v3689_v60 = vpop.permute.xlu2 %298  ;;  %v578_v0 = vmul.f32 %v423_v59, %v194_v56 }
  0x7b   :  { %v962_v4 = vadd.f32 %v807_v35, %v578_v0 }
  0x7c   :  { %714 = vperm.xlu0 %3534, %v619_v62  }
  0x7d   :  { %v1098_v12 = vsel %vm997_vm0, %v962_v4, 0 }
  0x7e   :  { %v803_v7 = vpop.permute.xlu0 %802  ;;  %466 = vperm.xlu1 %3535, %v269_v3   ;;  %v3704_v19 = vand.u32 4294901760, %v1098_v12  ;;  %v655_v3 = vperm.slane %v145_v53, 0 }
  0x7f   :  { %334 = vperm.xlu2 %3536, %v236_v2   ;;  %v961_v13 = vadd.f32 %v803_v7, %v577_v6  ;;  %v271_v2 = vperm.slane %v73_v52, 0  ;;  %v238_v7 = vperm.slane %v44_v58, 0  ;;  %v117_v52 = vrot.slane %v3666_v32, 6 }
  0x80   :  { %v291_v14 = vpop.permute.xlu1 %290  ;;  %6110 = vst [vmem:[#allocation2_spill] sm:$0xff] %v3704_v19  ;;  %v3719_v29 = vsub.f32 %v1098_v12, %v3704_v19 }
  0x81   :  { %v3701_v15 = vpop.permute.xlu2 %434  ;;  %v1095_v17 = vsel %vm997_vm0, %v961_v13, 0  ;;  %v545_v18 = vmul.f32 %v291_v14, %v161_v9  ;;  %v116_v13 = vrot.slane %v3666_v32, 5  ;;  %v45_v14 = vrot.slane %v3647_v11, 6 }
  0x82   :  { %v3706_v20 = vand.u32 4294901760, %v1095_v17  ;;  %6113 = vst [vmem:[#allocation5_spill] sm:$0xff] %v3719_v29  ;;  %v5886_v47 = vand.u32 4294901760, %v3719_v29 }
  0x83   :  { %v929_v23 = vadd.f32 %v675_v43, %v545_v18  ;;  %v162_v43 = vld [vmem:[%s5878_s2 + $0x8] sm:$0xff]  ;;  %v622_v34 = vperm.slane %v116_v13, 0 }
  0x84   :  { %6111 = vst [vmem:[#allocation3_spill] sm:$0xff] %v3706_v20  ;;  %v3709_v24 = vsub.f32 %v1095_v17, %v3706_v20  ;;  %1888 = vmatmul.f32.vlgmr.msra.gmra.mxu3 %v3706_v20  ;;  %850 = vperm.xlu0 %3534, %v653_v16   ;;  %v1477_v57 = vsub.f32 %v3719_v29, %v5886_v47 }
  0x85   :  { %v999_v26 = vsel %vm997_vm0, %v929_v23, 0 }
  0x86   :  { %6112 = vst [vmem:[#allocation4_spill] sm:$0xff] %v3709_v24  ;;  %v3721_v30 = vand.u32 4294901760, %v999_v26  ;;  %v427_v31 = vpop.permute.xlu0 %426  ;;  %718 = vperm.xlu1 %3535, %v620_v22   ;;  %v5888_v33 = vand.u32 4294901760, %v3709_v24  ;;  %v1478_v6 = vand.u32 4294901760, %v1477_v57  ;;  %v547_v22 = vmul.f32 %v3689_v60, %v163_v10 }
  0x87   :  { %470 = vperm.xlu2 %3536, %v270_v21   ;;  %v579_v35 = vmul.f32 %v427_v31, %v195_v25  ;;  %v74_v21 = vrot.slane %v3616_v61, 7 }
  0x88   :  { %v3726_v36 = vsub.f32 %v999_v26, %v3721_v30  ;;  %1760 = vmatmul.f32.vlgmr.msra.gmra.mxu1 %v3721_v30  ;;  %v295_v38 = vpop.permute.xlu1 %294  ;;  %v1469_v39 = vsub.f32 %v3709_v24, %v5888_v33 }
  0x89   :  { %v3729_v37 = vpop.permute.xlu2 %686  ;;  %v963_v40 = vadd.f32 %v3681_v50, %v579_v35  ;;  %v546_v51 = vmul.f32 %v295_v38, %v162_v43  ;;  %v239_v35 = vperm.slane %v45_v14, 0  ;;  %v272_v61 = vperm.slane %v74_v21, 0 }
  0x8a   :  { %v1470_v44 = vand.u32 4294901760, %v1469_v39  ;;  %v5896_v46 = vand.u32 4294901760, %v3726_v36 }
  0x8b   :  { %v1101_v48 = vsel %vm997_vm0, %v963_v40, 0 }
  0x8c   :  { %v3741_v49 = vand.u32 4294901760, %v1101_v48  ;;  %1471 = vmatmul.f32.vlgmr.msra.gmra.mxu2 %v1470_v44  ;;  %1892 = vmatmul.f32.gmra.mxu3 %v3704_v19  ;;  %v1213_v50 = vsub.f32 %v3726_v36, %v5896_v46  ;;  %v164_v44 = vld [vmem:[%s5878_s2 + $0x18] sm:$0xff] }
  0x8d   :  { %338 = vperm.xlu0 %3534, %v237_v41   ;;  %v197_v41 = vld [vmem:[%s5878_s2 + $0x120] sm:$0xff] }
  0x8e   :  { %6114 = vst [vmem:[#allocation6_spill] sm:$0xff] %v3741_v49  ;;  %v3750_v54 = vsub.f32 %v1101_v48, %v3741_v49  ;;  %v679_v55 = vpop.permute.xlu0 %678  ;;  %854 = vperm.xlu1 %3535, %v654_v45   ;;  %v1214_v56 = vand.u32 4294901760, %v1213_v50  ;;  %v146_v45 = vrot.slane %v3622_v63, 7  ;;  %v581_v53 = vmul.f32 %v3701_v15, %v197_v41 }
  0x8f   :  { %722 = vperm.xlu2 %3536, %v621_v42   ;;  %v930_v59 = vadd.f32 %v679_v55, %v546_v51 }
  0x90   :  { %6115 = vst [vmem:[#allocation7_spill] sm:$0xff] %v3750_v54  ;;  %1215 = vmatmul.f32.vlgmr.msra.gmra.mxu0 %v1214_v56  ;;  %v431_v0 = vpop.permute.xlu1 %430  ;;  %v5884_v9 = vand.u32 4294901760, %v3750_v54  ;;  %v3813_v56 = vld [vmem:[%s5875_s0 + $0x30] sm:$0xff] }
  0x91   :  { %v3756_v62 = vpop.permute.xlu2 %822  ;;  %v1002_v1 = vsel %vm997_vm0, %v930_v59, 0  ;;  %v580_v12 = vmul.f32 %v431_v0, %v196_v5  ;;  %v623_v5 = vperm.slane %v117_v52, 0  ;;  %v79_v33 = vrot.slane %v3813_v56, 5 }
  0x92   :  { %v3759_v4 = vand.u32 4294901760, %v1002_v1  ;;  %v1485_v17 = vsub.f32 %v3750_v54, %v5884_v9 }
  0x94   :  { %v3769_v8 = vsub.f32 %v1002_v1, %v3759_v4  ;;  %1479 = vmatmul.f32.gmra.mxu2 %v1478_v6  ;;  %1896 = vmatmul.f32.gmra.mxu3 %v3741_v49  ;;  %v1486_v39 = vand.u32 4294901760, %v1485_v17  ;;  %v656_v1 = vperm.slane %v146_v45, 0 }
  0x95   :  { %474 = vperm.xlu0 %3534, %v271_v2   ;;  %1764 = vmatmul.f32.gmra.mxu1 %v3759_v4 }
  0x96   :  { %v815_v16 = vpop.permute.xlu0 %814  ;;  %342 = vperm.xlu1 %3535, %v238_v7   ;;  %v5895_v18 = vand.u32 4294901760, %v3769_v8 }
  0x97   :  { %858 = vperm.xlu2 %3536, %v655_v3   ;;  %v964_v23 = vadd.f32 %v815_v16, %v580_v12  ;;  %v273_v3 = vperm.slane %v3813_v56, 0  ;;  %v46_v16 = vrot.slane %v3647_v11, 7 }
  0x98   :  { %v683_v26 = vpop.permute.xlu1 %682  ;;  %v1221_v27 = vsub.f32 %v3769_v8, %v5895_v18 }
  0x99   :  { %v3781_v25 = vpop.permute.xlu2 %310  ;;  %v1104_v28 = vsel %vm997_vm0, %v964_v23, 0  ;;  %v931_v31 = vadd.f32 %v683_v26, %v547_v22  ;;  %v118_v23 = vrot.slane %v3666_v32, 7 }
  0x9a   :  { %v3787_v38 = vand.u32 4294901760, %v1104_v28  ;;  %v1222_v40 = vand.u32 4294901760, %v1221_v27  ;;  %v3847_v27 = vld [vmem:[%s5876_s1 + $0x30] sm:$0xff] }
  0x9b   :  { %v1005_v60 = vsel %vm997_vm0, %v931_v31, 0  ;;  %v150_v9 = vrot.slane %v3847_v27, 4 }
  0x9c   :  { %6116 = vst [vmem:[#allocation8_spill] sm:$0xff] %v3787_v38  ;;  %v3794_v42 = vsub.f32 %v1104_v28, %v3787_v38  ;;  %v3796_v43 = vand.u32 4294901760, %v1005_v60  ;;  %1487 = vmatmul.f32.gmra.mxu2 %v1486_v39  ;;  %1223 = vmatmul.f32.gmra.mxu0 %v1222_v40  ;;  %v165_v39 = vld [vmem:[%s5878_s2 + $0x20] sm:$0xff]  ;;  %v624_v40 = vperm.slane %v118_v23, 0 }
  0x9d   :  { %726 = vperm.xlu0 %3534, %v622_v34   ;;  %1900 = vmatmul.f32.gmra.mxu3 %v3787_v38 }
  0x9e   :  { %6117 = vst [vmem:[#allocation9_spill] sm:$0xff] %v3794_v42  ;;  %v3804_v48 = vsub.f32 %v1005_v60, %v3796_v43  ;;  %v303_v50 = vpop.permute.xlu0 %302  ;;  %478 = vperm.xlu1 %3535, %v272_v61   ;;  %v5883_v51 = vand.u32 4294901760, %v3794_v42  ;;  %1768 = vmatmul.f32.gmra.mxu1 %v3796_v43  ;;  %v657_v61 = vperm.slane %v3847_v27, 0 }
  0x9f   :  { %346 = vperm.xlu2 %3536, %v239_v35   ;;  %v548_v55 = vmul.f32 %v303_v50, %v164_v44  ;;  %v240_v35 = vperm.slane %v46_v16, 0 }
  0xa0   :  { %v819_v57 = vpop.permute.xlu1 %818  ;;  %v1493_v58 = vsub.f32 %v3794_v42, %v5883_v51  ;;  %v5893_v59 = vand.u32 4294901760, %v3804_v48  ;;  %v78_v51 = vrot.slane %v3813_v56, 4 }
  0xa1   :  { %v3815_v63 = vpop.permute.xlu2 %446  ;;  %v932_v0 = vadd.f32 %v3729_v37, %v548_v55  ;;  %v965_v15 = vadd.f32 %v819_v57, %v581_v53  ;;  %v198_v37 = vld [vmem:[%s5878_s2 + $0x128] sm:$0xff]  ;;  %v75_v53 = vrot.slane %v3813_v56, 1 }
  0xa2   :  { %v1494_v2 = vand.u32 4294901760, %v1493_v58  ;;  %v1229_v6 = vsub.f32 %v3804_v48, %v5893_v59  ;;  %v147_v58 = vrot.slane %v3847_v27, 1  ;;  %v278_v59 = vperm.slane %v79_v33, 0 }
  0xa3   :  { %v1008_v7 = vsel %vm997_vm0, %v932_v0, 0  ;;  %v1107_v10 = vsel %vm997_vm0, %v965_v15, 0  ;;  %v3876_v15 = vld [vmem:[%s5875_s0 + $0x10] sm:$0xff]  ;;  %v151_v33 = vrot.slane %v3847_v27, 5 }
  0xa4   :  { %v3828_v12 = vand.u32 4294901760, %v1008_v7  ;;  %v3830_v13 = vand.u32 4294901760, %v1107_v10  ;;  %1495 = vmatmul.f32.gmra.mxu2 %v1494_v2  ;;  %v1230_v14 = vand.u32 4294901760, %v1229_v6  ;;  %v274_v6 = vperm.slane %v75_v53, 0 }
  0xa5   :  { %862 = vperm.xlu0 %3534, %v656_v1  }
  0xa6   :  { %6118 = vst [vmem:[#allocation10_spill] sm:$0xff] %v3830_v13  ;;  %v3837_v17 = vsub.f32 %v1008_v7, %v3828_v12  ;;  %v3840_v21 = vsub.f32 %v1107_v10, %v3830_v13  ;;  %v439_v22 = vpop.permute.xlu0 %438  ;;  %730 = vperm.xlu1 %3535, %v623_v5   ;;  %1231 = vmatmul.f32.gmra.mxu0 %v1230_v14  ;;  %v199_v10 = vld [vmem:[%s5878_s2 + $0x130] sm:$0xff]  ;;  %v241_v14 = vperm.slane %v3876_v15, 0 }
  0xa7   :  { %482 = vperm.xlu2 %3536, %v273_v3   ;;  %v582_v26 = vmul.f32 %v439_v22, %v198_v37  ;;  %1772 = vmatmul.f32.gmra.mxu1 %v3828_v12  ;;  %v658_v37 = vperm.slane %v147_v58, 0  ;;  %v166_v22 = vld [vmem:[%s5878_s2 + $0x28] sm:$0xff] }
  0xa8   :  { %6119 = vst [vmem:[#allocation11_spill] sm:$0xff] %v3840_v21  ;;  %1904 = vmatmul.f32.gmra.mxu3 %v3830_v13  ;;  %v307_v28 = vpop.permute.xlu1 %306  ;;  %v5892_v31 = vand.u32 4294901760, %v3837_v17  ;;  %v5882_v34 = vand.u32 4294901760, %v3840_v21 }
  0xa9   :  { %v3850_v11 = vpop.permute.xlu2 %698  ;;  %v966_v32 = vadd.f32 %v3756_v62, %v582_v26  ;;  %v549_v52 = vmul.f32 %v307_v28, %v165_v39 }
  0xaa   :  { %v1237_v60 = vsub.f32 %v3837_v17, %v5892_v31  ;;  %v1501_v41 = vsub.f32 %v3840_v21, %v5882_v34 }
  0xab   :  { %v1110_v44 = vsel %vm997_vm0, %v966_v32, 0 }
  0xac   :  { %v3866_v45 = vand.u32 4294901760, %v1110_v44  ;;  %v1238_v62 = vand.u32 4294901760, %v1237_v60  ;;  %v1502_v50 = vand.u32 4294901760, %v1501_v41  ;;  %v550_v60 = vmul.f32 %v3781_v25, %v166_v22 }
  0xad   :  { %350 = vperm.xlu0 %3534, %v240_v35   ;;  %v3902_v35 = vld [vmem:[%s5876_s1 + $0x10] sm:$0xff] }
  0xae   :  { %6120 = vst [vmem:[#allocation12_spill] sm:$0xff] %v3866_v45  ;;  %v3870_v55 = vsub.f32 %v1110_v44, %v3866_v45  ;;  %v691_v57 = vpop.permute.xlu0 %690  ;;  %866 = vperm.xlu1 %3535, %v657_v61   ;;  %1239 = vmatmul.f32.gmra.mxu0 %v1238_v62  ;;  %v76_v61 = vrot.slane %v3813_v56, 2 }
  0xaf   :  { %734 = vperm.xlu2 %3536, %v624_v40   ;;  %v933_v0 = vadd.f32 %v691_v57, %v549_v52  ;;  %1503 = vmatmul.f32.gmra.mxu2 %v1502_v50  ;;  %v47_v40 = vrot.slane %v3876_v15, 1  ;;  %v625_v57 = vperm.slane %v3902_v35, 0 }
  0xb0   :  { %6121 = vst [vmem:[#allocation13_spill] sm:$0xff] %v3870_v55  ;;  %1908 = vmatmul.f32.gmra.mxu3 %v3866_v45  ;;  %v443_v2 = vpop.permute.xlu1 %442  ;;  %v5881_v3 = vand.u32 4294901760, %v3870_v55 }
  0xb1   :  { %v3879_v1 = vpop.permute.xlu2 %834  ;;  %v1011_v5 = vsel %vm997_vm0, %v933_v0, 0  ;;  %v583_v28 = vmul.f32 %v443_v2, %v199_v10  ;;  %v242_v2 = vperm.slane %v47_v40, 0  ;;  %v119_v40 = vrot.slane %v3902_v35, 1 }
  0xb2   :  { %v3883_v7 = vand.u32 4294901760, %v1011_v5  ;;  %v1509_v16 = vsub.f32 %v3870_v55, %v5881_v3 }
  0xb4   :  { %v3896_v23 = vsub.f32 %v1011_v5, %v3883_v7  ;;  %1776 = vmatmul.f32.gmra.mxu1 %v3883_v7  ;;  %v1510_v26 = vand.u32 4294901760, %v1509_v16  ;;  %v275_v5 = vperm.slane %v76_v61, 0  ;;  %v148_v16 = vrot.slane %v3847_v27, 2 }
  0xb5   :  { %486 = vperm.xlu0 %3534, %v274_v6   ;;  %v200_v6 = vld [vmem:[%s5878_s2 + $0x138] sm:$0xff] }
  0xb6   :  { %v827_v32 = vpop.permute.xlu0 %826  ;;  %354 = vperm.xlu1 %3535, %v241_v14   ;;  %v5891_v39 = vand.u32 4294901760, %v3896_v23  ;;  %v167_v14 = vld [vmem:[%s5878_s2 + $0x30] sm:$0xff]  ;;  %v584_v61 = vmul.f32 %v3815_v63, %v200_v6 }
  0xb7   :  { %870 = vperm.xlu2 %3536, %v658_v37   ;;  %v967_v41 = vadd.f32 %v827_v32, %v583_v28  ;;  %1511 = vmatmul.f32.gmra.mxu2 %v1510_v26  ;;  %v77_v32 = vrot.slane %v3813_v56, 3 }
  0xb8   :  { %v695_v62 = vpop.permute.xlu1 %694  ;;  %v1245_v50 = vsub.f32 %v3896_v23, %v5891_v39 }
  0xb9   :  { %v3908_v44 = vpop.permute.xlu2 %322  ;;  %v1113_v52 = vsel %vm997_vm0, %v967_v41, 0  ;;  %v934_v53 = vadd.f32 %v695_v62, %v550_v60 }
  0xba   :  { %v3915_v58 = vand.u32 4294901760, %v1113_v52  ;;  %v1246_v0 = vand.u32 4294901760, %v1245_v50 }
  0xbb   :  { %v1014_v25 = vsel %vm997_vm0, %v934_v53, 0 }
  0xbc   :  { %6122 = vst [vmem:[#allocation14_spill] sm:$0xff] %v3915_v58  ;;  %v3922_v10 = vsub.f32 %v1113_v52, %v3915_v58  ;;  %v3924_v37 = vand.u32 4294901760, %v1014_v25  ;;  %1247 = vmatmul.f32.gmra.mxu0 %v1246_v0  ;;  %1912 = vmatmul.f32.gmra.mxu3 %v3915_v58  ;;  %v659_v0 = vperm.slane %v148_v16, 0 }
  0xbd   :  { %738 = vperm.xlu0 %3534, %v625_v57  }
  0xbe   :  { %6123 = vst [vmem:[#allocation15_spill] sm:$0xff] %v3922_v10  ;;  %v3932_v22 = vsub.f32 %v1014_v25, %v3924_v37  ;;  %v315_v26 = vpop.permute.xlu0 %314  ;;  %490 = vperm.xlu1 %3535, %v275_v5   ;;  %v5880_v28 = vand.u32 4294901760, %v3922_v10  ;;  %1780 = vmatmul.f32.gmra.mxu1 %v3924_v37  ;;  %v276_v5 = vperm.slane %v77_v32, 0  ;;  %v626_v25 = vperm.slane %v119_v40, 0 }
  0xbf   :  { %358 = vperm.xlu2 %3536, %v242_v2   ;;  %v551_v60 = vmul.f32 %v315_v26, %v167_v14  ;;  %v48_v32 = vrot.slane %v3876_v15, 2 }
  0xc0   :  { %v831_v62 = vpop.permute.xlu1 %830  ;;  %v1517_v50 = vsub.f32 %v3922_v10, %v5880_v28  ;;  %v5890_v52 = vand.u32 4294901760, %v3932_v22 }
  0xc1   :  { %v3939_v41 = vpop.permute.xlu2 %458  ;;  %v935_v53 = vadd.f32 %v3850_v11, %v551_v60  ;;  %v968_v57 = vadd.f32 %v831_v62, %v584_v61  ;;  %v201_v11 = vld [vmem:[%s5878_s2 + $0x140] sm:$0xff]  ;;  %v120_v62 = vrot.slane %v3902_v35, 2 }
  0xc2   :  { %v1518_v2 = vand.u32 4294901760, %v1517_v50  ;;  %v1253_v63 = vsub.f32 %v3932_v22, %v5890_v52  ;;  %v149_v50 = vrot.slane %v3847_v27, 3 }
  0xc3   :  { %v1017_v6 = vsel %vm997_vm0, %v935_v53, 0  ;;  %v1116_v14 = vsel %vm997_vm0, %v968_v57, 0 }
  0xc4   :  { %v3951_v26 = vand.u32 4294901760, %v1017_v6  ;;  %v3953_v28 = vand.u32 4294901760, %v1116_v14  ;;  %1519 = vmatmul.f32.gmra.mxu2 %v1518_v2  ;;  %v1254_v16 = vand.u32 4294901760, %v1253_v63 }
  0xc5   :  { %874 = vperm.xlu0 %3534, %v659_v0  }
  0xc6   :  { %6124 = vst [vmem:[#allocation16_spill] sm:$0xff] %v3953_v28  ;;  %v3960_v40 = vsub.f32 %v1017_v6, %v3951_v26  ;;  %v3963_v61 = vsub.f32 %v1116_v14, %v3953_v28  ;;  %v451_v60 = vpop.permute.xlu0 %450  ;;  %742 = vperm.xlu1 %3535, %v626_v25   ;;  %1255 = vmatmul.f32.gmra.mxu0 %v1254_v16  ;;  %v243_v25 = vperm.slane %v48_v32, 0  ;;  %v168_v6 = vld [vmem:[%s5878_s2 + $0x38] sm:$0xff]  ;;  %v627_v14 = vperm.slane %v120_v62, 0 }
  0xc7   :  { %494 = vperm.xlu2 %3536, %v276_v5   ;;  %v585_v53 = vmul.f32 %v451_v60, %v201_v11  ;;  %1784 = vmatmul.f32.gmra.mxu1 %v3951_v26  ;;  %v660_v11 = vperm.slane %v149_v50, 0 }
  0xc8   :  { %6125 = vst [vmem:[#allocation17_spill] sm:$0xff] %v3963_v61  ;;  %1916 = vmatmul.f32.gmra.mxu3 %v3953_v28  ;;  %v319_v0 = vpop.permute.xlu1 %318  ;;  %v5889_v2 = vand.u32 4294901760, %v3960_v40  ;;  %v5885_v63 = vand.u32 4294901760, %v3963_v61 }
  0xc9   :  { %v3969_v57 = vpop.permute.xlu2 %710  ;;  %v969_v5 = vadd.f32 %v3879_v1, %v585_v53  ;;  %v552_v53 = vmul.f32 %v319_v0, %v168_v6  ;;  %v277_v6 = vperm.slane %v78_v51, 0 }
  0xca   :  { %v1261_v16 = vsub.f32 %v3960_v40, %v5889_v2  ;;  %v1525_v60 = vsub.f32 %v3963_v61, %v5885_v63  ;;  %v49_v63 = vrot.slane %v3876_v15, 3 }
  0xcb   :  { %v1119_v3 = vsel %vm997_vm0, %v969_v5, 0 }
  0xcc   :  { %v3984_v34 = vand.u32 4294901760, %v1119_v3  ;;  %v1262_v1 = vand.u32 4294901760, %v1261_v16  ;;  %v1526_v32 = vand.u32 4294901760, %v1525_v60  ;;  %v244_v60 = vperm.slane %v49_v63, 0 }
  0xcd   :  { %362 = vperm.xlu0 %3534, %v243_v25  }
  0xce   :  { %6126 = vst [vmem:[#allocation18_spill] sm:$0xff] %v3984_v34  ;;  %v3988_v62 = vsub.f32 %v1119_v3, %v3984_v34  ;;  %v703_v50 = vpop.permute.xlu0 %702  ;;  %878 = vperm.xlu1 %3535, %v660_v11   ;;  %1263 = vmatmul.f32.gmra.mxu0 %v1262_v1  ;;  %v661_v11 = vperm.slane %v150_v9, 0 }
  0xcf   :  { %746 = vperm.xlu2 %3536, %v627_v14   ;;  %v936_v47 = vadd.f32 %v703_v50, %v552_v53  ;;  %1527 = vmatmul.f32.gmra.mxu2 %v1526_v32  ;;  %v202_v14 = vld [vmem:[%s5878_s2 + $0x148] sm:$0xff]  ;;  %v169_v32 = vld [vmem:[%s5878_s2 + $0x40] sm:$0xff]  ;;  %v121_v50 = vrot.slane %v3902_v35, 3 }
  0xd0   :  { %6127 = vst [vmem:[#allocation19_spill] sm:$0xff] %v3988_v62  ;;  %1920 = vmatmul.f32.gmra.mxu3 %v3984_v34  ;;  %v455_v0 = vpop.permute.xlu1 %454  ;;  %v5887_v25 = vand.u32 4294901760, %v3988_v62  ;;  %v553_v2 = vmul.f32 %v3908_v44, %v169_v32  ;;  %v203_v32 = vld [vmem:[%s5878_s2 + $0x150] sm:$0xff]  ;;  %v81_v34 = vrot.slane %v3813_v56, 7 }
  0xd1   :  { %v3993_v5 = vpop.permute.xlu2 %846  ;;  %v1020_v3 = vsel %vm997_vm0, %v936_v47, 0  ;;  %v586_v51 = vmul.f32 %v455_v0, %v202_v14 }
  0xd2   :  { %v3997_v16 = vand.u32 4294901760, %v1020_v3  ;;  %v1533_v1 = vsub.f32 %v3988_v62, %v5887_v25  ;;  %v50_v25 = vrot.slane %v3876_v15, 4 }
  0xd4   :  { %v4009_v53 = vsub.f32 %v1020_v3, %v3997_v16  ;;  %1788 = vmatmul.f32.gmra.mxu1 %v3997_v16  ;;  %v1534_v47 = vand.u32 4294901760, %v1533_v1  ;;  %v245_v31 = vperm.slane %v50_v25, 0 }
  0xd5   :  { %498 = vperm.xlu0 %3534, %v277_v6  }
  0xd6   :  { %v839_v9 = vpop.permute.xlu0 %838  ;;  %366 = vperm.xlu1 %3535, %v244_v60   ;;  %v5894_v63 = vand.u32 4294901760, %v4009_v53 }
  0xd7   :  { %882 = vperm.xlu2 %3536, %v661_v11   ;;  %v970_v3 = vadd.f32 %v839_v9, %v586_v51  ;;  %1535 = vmatmul.f32.gmra.mxu2 %v1534_v47  ;;  %v628_v11 = vperm.slane %v121_v50, 0 }
  0xd8   :  { %v707_v1 = vpop.permute.xlu1 %706  ;;  %v1269_v0 = vsub.f32 %v4009_v53, %v5894_v63  ;;  %v662_v63 = vperm.slane %v151_v33, 0 }
  0xd9   :  { %v4017_v52 = vpop.permute.xlu2 %334  ;;  %v1122_v6 = vsel %vm997_vm0, %v970_v3, 0  ;;  %v937_v14 = vadd.f32 %v707_v1, %v553_v2  ;;  %v170_v2 = vld [vmem:[%s5878_s2 + $0x48] sm:$0xff]  ;;  %v80_v3 = vrot.slane %v3813_v56, 6  ;;  %v587_v1 = vmul.f32 %v3939_v41, %v203_v32 }
  0xda   :  { %v4023_v60 = vand.u32 4294901760, %v1122_v6  ;;  %v1270_v39 = vand.u32 4294901760, %v1269_v0 }
  0xdb   :  { %v1023_v44 = vsel %vm997_vm0, %v937_v14, 0  ;;  %v279_v46 = vperm.slane %v80_v3, 0  ;;  %v51_v3 = vrot.slane %v3876_v15, 5 }
  0xdc   :  { %6128 = vst [vmem:[#allocation20_spill] sm:$0xff] %v4023_v60  ;;  %v4030_v47 = vsub.f32 %v1122_v6, %v4023_v60  ;;  %v4032_v51 = vand.u32 4294901760, %v1023_v44  ;;  %1271 = vmatmul.f32.gmra.mxu0 %v1270_v39  ;;  %1924 = vmatmul.f32.gmra.mxu3 %v4023_v60  ;;  %v122_v39 = vrot.slane %v3902_v35, 4 }
  0xdd   :  { %750 = vperm.xlu0 %3534, %v628_v11  }
  0xde   :  { %6129 = vst [vmem:[#allocation21_spill] sm:$0xff] %v4030_v47  ;;  %v4040_v25 = vsub.f32 %v1023_v44, %v4032_v51  ;;  %v327_v50 = vpop.permute.xlu0 %326  ;;  %502 = vperm.xlu1 %3535, %v278_v59   ;;  %v5899_v9 = vand.u32 4294901760, %v4030_v47  ;;  %1792 = vmatmul.f32.gmra.mxu1 %v4032_v51  ;;  %v629_v60 = vperm.slane %v122_v39, 0 }
  0xdf   :  { %370 = vperm.xlu2 %3536, %v245_v31   ;;  %v554_v0 = vmul.f32 %v327_v50, %v170_v2 }
  0xe0   :  { %v843_v14 = vpop.permute.xlu1 %842  ;;  %v1541_v11 = vsub.f32 %v4030_v47, %v5899_v9  ;;  %v5900_v59 = vand.u32 4294901760, %v4040_v25 }
  0xe1   :  { %v4047_v6 = vpop.permute.xlu2 %470  ;;  %v938_v31 = vadd.f32 %v3969_v57, %v554_v0  ;;  %v971_v44 = vadd.f32 %v843_v14, %v587_v1  ;;  %v204_v57 = vld [vmem:[%s5878_s2 + $0x158] sm:$0xff]  ;;  %v123_v14 = vrot.slane %v3902_v35, 5 }
  0xe2   :  { %v1542_v18 = vand.u32 4294901760, %v1541_v11  ;;  %v1277_v41 = vsub.f32 %v4040_v25, %v5900_v59 }
  0xe3   :  { %v1026_v32 = vsel %vm997_vm0, %v938_v31, 0  ;;  %v1125_v2 = vsel %vm997_vm0, %v971_v44, 0 }
  0xe4   :  { %v4059_v50 = vand.u32 4294901760, %v1026_v32  ;;  %v4061_v9 = vand.u32 4294901760, %v1125_v2  ;;  %1543 = vmatmul.f32.gmra.mxu2 %v1542_v18  ;;  %v1278_v33 = vand.u32 4294901760, %v1277_v41  ;;  %v152_v18 = vrot.slane %v3847_v27, 6 }
  0xe5   :  { %886 = vperm.xlu0 %3534, %v662_v63  }
  0xe6   :  { %6130 = vst [vmem:[#allocation22_spill] sm:$0xff] %v4061_v9  ;;  %v4068_v39 = vsub.f32 %v1026_v32, %v4059_v50  ;;  %v4071_v1 = vsub.f32 %v1125_v2, %v4061_v9  ;;  %v463_v0 = vpop.permute.xlu0 %462  ;;  %754 = vperm.xlu1 %3535, %v629_v60   ;;  %1279 = vmatmul.f32.gmra.mxu0 %v1278_v33  ;;  %v246_v60 = vperm.slane %v51_v3, 0  ;;  %v171_v32 = vld [vmem:[%s5878_s2 + $0x50] sm:$0xff]  ;;  %v630_v2 = vperm.slane %v123_v14, 0 }
  0xe7   :  { %506 = vperm.xlu2 %3536, %v279_v46   ;;  %v588_v11 = vmul.f32 %v463_v0, %v204_v57  ;;  %1796 = vmatmul.f32.gmra.mxu1 %v4059_v50  ;;  %v663_v57 = vperm.slane %v152_v18, 0 }
  0xe8   :  { %6131 = vst [vmem:[#allocation23_spill] sm:$0xff] %v4071_v1  ;;  %1928 = vmatmul.f32.gmra.mxu3 %v4061_v9  ;;  %v331_v31 = vpop.permute.xlu1 %330  ;;  %v5905_v44 = vand.u32 4294901760, %v4068_v39  ;;  %v5906_v41 = vand.u32 4294901760, %v4071_v1 }
  0xe9   :  { %v4077_v63 = vpop.permute.xlu2 %722  ;;  %v972_v46 = vadd.f32 %v3993_v5, %v588_v11  ;;  %v555_v11 = vmul.f32 %v331_v31, %v171_v32 }
  0xea   :  { %v1285_v33 = vsub.f32 %v4068_v39, %v5905_v44  ;;  %v1549_v0 = vsub.f32 %v4071_v1, %v5906_v41  ;;  %v153_v44 = vrot.slane %v3847_v27, 7  ;;  %v52_v41 = vrot.slane %v3876_v15, 6  ;;  %v205_v27 = vld [vmem:[%s5878_s2 + $0x160] sm:$0xff] }
  0xeb   :  { %v1128_v59 = vsel %vm997_vm0, %v972_v46, 0 }
  0xec   :  { %v4092_v9 = vand.u32 4294901760, %v1128_v59  ;;  %v1286_v5 = vand.u32 4294901760, %v1285_v33  ;;  %v1550_v3 = vand.u32 4294901760, %v1549_v0  ;;  %v172_v0 = vld [vmem:[%s5878_s2 + $0x58] sm:$0xff] }
  0xed   :  { %374 = vperm.xlu0 %3534, %v246_v60   ;;  %v280_v60 = vperm.slane %v81_v34, 0 }
  0xee   :  { %6132 = vst [vmem:[#allocation24_spill] sm:$0xff] %v4092_v9  ;;  %v4096_v14 = vsub.f32 %v1128_v59, %v4092_v9  ;;  %v715_v18 = vpop.permute.xlu0 %714  ;;  %890 = vperm.xlu1 %3535, %v663_v57   ;;  %1287 = vmatmul.f32.gmra.mxu0 %v1286_v5  ;;  %v247_v57 = vperm.slane %v52_v41, 0 }
  0xef   :  { %758 = vperm.xlu2 %3536, %v630_v2   ;;  %v939_v1 = vadd.f32 %v715_v18, %v555_v11  ;;  %1551 = vmatmul.f32.gmra.mxu2 %v1550_v3  ;;  %v664_v2 = vperm.slane %v153_v44, 0  ;;  %v124_v3 = vrot.slane %v3902_v35, 6  ;;  %v53_v11 = vrot.slane %v3876_v15, 7 }
  0xf0   :  { %6133 = vst [vmem:[#allocation25_spill] sm:$0xff] %v4096_v14  ;;  %1932 = vmatmul.f32.gmra.mxu3 %v4092_v9  ;;  %v467_v31 = vpop.permute.xlu1 %466  ;;  %v5909_v56 = vand.u32 4294901760, %v4096_v14  ;;  %v556_v18 = vmul.f32 %v4017_v52, %v172_v0 }
  0xf1   :  { %v4101_v46 = vpop.permute.xlu2 %858  ;;  %v1029_v59 = vsel %vm997_vm0, %v939_v1, 0  ;;  %v589_v1 = vmul.f32 %v467_v31, %v205_v27  ;;  %v631_v15 = vperm.slane %v124_v3, 0  ;;  %v248_v0 = vperm.slane %v53_v11, 0 }
  0xf2   :  { %v4105_v32 = vand.u32 4294901760, %v1029_v59  ;;  %v1557_v33 = vsub.f32 %v4096_v14, %v5909_v56 }
  0xf4   :  { %v4117_v5 = vsub.f32 %v1029_v59, %v4105_v32  ;;  %1800 = vmatmul.f32.gmra.mxu1 %v4105_v32  ;;  %v1558_v34 = vand.u32 4294901760, %v1557_v33  ;;  %v4127_v59 = vld [vmem:[%s5875_s0 + $0x38] sm:$0xff] }
  0xf5   :  { %510 = vperm.xlu0 %3534, %v280_v60   ;;  %v82_v3 = vrot.slane %v4127_v59, 1 }
  0xf6   :  { %v851_v44 = vpop.permute.xlu0 %850  ;;  %378 = vperm.xlu1 %3535, %v247_v57   ;;  %v5912_v41 = vand.u32 4294901760, %v4117_v5 }
  0xf7   :  { %894 = vperm.xlu2 %3536, %v664_v2   ;;  %v973_v56 = vadd.f32 %v851_v44, %v589_v1  ;;  %1559 = vmatmul.f32.gmra.mxu2 %v1558_v34  ;;  %v281_v34 = vperm.slane %v4127_v59, 0  ;;  %v206_v44 = vld [vmem:[%s5878_s2 + $0x168] sm:$0xff]  ;;  %v282_v47 = vperm.slane %v82_v3, 0 }
  0xf8   :  { %v719_v60 = vpop.permute.xlu1 %718  ;;  %v1293_v27 = vsub.f32 %v4117_v5, %v5912_v41 }
  0xf9   :  { %v4129_v31 = vpop.permute.xlu2 %346  ;;  %v1131_v2 = vsel %vm997_vm0, %v973_v56, 0  ;;  %v940_v57 = vadd.f32 %v719_v60, %v556_v18  ;;  %v173_v56 = vld [vmem:[%s5878_s2 + $0x60] sm:$0xff]  ;;  %v4158_v18 = vld [vmem:[%s5876_s1 + $0x38] sm:$0xff] }
  0xfa   :  { %v4135_v33 = vand.u32 4294901760, %v1131_v2  ;;  %v1294_v52 = vand.u32 4294901760, %v1293_v27  ;;  %v125_v27 = vrot.slane %v3902_v35, 7  ;;  %v665_v14 = vperm.slane %v4158_v18, 0 }
  0xfb   :  { %v1032_v1 = vsel %vm997_vm0, %v940_v57, 0 }
  0xfc   :  { %6134 = vst [vmem:[#allocation26_spill] sm:$0xff] %v4135_v33  ;;  %v4143_v9 = vsub.f32 %v1131_v2, %v4135_v33  ;;  %v4145_v41 = vand.u32 4294901760, %v1032_v1  ;;  %1295 = vmatmul.f32.gmra.mxu0 %v1294_v52  ;;  %1936 = vmatmul.f32.gmra.mxu3 %v4135_v33  ;;  %v590_v2 = vmul.f32 %v4047_v6, %v206_v44  ;;  %v632_v44 = vperm.slane %v125_v27, 0 }
  0xfd   :  { %762 = vperm.xlu0 %3534, %v631_v15   ;;  %v154_v27 = vrot.slane %v4158_v18, 1 }
  0xfe   :  { %6135 = vst [vmem:[#allocation27_spill] sm:$0xff] %v4143_v9  ;;  %v4153_v11 = vsub.f32 %v1032_v1, %v4145_v41  ;;  %514 = vperm.xlu1 %3535, %v281_v34   ;;  %v5923_v60 = vand.u32 4294901760, %v4143_v9  ;;  %1804 = vmatmul.f32.gmra.mxu1 %v4145_v41 }
  0xff   :  { %382 = vperm.xlu2 %3536, %v248_v0   ;;  %v339_v57 = vpop.permute.xlu0 %338 }
 0x100   :  { %v557_v15 = vmul.f32 %v339_v57, %v173_v56  ;;  %v855_v1 = vpop.permute.xlu1 %854  ;;  %v1565_v0 = vsub.f32 %v4143_v9, %v5923_v60  ;;  %v5924_v34 = vand.u32 4294901760, %v4153_v11 }
 0x101   :  { %v4164_v52 = vpop.permute.xlu2 %482  ;;  %v974_v33 = vadd.f32 %v855_v1, %v590_v2  ;;  %v4200_v1 = vld [vmem:[%s5876_s1 + $0x18] sm:$0xff] }
 0x102   :  { %v941_v35 = vadd.f32 %v4077_v63, %v557_v15  ;;  %v1566_v6 = vand.u32 4294901760, %v1565_v0  ;;  %v1301_v56 = vsub.f32 %v4153_v11, %v5924_v34  ;;  %v207_v63 = vld [vmem:[%s5878_s2 + $0x170] sm:$0xff] }
 0x103   :  { %v1134_v57 = vsel %vm997_vm0, %v974_v33, 0  ;;  %v4190_v33 = vld [vmem:[%s5875_s0 + $0x18] sm:$0xff] }
 0x104   :  { %v1035_v28 = vsel %vm997_vm0, %v941_v35, 0  ;;  %v4177_v62 = vand.u32 4294901760, %v1134_v57  ;;  %1567 = vmatmul.f32.gmra.mxu2 %v1566_v6  ;;  %v1302_v60 = vand.u32 4294901760, %v1301_v56  ;;  %v633_v56 = vperm.slane %v4200_v1, 0 }
 0x105   :  { %v4179_v2 = vand.u32 4294901760, %v1035_v28  ;;  %898 = vperm.xlu0 %3534, %v665_v14  }
 0x106   :  { %6136 = vst [vmem:[#allocation28_spill] sm:$0xff] %v4177_v62  ;;  %v4185_v3 = vsub.f32 %v1134_v57, %v4177_v62  ;;  %766 = vperm.xlu1 %3535, %v632_v44   ;;  %1303 = vmatmul.f32.gmra.mxu0 %v1302_v60  ;;  %v666_v57 = vperm.slane %v154_v27, 0  ;;  %v83_v27 = vrot.slane %v4127_v59, 2 }
 0x107   :  { %518 = vperm.xlu2 %3536, %v282_v47   ;;  %v4194_v15 = vsub.f32 %v1035_v28, %v4179_v2  ;;  %v475_v14 = vpop.permute.xlu0 %474  ;;  %1808 = vmatmul.f32.gmra.mxu1 %v4179_v2  ;;  %v249_v28 = vperm.slane %v4190_v33, 0 }
 0x108   :  { %6137 = vst [vmem:[#allocation29_spill] sm:$0xff] %v4185_v3  ;;  %v591_v47 = vmul.f32 %v475_v14, %v207_v63  ;;  %1940 = vmatmul.f32.gmra.mxu3 %v4177_v62  ;;  %v343_v35 = vpop.permute.xlu1 %342  ;;  %v5931_v6 = vand.u32 4294901760, %v4185_v3  ;;  %v174_v14 = vld [vmem:[%s5878_s2 + $0x68] sm:$0xff] }
 0x109   :  { %v4203_v0 = vpop.permute.xlu2 %734  ;;  %v5936_v44 = vand.u32 4294901760, %v4194_v15 }
 0x10a   :  { %v975_v60 = vadd.f32 %v4101_v46, %v591_v47  ;;  %v1573_v63 = vsub.f32 %v4185_v3, %v5931_v6  ;;  %v558_v47 = vmul.f32 %v343_v35, %v174_v14  ;;  %v155_v6 = vrot.slane %v4158_v18, 2 }
 0x10b   :  { %v1309_v34 = vsub.f32 %v4194_v15, %v5936_v44  ;;  %v54_v3 = vrot.slane %v4190_v33, 1 }
 0x10c   :  { %v1137_v62 = vsel %vm997_vm0, %v975_v60, 0  ;;  %v1574_v9 = vand.u32 4294901760, %v1573_v63  ;;  %v283_v63 = vperm.slane %v83_v27, 0 }
 0x10d   :  { %v4220_v58 = vand.u32 4294901760, %v1137_v62  ;;  %386 = vperm.xlu0 %3534, %v249_v28   ;;  %v1310_v46 = vand.u32 4294901760, %v1309_v34  ;;  %v250_v14 = vperm.slane %v54_v3, 0 }
 0x10e   :  { %902 = vperm.xlu1 %3535, %v666_v57   ;;  %1575 = vmatmul.f32.gmra.mxu2 %v1574_v9  ;;  %v667_v57 = vperm.slane %v155_v6, 0  ;;  %v126_v6 = vrot.slane %v4200_v1, 1 }
 0x10f   :  { %6138 = vst [vmem:[#allocation30_spill] sm:$0xff] %v4220_v58  ;;  %770 = vperm.xlu2 %3536, %v633_v56   ;;  %v4226_v61 = vsub.f32 %v1137_v62, %v4220_v58  ;;  %v727_v44 = vpop.permute.xlu0 %726  ;;  %1311 = vmatmul.f32.gmra.mxu0 %v1310_v46  ;;  %v208_v62 = vld [vmem:[%s5878_s2 + $0x178] sm:$0xff] }
 0x110   :  { %v942_v60 = vadd.f32 %v727_v44, %v558_v47  ;;  %1944 = vmatmul.f32.gmra.mxu3 %v4220_v58  ;;  %v479_v34 = vpop.permute.xlu1 %478  ;;  %v175_v44 = vld [vmem:[%s5878_s2 + $0x70] sm:$0xff]  ;;  %v55_v47 = vrot.slane %v4190_v33, 2  ;;  %v84_v58 = vrot.slane %v4127_v59, 3 }
 0x111   :  { %6139 = vst [vmem:[#allocation31_spill] sm:$0xff] %v4226_v61  ;;  %v4229_v28 = vpop.permute.xlu2 %870  ;;  %v5939_v35 = vand.u32 4294901760, %v4226_v61  ;;  %v592_v27 = vmul.f32 %v479_v34, %v208_v62 }
 0x112   :  { %v1038_v56 = vsel %vm997_vm0, %v942_v60, 0  ;;  %v251_v62 = vperm.slane %v55_v47, 0  ;;  %v284_v55 = vperm.slane %v84_v58, 0  ;;  %v85_v58 = vrot.slane %v4127_v59, 4 }
 0x113   :  { %v4233_v45 = vand.u32 4294901760, %v1038_v56  ;;  %v1581_v9 = vsub.f32 %v4226_v61, %v5939_v35 }
 0x115   :  { %v4245_v46 = vsub.f32 %v1038_v56, %v4233_v45  ;;  %522 = vperm.xlu0 %3534, %v283_v63   ;;  %1812 = vmatmul.f32.gmra.mxu1 %v4233_v45  ;;  %v1582_v3 = vand.u32 4294901760, %v1581_v9  ;;  %v559_v56 = vmul.f32 %v4129_v31, %v175_v44  ;;  %v634_v9 = vperm.slane %v126_v6, 0  ;;  %v209_v31 = vld [vmem:[%s5878_s2 + $0x180] sm:$0xff] }
 0x116   :  { %390 = vperm.xlu1 %3535, %v250_v14  }
 0x117   :  { %906 = vperm.xlu2 %3536, %v667_v57   ;;  %v863_v60 = vpop.permute.xlu0 %862  ;;  %1583 = vmatmul.f32.gmra.mxu2 %v1582_v3  ;;  %v5952_v35 = vand.u32 4294901760, %v4245_v46 }
 0x118   :  { %v976_v61 = vadd.f32 %v863_v60, %v592_v27  ;;  %v731_v10 = vpop.permute.xlu1 %730  ;;  %v127_v60 = vrot.slane %v4200_v1, 2 }
 0x119   :  { %v4253_v63 = vpop.permute.xlu2 %358  ;;  %v1317_v34 = vsub.f32 %v4245_v46, %v5952_v35  ;;  %v943_v14 = vadd.f32 %v731_v10, %v559_v56  ;;  %v176_v10 = vld [vmem:[%s5878_s2 + $0x78] sm:$0xff]  ;;  %v593_v56 = vmul.f32 %v4164_v52, %v209_v31 }
 0x11a   :  { %v1140_v57 = vsel %vm997_vm0, %v976_v61, 0  ;;  %v156_v61 = vrot.slane %v4158_v18, 3  ;;  %v635_v49 = vperm.slane %v127_v60, 0  ;;  %v56_v60 = vrot.slane %v4190_v33, 3 }
 0x11b   :  { %v4259_v3 = vand.u32 4294901760, %v1140_v57  ;;  %v1318_v13 = vand.u32 4294901760, %v1317_v34  ;;  %v1041_v38 = vsel %vm997_vm0, %v943_v14, 0 }
 0x11c   :  { %v4268_v6 = vand.u32 4294901760, %v1041_v38  ;;  %v668_v14 = vperm.slane %v156_v61, 0 }
 0x11d   :  { %6140 = vst [vmem:[#allocation32_spill] sm:$0xff] %v4259_v3  ;;  %v4266_v44 = vsub.f32 %v1140_v57, %v4259_v3  ;;  %774 = vperm.xlu0 %3534, %v634_v9   ;;  %1319 = vmatmul.f32.gmra.mxu0 %v1318_v13 }
 0x11e   :  { %1948 = vmatmul.f32.gmra.mxu3 %v4259_v3  ;;  %v4277_v27 = vsub.f32 %v1041_v38, %v4268_v6  ;;  %526 = vperm.xlu1 %3535, %v284_v55   ;;  %v285_v3 = vperm.slane %v85_v58, 0 }
 0x11f   :  { %6141 = vst [vmem:[#allocation33_spill] sm:$0xff] %v4266_v44  ;;  %394 = vperm.xlu2 %3536, %v251_v62   ;;  %v351_v47 = vpop.permute.xlu0 %350  ;;  %1816 = vmatmul.f32.gmra.mxu1 %v4268_v6  ;;  %v5959_v13 = vand.u32 4294901760, %v4266_v44 }
 0x120   :  { %v560_v9 = vmul.f32 %v351_v47, %v176_v10  ;;  %v867_v57 = vpop.permute.xlu1 %866  ;;  %v5960_v62 = vand.u32 4294901760, %v4277_v27 }
 0x121   :  { %v4283_v34 = vpop.permute.xlu2 %494  ;;  %v1589_v38 = vsub.f32 %v4266_v44, %v5959_v13  ;;  %v977_v35 = vadd.f32 %v867_v57, %v593_v56  ;;  %v128_v56 = vrot.slane %v4200_v1, 3 }
 0x122   :  { %v944_v55 = vadd.f32 %v4203_v0, %v560_v9  ;;  %v1325_v52 = vsub.f32 %v4277_v27, %v5960_v62  ;;  %v210_v0 = vld [vmem:[%s5878_s2 + $0x188] sm:$0xff] }
 0x123   :  { %v1590_v21 = vand.u32 4294901760, %v1589_v38  ;;  %v1143_v10 = vsel %vm997_vm0, %v977_v35, 0  ;;  %v636_v13 = vperm.slane %v128_v56, 0 }
 0x124   :  { %v1044_v31 = vsel %vm997_vm0, %v944_v55, 0  ;;  %v4297_v47 = vand.u32 4294901760, %v1143_v10  ;;  %v1326_v58 = vand.u32 4294901760, %v1325_v52  ;;  %v252_v55 = vperm.slane %v56_v60, 0 }
 0x125   :  { %v4295_v61 = vand.u32 4294901760, %v1044_v31  ;;  %910 = vperm.xlu0 %3534, %v668_v14   ;;  %1591 = vmatmul.f32.gmra.mxu2 %v1590_v21  ;;  %v157_v21 = vrot.slane %v4158_v18, 4 }
 0x126   :  { %6142 = vst [vmem:[#allocation34_spill] sm:$0xff] %v4297_v47  ;;  %v4308_v35 = vsub.f32 %v1143_v10, %v4297_v47  ;;  %778 = vperm.xlu1 %3535, %v635_v49   ;;  %1327 = vmatmul.f32.gmra.mxu0 %v1326_v58  ;;  %v177_v49 = vld [vmem:[%s5878_s2 + $0x80] sm:$0xff] }
 0x127   :  { %530 = vperm.xlu2 %3536, %v285_v3   ;;  %v4305_v9 = vsub.f32 %v1044_v31, %v4295_v61  ;;  %v487_v57 = vpop.permute.xlu0 %486  ;;  %1820 = vmatmul.f32.gmra.mxu1 %v4295_v61 }
 0x128   :  { %6143 = vst [vmem:[#allocation35_spill] sm:$0xff] %v4308_v35  ;;  %v594_v14 = vmul.f32 %v487_v57, %v210_v0  ;;  %1952 = vmatmul.f32.gmra.mxu3 %v4297_v47  ;;  %v355_v3 = vpop.permute.xlu1 %354  ;;  %v5966_v31 = vand.u32 4294901760, %v4308_v35  ;;  %v669_v0 = vperm.slane %v157_v21, 0  ;;  %v158_v21 = vrot.slane %v4158_v18, 5 }
 0x129   :  { %v4313_v38 = vpop.permute.xlu2 %746  ;;  %v5965_v52 = vand.u32 4294901760, %v4305_v9  ;;  %v561_v47 = vmul.f32 %v355_v3, %v177_v49 }
 0x12a   :  { %v978_v10 = vadd.f32 %v4229_v28, %v594_v14  ;;  %v1597_v60 = vsub.f32 %v4308_v35, %v5966_v31  ;;  %v86_v14 = vrot.slane %v4127_v59, 5  ;;  %v57_v31 = vrot.slane %v4190_v33, 4 }
 0x12b   :  { %v1333_v58 = vsub.f32 %v4305_v9, %v5965_v52  ;;  %v670_v49 = vperm.slane %v158_v21, 0  ;;  %v129_v21 = vrot.slane %v4200_v1, 4 }
 0x12c   :  { %v1146_v57 = vsel %vm997_vm0, %v978_v10, 0  ;;  %v1598_v56 = vand.u32 4294901760, %v1597_v60  ;;  %v286_v60 = vperm.slane %v86_v14, 0 }
 0x12d   :  { %v4328_v62 = vand.u32 4294901760, %v1146_v57  ;;  %398 = vperm.xlu0 %3534, %v252_v55   ;;  %v1334_v28 = vand.u32 4294901760, %v1333_v58 }
 0x12e   :  { %914 = vperm.xlu1 %3535, %v669_v0   ;;  %1599 = vmatmul.f32.gmra.mxu2 %v1598_v56  ;;  %v211_v0 = vld [vmem:[%s5878_s2 + $0x190] sm:$0xff] }
 0x12f   :  { %6144 = vst [vmem:[#allocation36_spill] sm:$0xff] %v4328_v62  ;;  %782 = vperm.xlu2 %3536, %v636_v13   ;;  %v4333_v44 = vsub.f32 %v1146_v57, %v4328_v62  ;;  %v739_v52 = vpop.permute.xlu0 %738  ;;  %1335 = vmatmul.f32.gmra.mxu0 %v1334_v28  ;;  %v253_v28 = vperm.slane %v57_v31, 0  ;;  %v58_v31 = vrot.slane %v4190_v33, 5 }
 0x130   :  { %v945_v10 = vadd.f32 %v739_v52, %v561_v47  ;;  %1956 = vmatmul.f32.gmra.mxu3 %v4328_v62  ;;  %v491_v58 = vpop.permute.xlu1 %490  ;;  %v178_v52 = vld [vmem:[%s5878_s2 + $0x88] sm:$0xff] }
 0x131   :  { %6145 = vst [vmem:[#allocation37_spill] sm:$0xff] %v4333_v44  ;;  %v4337_v55 = vpop.permute.xlu2 %882  ;;  %v5969_v13 = vand.u32 4294901760, %v4333_v44  ;;  %v562_v35 = vmul.f32 %v4253_v63, %v178_v52  ;;  %v254_v19 = vperm.slane %v58_v31, 0  ;;  %v212_v52 = vld [vmem:[%s5878_s2 + $0x198] sm:$0xff] }
 0x132   :  { %v1047_v3 = vsel %vm997_vm0, %v945_v10, 0  ;;  %v595_v10 = vmul.f32 %v491_v58, %v211_v0 }
 0x133   :  { %v4341_v57 = vand.u32 4294901760, %v1047_v3  ;;  %v1605_v47 = vsub.f32 %v4333_v44, %v5969_v13  ;;  %v87_v44 = vrot.slane %v4127_v59, 6 }
 0x135   :  { %v4353_v56 = vsub.f32 %v1047_v3, %v4341_v57  ;;  %534 = vperm.xlu0 %3534, %v286_v60   ;;  %1824 = vmatmul.f32.gmra.mxu1 %v4341_v57  ;;  %v1606_v14 = vand.u32 4294901760, %v1605_v47  ;;  %v637_v47 = vperm.slane %v129_v21, 0  ;;  %v287_v63 = vperm.slane %v87_v44, 0 }
 0x136   :  { %402 = vperm.xlu1 %3535, %v253_v28   ;;  %v88_v44 = vrot.slane %v4127_v59, 7 }
 0x137   :  { %918 = vperm.xlu2 %3536, %v670_v49   ;;  %v875_v62 = vpop.permute.xlu0 %874  ;;  %v5982_v13 = vand.u32 4294901760, %v4353_v56  ;;  %1607 = vmatmul.f32.gmra.mxu2 %v1606_v14  ;;  %v4366_v49 = vpop.f32.mrf.mxu3 }
 0x138   :  { %v979_v3 = vadd.f32 %v875_v62, %v595_v10  ;;  %v743_v42 = vpop.permute.xlu1 %742  ;;  %6146 = vst [vmem:[#allocation38_spill] sm:$0xff] %v4366_v49  ;;  %v288_v29 = vperm.slane %v88_v44, 0 }
 0x139   :  { %v4361_v60 = vpop.permute.xlu2 %370  ;;  %v1341_v58 = vsub.f32 %v4353_v56, %v5982_v13  ;;  %v946_v28 = vadd.f32 %v743_v42, %v562_v35  ;;  %v179_v42 = vld [vmem:[%s5878_s2 + $0x90] sm:$0xff]  ;;  %v159_v35 = vrot.slane %v4158_v18, 6  ;;  %v4401_v13 = vpop.f32.mrf.mxu1 }
 0x13a   :  { %v1149_v0 = vsel %vm997_vm0, %v979_v3, 0  ;;  %v130_v3 = vrot.slane %v4200_v1, 5 }
 0x13b   :  { %v4369_v54 = vand.u32 4294901760, %v1149_v0  ;;  %v1342_v20 = vand.u32 4294901760, %v1341_v58  ;;  %v1050_v62 = vsel %vm997_vm0, %v946_v28, 0  ;;  %v596_v58 = vmul.f32 %v4283_v34, %v212_v52 }
 0x13c   :  { %v4378_v21 = vand.u32 4294901760, %v1050_v62  ;;  %v671_v59 = vperm.slane %v159_v35, 0  ;;  %v638_v24 = vperm.slane %v130_v3, 0  ;;  %v59_v3 = vrot.slane %v4190_v33, 6 }
 0x13d   :  { %6147 = vst [vmem:[#allocation39_spill] sm:$0xff] %v4369_v54  ;;  %v4376_v14 = vsub.f32 %v1149_v0, %v4369_v54  ;;  %786 = vperm.xlu0 %3534, %v637_v47   ;;  %1343 = vmatmul.f32.gmra.mxu0 %v1342_v20  ;;  %v4392_v47 = vpop.f32.mrf.mxu2 }
 0x13e   :  { %1960 = vmatmul.f32.gmra.mxu3 %v4369_v54  ;;  %v4387_v10 = vsub.f32 %v1050_v62, %v4378_v21  ;;  %538 = vperm.xlu1 %3535, %v287_v63   ;;  %6149 = vst [vmem:[#allocation41_spill] sm:$0xff] %v4392_v47 }
 0x13f   :  { %6148 = vst [vmem:[#allocation40_spill] sm:$0xff] %v4376_v14  ;;  %406 = vperm.xlu2 %3536, %v254_v19   ;;  %v363_v31 = vpop.permute.xlu0 %362  ;;  %1828 = vmatmul.f32.gmra.mxu1 %v4378_v21  ;;  %v5989_v20 = vand.u32 4294901760, %v4376_v14  ;;  %v4407_v52 = vpop.f32.mrf.mxu3 }
 0x140   :  { %v563_v0 = vmul.f32 %v363_v31, %v179_v42  ;;  %v879_v19 = vpop.permute.xlu1 %878  ;;  %v5990_v63 = vand.u32 4294901760, %v4387_v10  ;;  %6150 = vst [vmem:[#allocation42_spill] sm:$0xff] %v4407_v52 }
 0x141   :  { %v4395_v28 = vpop.permute.xlu2 %506  ;;  %v1613_v62 = vsub.f32 %v4376_v14, %v5989_v20  ;;  %v980_v49 = vadd.f32 %v879_v19, %v596_v58  ;;  %v131_v58 = vrot.slane %v4200_v1, 6  ;;  %v4427_v19 = vpop.f32.mrf.mxu0 }
 0x142   :  { %v947_v54 = vadd.f32 %v4313_v38, %v563_v0  ;;  %v1349_v34 = vsub.f32 %v4387_v10, %v5990_v63  ;;  %v213_v38 = vld [vmem:[%s5878_s2 + $0x1a0] sm:$0xff]  ;;  %v4435_v63 = vpop.f32.mrf.mxu1 }
 0x143   :  { %v1614_v47 = vand.u32 4294901760, %v1613_v62  ;;  %v1152_v35 = vsel %vm997_vm0, %v980_v49, 0 }
 0x144   :  { %v1053_v42 = vsel %vm997_vm0, %v947_v54, 0  ;;  %v4413_v20 = vand.u32 4294901760, %v1152_v35  ;;  %v1350_v44 = vand.u32 4294901760, %v1349_v34  ;;  %v255_v34 = vperm.slane %v59_v3, 0 }
 0x145   :  { %v4411_v31 = vand.u32 4294901760, %v1053_v42  ;;  %922 = vperm.xlu0 %3534, %v671_v59   ;;  %1615 = vmatmul.f32.gmra.mxu2 %v1614_v47  ;;  %v160_v47 = vrot.slane %v4158_v18, 7 }
 0x146   :  { %6152 = vst [vmem:[#allocation44_spill] sm:$0xff] %v4413_v20  ;;  %v4424_v49 = vsub.f32 %v1152_v35, %v4413_v20  ;;  %790 = vperm.xlu1 %3535, %v638_v24   ;;  %1351 = vmatmul.f32.gmra.mxu0 %v1350_v44  ;;  %v4437_v24 = vpop.f32.mrf.mxu2  ;;  %v639_v44 = vperm.slane %v131_v58, 0 }
 0x147   :  { %6151 = vst [vmem:[#allocation43_spill] sm:$0xff] %v4411_v31  ;;  %542 = vperm.xlu2 %3536, %v288_v29   ;;  %v4421_v54 = vsub.f32 %v1053_v42, %v4411_v31  ;;  %v499_v0 = vpop.permute.xlu0 %498  ;;  %1832 = vmatmul.f32.gmra.mxu1 %v4411_v31 }
 0x148   :  { %6153 = vst [vmem:[#allocation45_spill] sm:$0xff] %v4424_v49  ;;  %v597_v59 = vmul.f32 %v499_v0, %v213_v38  ;;  %1964 = vmatmul.f32.gmra.mxu3 %v4413_v20  ;;  %v367_v62 = vpop.permute.xlu1 %366  ;;  %v5998_v35 = vand.u32 4294901760, %v4424_v49  ;;  %v180_v38 = vld [vmem:[%s5878_s2 + $0x98] sm:$0xff]  ;;  %v672_v0 = vperm.slane %v160_v47, 0 }
 0x149   :  { %v4431_v29 = vpop.permute.xlu2 %758  ;;  %v5997_v42 = vand.u32 4294901760, %v4421_v54  ;;  %6154 = vst [vmem:[#allocation46_spill] sm:$0xff] %v4437_v24  ;;  %v4453_v24 = vpop.f32.mrf.mxu3  ;;  %v564_v47 = vmul.f32 %v367_v62, %v180_v38 }
 0x14a   :  { %v981_v18 = vadd.f32 %v4337_v55, %v597_v59  ;;  %v1621_v20 = vsub.f32 %v4424_v49, %v5998_v35  ;;  %v60_v59 = vrot.slane %v4190_v33, 7  ;;  %6156 = vst [vmem:[#allocation48_spill] sm:$0xff] %v4453_v24  ;;  %v132_v35 = vrot.slane %v4200_v1, 7  ;;  %v4463_v62 = vpop.f32.mrf.mxu1  ;;  %v214_v1 = vld [vmem:[%s5878_s2 + $0x1a8] sm:$0xff] }
 0x14b   :  { %v1357_v3 = vsub.f32 %v4421_v54, %v5997_v42  ;;  %6158 = vst [vmem:[#allocation50_spill] sm:$0xff] %v4463_v62 }
 0x14c   :  { %v1155_v52 = vsel %vm997_vm0, %v981_v18, 0  ;;  %v1622_v58 = vand.u32 4294901760, %v1621_v20  ;;  %v256_v20 = vperm.slane %v60_v59, 0 }
 0x14d   :  { %v4450_v14 = vand.u32 4294901760, %v1155_v52  ;;  %410 = vperm.xlu0 %3534, %v255_v34   ;;  %v1358_v55 = vand.u32 4294901760, %v1357_v3  ;;  %v4461_v3 = vpop.f32.mrf.mxu0 }
 0x14e   :  { %926 = vperm.xlu1 %3535, %v672_v0   ;;  %1623 = vmatmul.f32.gmra.mxu2 %v1622_v58  ;;  %v181_v58 = vld [vmem:[%s5878_s2 + $0xa0] sm:$0xff] }
 0x14f   :  { %6155 = vst [vmem:[#allocation47_spill] sm:$0xff] %v4450_v14  ;;  %794 = vperm.xlu2 %3536, %v639_v44   ;;  %v4456_v31 = vsub.f32 %v1155_v52, %v4450_v14  ;;  %v751_v42 = vpop.permute.xlu0 %750  ;;  %1359 = vmatmul.f32.gmra.mxu0 %v1358_v55  ;;  %v4476_v55 = vpop.f32.mrf.mxu2 }
 0x150   :  { %v948_v18 = vadd.f32 %v751_v42, %v564_v47  ;;  %1968 = vmatmul.f32.gmra.mxu3 %v4450_v14  ;;  %v503_v34 = vpop.permute.xlu1 %502  ;;  %v640_v42 = vperm.slane %v132_v35, 0  ;;  %6160 = vst [vmem:[#allocation52_spill] sm:$0xff] %v4476_v55 }
 0x151   :  { %6157 = vst [vmem:[#allocation49_spill] sm:$0xff] %v4456_v31  ;;  %v6001_v33 = vand.u32 4294901760, %v4456_v31  ;;  %v4468_v38 = vpop.permute.xlu2 %894  ;;  %v4486_v24 = vpop.f32.mrf.mxu3 }
 0x152   :  { %v1056_v52 = vsel %vm997_vm0, %v948_v18, 0  ;;  %v598_v18 = vmul.f32 %v503_v34, %v214_v1  ;;  %6161 = vst [vmem:[#allocation53_spill] sm:$0xff] %v4486_v24  ;;  %v4497_v49 = vpop.f32.mrf.mxu1 }
 0x153   :  { %v4466_v44 = vand.u32 4294901760, %v1056_v52  ;;  %v1629_v0 = vsub.f32 %v4456_v31, %v6001_v33  ;;  %v565_v33 = vmul.f32 %v4361_v60, %v181_v58  ;;  %6163 = vst [vmem:[#allocation55_spill] sm:$0xff] %v4497_v49  ;;  %v215_v60 = vld [vmem:[%s5878_s2 + $0x1b0] sm:$0xff] }
 0x155   :  { %6159 = vst [vmem:[#allocation51_spill] sm:$0xff] %v4466_v44  ;;  %v4482_v59 = vsub.f32 %v1056_v52, %v4466_v44  ;;  %414 = vperm.xlu0 %3534, %v256_v20   ;;  %1836 = vmatmul.f32.gmra.mxu1 %v4466_v44  ;;  %v1630_v47 = vand.u32 4294901760, %v1629_v0  ;;  %v4492_v20 = vpop.f32.mrf.mxu0 }
 0x156   :  { %798 = vperm.xlu1 %3535, %v640_v42  }
 0x157   :  { %v887_v14 = vpop.permute.xlu0 %886  ;;  %v6006_v35 = vand.u32 4294901760, %v4482_v59  ;;  %1631 = vmatmul.f32.gmra.mxu2 %v1630_v47 }
 0x158   :  { %v982_v31 = vadd.f32 %v887_v14, %v598_v18  ;;  %v755_v55 = vpop.permute.xlu1 %754 }
 0x159   :  { %v1365_v52 = vsub.f32 %v4482_v59, %v6006_v35  ;;  %v949_v34 = vadd.f32 %v755_v55, %v565_v33  ;;  %v4506_v58 = vpop.permute.xlu2 %382  ;;  %v4514_v33 = vpop.f32.mrf.mxu2 }
 0x15a   :  { %v1158_v0 = vsel %vm997_vm0, %v982_v31, 0  ;;  %v182_v31 = vld [vmem:[%s5878_s2 + $0xa8] sm:$0xff]  ;;  %6166 = vst [vmem:[#allocation58_spill] sm:$0xff] %v4514_v33 }
 0x15b   :  { %v4495_v1 = vand.u32 4294901760, %v1158_v0  ;;  %v1366_v42 = vand.u32 4294901760, %v1365_v52  ;;  %v1059_v24 = vsel %vm997_vm0, %v949_v34, 0  ;;  %v599_v34 = vmul.f32 %v4395_v28, %v215_v60 }
 0x15c   :  { %v4508_v47 = vand.u32 4294901760, %v1059_v24 }
 0x15d   :  { %6162 = vst [vmem:[#allocation54_spill] sm:$0xff] %v4495_v1  ;;  %v4504_v14 = vsub.f32 %v1158_v0, %v4495_v1  ;;  %1367 = vmatmul.f32.gmra.mxu0 %v1366_v42  ;;  %1972 = vmatmul.f32.gmra.mxu3 %v4495_v1  ;;  %v4521_v0 = vpop.f32.mrf.mxu3  ;;  %v4532_v62 = vpop.f32.mrf.mxu0 }
 0x15e   :  { %6165 = vst [vmem:[#allocation57_spill] sm:$0xff] %v4508_v47  ;;  %v4517_v55 = vsub.f32 %v1059_v24, %v4508_v47  ;;  %1840 = vmatmul.f32.gmra.mxu1 %v4508_v47 }
 0x15f   :  { %6164 = vst [vmem:[#allocation56_spill] sm:$0xff] %v4504_v14  ;;  %v375_v18 = vpop.permute.xlu0 %374  ;;  %v6013_v52 = vand.u32 4294901760, %v4504_v14 }
 0x160   :  { %6167 = vst [vmem:[#allocation59_spill] sm:$0xff] %v4521_v0  ;;  %v566_v42 = vmul.f32 %v375_v18, %v182_v31  ;;  %v891_v35 = vpop.permute.xlu1 %890  ;;  %v6014_v33 = vand.u32 4294901760, %v4517_v55  ;;  %v4534_v0 = vpop.f32.mrf.mxu1 }
 0x161   :  { %v1637_v1 = vsub.f32 %v4504_v14, %v6013_v52  ;;  %v983_v49 = vadd.f32 %v891_v35, %v599_v34  ;;  %6168 = vst [vmem:[#allocation60_spill] sm:$0xff] %v4532_v62 }
 0x162   :  { %v950_v24 = vadd.f32 %v4431_v29, %v566_v42  ;;  %v1373_v47 = vsub.f32 %v4517_v55, %v6014_v33  ;;  %6169 = vst [vmem:[#allocation61_spill] sm:$0xff] %v4534_v0  ;;  %v216_v29 = vld [vmem:[%s5878_s2 + $0x1b8] sm:$0xff]  ;;  %v4550_v42 = vpop.permute.xlu2 %518 }
 0x163   :  { %v1638_v44 = vand.u32 4294901760, %v1637_v1  ;;  %v1161_v60 = vsel %vm997_vm0, %v983_v49, 0  ;;  %v4545_v1 = vpop.f32.mrf.mxu2 }
 0x164   :  { %v1062_v28 = vsel %vm997_vm0, %v950_v24, 0  ;;  %v4540_v18 = vand.u32 4294901760, %v1161_v60  ;;  %v1374_v35 = vand.u32 4294901760, %v1373_v47  ;;  %6172 = vst [vmem:[#allocation64_spill] sm:$0xff] %v4545_v1 }
 0x165   :  { %v4538_v31 = vand.u32 4294901760, %v1062_v28  ;;  %1639 = vmatmul.f32.gmra.mxu2 %v1638_v44  ;;  %v4559_v1 = vpop.f32.mrf.mxu3 }
 0x166   :  { %6171 = vst [vmem:[#allocation63_spill] sm:$0xff] %v4540_v18  ;;  %v4553_v24 = vsub.f32 %v1161_v60, %v4540_v18  ;;  %1375 = vmatmul.f32.gmra.mxu0 %v1374_v35  ;;  %1976 = vmatmul.f32.gmra.mxu3 %v4540_v18  ;;  %v183_v60 = vld [vmem:[%s5878_s2 + $0xb0] sm:$0xff] }
 0x167   :  { %6170 = vst [vmem:[#allocation62_spill] sm:$0xff] %v4538_v31  ;;  %v4548_v34 = vsub.f32 %v1062_v28, %v4538_v31  ;;  %v511_v49 = vpop.permute.xlu0 %510  ;;  %1844 = vmatmul.f32.gmra.mxu1 %v4538_v31 }
 0x168   :  { %6174 = vst [vmem:[#allocation66_spill] sm:$0xff] %v4553_v24  ;;  %v600_v44 = vmul.f32 %v511_v49, %v216_v29  ;;  %v379_v52 = vpop.permute.xlu1 %378  ;;  %v6022_v33 = vand.u32 4294901760, %v4553_v24  ;;  %v4571_v49 = vpop.f32.mrf.mxu0 }
 0x169   :  { %6173 = vst [vmem:[#allocation65_spill] sm:$0xff] %v4548_v34  ;;  %v6021_v47 = vand.u32 4294901760, %v4548_v34  ;;  %v4573_v18 = vpop.f32.mrf.mxu1  ;;  %v567_v31 = vmul.f32 %v379_v52, %v183_v60  ;;  %v184_v60 = vld [vmem:[%s5878_s2 + $0xb8] sm:$0xff] }
 0x16a   :  { %6175 = vst [vmem:[#allocation67_spill] sm:$0xff] %v4559_v1  ;;  %v984_v28 = vadd.f32 %v4468_v38, %v600_v44  ;;  %v1645_v29 = vsub.f32 %v4553_v24, %v6022_v33  ;;  %v771_v24 = vpop.permute.xlu2 %770 }
 0x16b   :  { %v1381_v35 = vsub.f32 %v4548_v34, %v6021_v47  ;;  %6176 = vst [vmem:[#allocation68_spill] sm:$0xff] %v4571_v49  ;;  %v4581_v47 = vpop.f32.mrf.mxu2 }
 0x16c   :  { %6177 = vst [vmem:[#allocation69_spill] sm:$0xff] %v4573_v18  ;;  %v1164_v1 = vsel %vm997_vm0, %v984_v28, 0  ;;  %v1646_v44 = vand.u32 4294901760, %v1645_v29 }
 0x16d   :  { %v4576_v14 = vand.u32 4294901760, %v1164_v1  ;;  %v1382_v38 = vand.u32 4294901760, %v1381_v35  ;;  %6180 = vst [vmem:[#allocation72_spill] sm:$0xff] %v4581_v47  ;;  %v4585_v49 = vpop.f32.mrf.mxu3 }
 0x16e   :  { %1647 = vmatmul.f32.gmra.mxu2 %v1646_v44  ;;  %6181 = vst [vmem:[#allocation73_spill] sm:$0xff] %v4585_v49 }
 0x16f   :  { %6178 = vst [vmem:[#allocation70_spill] sm:$0xff] %v4576_v14  ;;  %v4579_v0 = vsub.f32 %v1164_v1, %v4576_v14  ;;  %v763_v62 = vpop.permute.xlu0 %762  ;;  %1383 = vmatmul.f32.gmra.mxu0 %v1382_v38  ;;  %1980 = vmatmul.f32.gmra.mxu3 %v4576_v14  ;;  %v217_v1 = vld [vmem:[%s5878_s2 + $0x1c0] sm:$0xff] }
 0x170   :  { %v951_v33 = vadd.f32 %v763_v62, %v567_v31  ;;  %v515_v18 = vpop.permute.xlu1 %514  ;;  %v4596_v31 = vpop.f32.mrf.mxu0 }
 0x171   :  { %6179 = vst [vmem:[#allocation71_spill] sm:$0xff] %v4579_v0  ;;  %v6027_v28 = vand.u32 4294901760, %v4579_v0  ;;  %v4605_v38 = vpop.f32.mrf.mxu1  ;;  %v601_v44 = vmul.f32 %v515_v18, %v217_v1 }
 0x172   :  { %v1065_v35 = vsel %vm997_vm0, %v951_v33, 0  ;;  %6183 = vst [vmem:[#allocation75_spill] sm:$0xff] %v4596_v31  ;;  %v907_v18 = vpop.permute.xlu2 %906 }
 0x173   :  { %v4588_v52 = vand.u32 4294901760, %v1065_v35  ;;  %v1653_v62 = vsub.f32 %v4579_v0, %v6027_v28  ;;  %6185 = vst [vmem:[#allocation77_spill] sm:$0xff] %v4605_v38  ;;  %v4608_v28 = vpop.f32.mrf.mxu2  ;;  %v568_v0 = vmul.f32 %v4506_v58, %v184_v60 }
 0x174   :  { %6186 = vst [vmem:[#allocation78_spill] sm:$0xff] %v4608_v28 }
 0x175   :  { %6182 = vst [vmem:[#allocation74_spill] sm:$0xff] %v4588_v52  ;;  %v4602_v29 = vsub.f32 %v1065_v35, %v4588_v52  ;;  %1848 = vmatmul.f32.gmra.mxu1 %v4588_v52  ;;  %v1654_v33 = vand.u32 4294901760, %v1653_v62  ;;  %v4614_v34 = vpop.f32.mrf.mxu3 }
 0x176   :  { %6187 = vst [vmem:[#allocation79_spill] sm:$0xff] %v4614_v34 }
 0x177   :  { %6184 = vst [vmem:[#allocation76_spill] sm:$0xff] %v4602_v29  ;;  %v899_v14 = vpop.permute.xlu0 %898  ;;  %1655 = vmatmul.f32.gmra.mxu2 %v1654_v33  ;;  %v6034_v49 = vand.u32 4294901760, %v4602_v29 }
 0x178   :  { %v985_v47 = vadd.f32 %v899_v14, %v601_v44  ;;  %v767_v31 = vpop.permute.xlu1 %766  ;;  %v218_v14 = vld [vmem:[%s5878_s2 + $0x1c8] sm:$0xff] }
 0x179   :  { %v1389_v35 = vsub.f32 %v4602_v29, %v6034_v49  ;;  %v952_v38 = vadd.f32 %v767_v31, %v568_v0  ;;  %v185_v0 = vld [vmem:[%s5878_s2 + $0xc0] sm:$0xff]  ;;  %v4634_v31 = vpop.f32.mrf.mxu1 }
 0x17a   :  { %v1167_v62 = vsel %vm997_vm0, %v985_v47, 0  ;;  %v4632_v47 = vpop.f32.mrf.mxu0  ;;  %6192 = vst [vmem:[#allocation84_spill] sm:$0xff] %v4634_v31 }
 0x17b   :  { %v4617_v1 = vand.u32 4294901760, %v1167_v62  ;;  %v1390_v33 = vand.u32 4294901760, %v1389_v35  ;;  %v1068_v52 = vsel %vm997_vm0, %v952_v38, 0  ;;  %6191 = vst [vmem:[#allocation83_spill] sm:$0xff] %v4632_v47 }
 0x17c   :  { %v4626_v60 = vand.u32 4294901760, %v1068_v52 }
 0x17d   :  { %6188 = vst [vmem:[#allocation80_spill] sm:$0xff] %v4617_v1  ;;  %v4624_v58 = vsub.f32 %v1167_v62, %v4617_v1  ;;  %1391 = vmatmul.f32.gmra.mxu0 %v1390_v33  ;;  %1984 = vmatmul.f32.gmra.mxu3 %v4617_v1  ;;  %v4641_v62 = vpop.f32.mrf.mxu2  ;;  %v602_v33 = vmul.f32 %v4550_v42, %v218_v14  ;;  %v4651_v29 = vpop.f32.mrf.mxu3 }
 0x17e   :  { %6190 = vst [vmem:[#allocation82_spill] sm:$0xff] %v4626_v60  ;;  %v4637_v38 = vsub.f32 %v1068_v52, %v4626_v60  ;;  %1852 = vmatmul.f32.gmra.mxu1 %v4626_v60  ;;  %v395_v14 = vpop.permute.xlu2 %394 }
 0x17f   :  { %6189 = vst [vmem:[#allocation81_spill] sm:$0xff] %v4624_v58  ;;  %v387_v44 = vpop.permute.xlu0 %386  ;;  %v6041_v35 = vand.u32 4294901760, %v4624_v58 }
 0x180   :  { %6193 = vst [vmem:[#allocation85_spill] sm:$0xff] %v4637_v38  ;;  %v569_v49 = vmul.f32 %v387_v44, %v185_v0  ;;  %v903_v1 = vpop.permute.xlu1 %902  ;;  %v6042_v28 = vand.u32 4294901760, %v4637_v38 }
 0x181   :  { %6194 = vst [vmem:[#allocation86_spill] sm:$0xff] %v4641_v62  ;;  %v1661_v34 = vsub.f32 %v4624_v58, %v6041_v35  ;;  %v986_v52 = vadd.f32 %v903_v1, %v602_v33  ;;  %v4664_v1 = vpop.f32.mrf.mxu1 }
 0x182   :  { %v953_v31 = vadd.f32 %v771_v24, %v569_v49  ;;  %v1397_v60 = vsub.f32 %v4637_v38, %v6042_v28  ;;  %6195 = vst [vmem:[#allocation87_spill] sm:$0xff] %v4651_v29  ;;  %v4662_v49 = vpop.f32.mrf.mxu0 }
 0x183   :  { %v1662_v47 = vand.u32 4294901760, %v1661_v34  ;;  %v1170_v42 = vsel %vm997_vm0, %v986_v52, 0  ;;  %v219_v34 = vld [vmem:[%s5878_s2 + $0x1d0] sm:$0xff]  ;;  %6198 = vst [vmem:[#allocation90_spill] sm:$0xff] %v4662_v49 }
 0x184   :  { %v1071_v62 = vsel %vm997_vm0, %v953_v31, 0  ;;  %v4657_v44 = vand.u32 4294901760, %v1170_v42  ;;  %v1398_v24 = vand.u32 4294901760, %v1397_v60  ;;  %6199 = vst [vmem:[#allocation91_spill] sm:$0xff] %v4664_v1 }
 0x185   :  { %v4655_v0 = vand.u32 4294901760, %v1071_v62  ;;  %1663 = vmatmul.f32.gmra.mxu2 %v1662_v47  ;;  %v4676_v29 = vpop.f32.mrf.mxu2 }
 0x186   :  { %6197 = vst [vmem:[#allocation89_spill] sm:$0xff] %v4657_v44  ;;  %v4670_v31 = vsub.f32 %v1170_v42, %v4657_v44  ;;  %1399 = vmatmul.f32.gmra.mxu0 %v1398_v24  ;;  %1988 = vmatmul.f32.gmra.mxu3 %v4657_v44  ;;  %v4687_v24 = vpop.f32.mrf.mxu3 }
 0x187   :  { %6196 = vst [vmem:[#allocation88_spill] sm:$0xff] %v4655_v0  ;;  %v4667_v33 = vsub.f32 %v1071_v62, %v4655_v0  ;;  %v523_v52 = vpop.permute.xlu0 %522  ;;  %1856 = vmatmul.f32.gmra.mxu1 %v4655_v0  ;;  %v186_v62 = vld [vmem:[%s5878_s2 + $0xc8] sm:$0xff]  ;;  %v531_v0 = vpop.permute.xlu2 %530 }
 0x188   :  { %6201 = vst [vmem:[#allocation93_spill] sm:$0xff] %v4670_v31  ;;  %v603_v47 = vmul.f32 %v523_v52, %v219_v34  ;;  %v391_v35 = vpop.permute.xlu1 %390  ;;  %v6052_v28 = vand.u32 4294901760, %v4670_v31 }
 0x189   :  { %6200 = vst [vmem:[#allocation92_spill] sm:$0xff] %v4667_v33  ;;  %v6049_v60 = vand.u32 4294901760, %v4667_v33  ;;  %v570_v1 = vmul.f32 %v391_v35, %v186_v62  ;;  %v220_v62 = vld [vmem:[%s5878_s2 + $0x1d8] sm:$0xff] }
 0x18a   :  { %6202 = vst [vmem:[#allocation94_spill] sm:$0xff] %v4676_v29  ;;  %v987_v58 = vadd.f32 %v907_v18, %v603_v47  ;;  %v1669_v34 = vsub.f32 %v4670_v31, %v6052_v28  ;;  %v4692_v47 = vpop.f32.mrf.mxu0 }
 0x18b   :  { %v1405_v42 = vsub.f32 %v4667_v33, %v6049_v60  ;;  %6203 = vst [vmem:[#allocation95_spill] sm:$0xff] %v4687_v24  ;;  %v4697_v33 = vpop.f32.mrf.mxu1 }
 0x18c   :  { %v1173_v52 = vsel %vm997_vm0, %v987_v58, 0  ;;  %v1670_v18 = vand.u32 4294901760, %v1669_v34  ;;  %6205 = vst [vmem:[#allocation97_spill] sm:$0xff] %v4692_v47 }
 0x18d   :  { %v4690_v44 = vand.u32 4294901760, %v1173_v52  ;;  %v1406_v29 = vand.u32 4294901760, %v1405_v42  ;;  %6207 = vst [vmem:[#allocation99_spill] sm:$0xff] %v4697_v33  ;;  %v4701_v42 = vpop.f32.mrf.mxu2 }
 0x18e   :  { %1671 = vmatmul.f32.gmra.mxu2 %v1670_v18  ;;  %6208 = vst [vmem:[#allocation100_spill] sm:$0xff] %v4701_v42 }
 0x18f   :  { %6204 = vst [vmem:[#allocation96_spill] sm:$0xff] %v4690_v44  ;;  %v4695_v49 = vsub.f32 %v1173_v52, %v4690_v44  ;;  %v775_v60 = vpop.permute.xlu0 %774  ;;  %1407 = vmatmul.f32.gmra.mxu0 %v1406_v29  ;;  %1992 = vmatmul.f32.gmra.mxu3 %v4690_v44  ;;  %v783_v33 = vpop.permute.xlu2 %782 }
 0x190   :  { %v954_v28 = vadd.f32 %v775_v60, %v570_v1  ;;  %v527_v58 = vpop.permute.xlu1 %526  ;;  %v4712_v1 = vpop.f32.mrf.mxu3  ;;  %v187_v60 = vld [vmem:[%s5878_s2 + $0xd0] sm:$0xff] }
 0x191   :  { %6206 = vst [vmem:[#allocation98_spill] sm:$0xff] %v4695_v49  ;;  %v6057_v24 = vand.u32 4294901760, %v4695_v49  ;;  %v604_v18 = vmul.f32 %v527_v58, %v220_v62 }
 0x192   :  { %v1074_v34 = vsel %vm997_vm0, %v954_v28, 0  ;;  %6210 = vst [vmem:[#allocation102_spill] sm:$0xff] %v4712_v1  ;;  %v4722_v31 = vpop.f32.mrf.mxu0  ;;  %v571_v1 = vmul.f32 %v395_v14, %v187_v60  ;;  %v221_v14 = vld [vmem:[%s5878_s2 + $0x1e0] sm:$0xff] }
 0x193   :  { %v4704_v35 = vand.u32 4294901760, %v1074_v34  ;;  %v1677_v29 = vsub.f32 %v4695_v49, %v6057_v24  ;;  %6212 = vst [vmem:[#allocation104_spill] sm:$0xff] %v4722_v31  ;;  %v4724_v24 = vpop.f32.mrf.mxu1 }
 0x194   :  { %6213 = vst [vmem:[#allocation105_spill] sm:$0xff] %v4724_v24 }
 0x195   :  { %6209 = vst [vmem:[#allocation101_spill] sm:$0xff] %v4704_v35  ;;  %v4718_v52 = vsub.f32 %v1074_v34, %v4704_v35  ;;  %1860 = vmatmul.f32.gmra.mxu1 %v4704_v35  ;;  %v1678_v28 = vand.u32 4294901760, %v1677_v29  ;;  %v4729_v38 = vpop.f32.mrf.mxu2 }
 0x196   :  { %6214 = vst [vmem:[#allocation106_spill] sm:$0xff] %v4729_v38 }
 0x197   :  { %6211 = vst [vmem:[#allocation103_spill] sm:$0xff] %v4718_v52  ;;  %v911_v44 = vpop.permute.xlu0 %910  ;;  %1679 = vmatmul.f32.gmra.mxu2 %v1678_v28  ;;  %v6062_v42 = vand.u32 4294901760, %v4718_v52  ;;  %v919_v35 = vpop.permute.xlu2 %918 }
 0x198   :  { %v988_v49 = vadd.f32 %v911_v44, %v604_v18  ;;  %v779_v47 = vpop.permute.xlu1 %778 }
 0x199   :  { %v1413_v34 = vsub.f32 %v4718_v52, %v6062_v42  ;;  %v955_v62 = vadd.f32 %v779_v47, %v571_v1  ;;  %v4747_v47 = vpop.f32.mrf.mxu3 }
 0x19a   :  { %v1176_v58 = vsel %vm997_vm0, %v988_v49, 0  ;;  %v188_v49 = vld [vmem:[%s5878_s2 + $0xd8] sm:$0xff]  ;;  %6218 = vst [vmem:[#allocation110_spill] sm:$0xff] %v4747_v47 }
 0x19b   :  { %v4732_v29 = vand.u32 4294901760, %v1176_v58  ;;  %v1414_v28 = vand.u32 4294901760, %v1413_v34  ;;  %v1077_v31 = vsel %vm997_vm0, %v955_v62, 0  ;;  %v4756_v62 = vpop.f32.mrf.mxu1 }
 0x19c   :  { %v4741_v60 = vand.u32 4294901760, %v1077_v31  ;;  %6220 = vst [vmem:[#allocation112_spill] sm:$0xff] %v4756_v62 }
 0x19d   :  { %6215 = vst [vmem:[#allocation107_spill] sm:$0xff] %v4732_v29  ;;  %v4739_v44 = vsub.f32 %v1176_v58, %v4732_v29  ;;  %1415 = vmatmul.f32.gmra.mxu0 %v1414_v28  ;;  %1996 = vmatmul.f32.gmra.mxu3 %v4732_v29  ;;  %v4754_v58 = vpop.f32.mrf.mxu0  ;;  %v605_v28 = vmul.f32 %v531_v0, %v221_v14 }
 0x19e   :  { %6217 = vst [vmem:[#allocation109_spill] sm:$0xff] %v4741_v60  ;;  %v4750_v1 = vsub.f32 %v1077_v31, %v4741_v60  ;;  %1864 = vmatmul.f32.gmra.mxu1 %v4741_v60 }
 0x19f   :  { %6216 = vst [vmem:[#allocation108_spill] sm:$0xff] %v4739_v44  ;;  %v399_v18 = vpop.permute.xlu0 %398  ;;  %v6071_v34 = vand.u32 4294901760, %v4739_v44 }
 0x1a0   :  { %6219 = vst [vmem:[#allocation111_spill] sm:$0xff] %v4754_v58  ;;  %v572_v42 = vmul.f32 %v399_v18, %v188_v49  ;;  %v915_v29 = vpop.permute.xlu1 %914  ;;  %v6072_v47 = vand.u32 4294901760, %v4750_v1  ;;  %v4765_v58 = vpop.f32.mrf.mxu2 }
 0x1a1   :  { %v1685_v38 = vsub.f32 %v4739_v44, %v6071_v34  ;;  %v989_v24 = vadd.f32 %v915_v29, %v605_v28  ;;  %6221 = vst [vmem:[#allocation113_spill] sm:$0xff] %v4765_v58  ;;  %v407_v58 = vpop.permute.xlu2 %406 }
 0x1a2   :  { %v956_v31 = vadd.f32 %v783_v33, %v572_v42  ;;  %v1421_v60 = vsub.f32 %v4750_v1, %v6072_v47  ;;  %v222_v33 = vld [vmem:[%s5878_s2 + $0x1e8] sm:$0xff]  ;;  %v4776_v42 = vpop.f32.mrf.mxu3 }
 0x1a3   :  { %v1686_v52 = vand.u32 4294901760, %v1685_v38  ;;  %v1179_v14 = vsel %vm997_vm0, %v989_v24, 0  ;;  %6224 = vst [vmem:[#allocation116_spill] sm:$0xff] %v4776_v42  ;;  %v4790_v42 = vpop.f32.mrf.mxu1 }
 0x1a4   :  { %v1080_v0 = vsel %vm997_vm0, %v956_v31, 0  ;;  %v4771_v18 = vand.u32 4294901760, %v1179_v14  ;;  %v1422_v38 = vand.u32 4294901760, %v1421_v60  ;;  %6228 = vst [vmem:[#allocation120_spill] sm:$0xff] %v4790_v42 }
 0x1a5   :  { %v4769_v49 = vand.u32 4294901760, %v1080_v0  ;;  %1687 = vmatmul.f32.gmra.mxu2 %v1686_v52  ;;  %v4785_v24 = vpop.f32.mrf.mxu0 }
 0x1a6   :  { %6223 = vst [vmem:[#allocation115_spill] sm:$0xff] %v4771_v18  ;;  %v4782_v28 = vsub.f32 %v1179_v14, %v4771_v18  ;;  %1423 = vmatmul.f32.gmra.mxu0 %v1422_v38  ;;  %2000 = vmatmul.f32.gmra.mxu3 %v4771_v18  ;;  %v189_v14 = vld [vmem:[%s5878_s2 + $0xe0] sm:$0xff] }
 0x1a7   :  { %6222 = vst [vmem:[#allocation114_spill] sm:$0xff] %v4769_v49  ;;  %v4779_v29 = vsub.f32 %v1080_v0, %v4769_v49  ;;  %v535_v31 = vpop.permute.xlu0 %534  ;;  %1868 = vmatmul.f32.gmra.mxu1 %v4769_v49 }
 0x1a8   :  { %6226 = vst [vmem:[#allocation118_spill] sm:$0xff] %v4782_v28  ;;  %v606_v52 = vmul.f32 %v535_v31, %v222_v33  ;;  %v403_v34 = vpop.permute.xlu1 %402  ;;  %v6080_v47 = vand.u32 4294901760, %v4782_v28  ;;  %v4801_v31 = vpop.f32.mrf.mxu2 }
 0x1a9   :  { %6225 = vst [vmem:[#allocation117_spill] sm:$0xff] %v4779_v29  ;;  %v6077_v60 = vand.u32 4294901760, %v4779_v29  ;;  %v573_v62 = vmul.f32 %v403_v34, %v189_v14  ;;  %v223_v34 = vld [vmem:[%s5878_s2 + $0x1f0] sm:$0xff] }
 0x1aa   :  { %6227 = vst [vmem:[#allocation119_spill] sm:$0xff] %v4785_v24  ;;  %v990_v0 = vadd.f32 %v919_v35, %v606_v52  ;;  %v1693_v33 = vsub.f32 %v4782_v28, %v6080_v47  ;;  %v4806_v42 = vpop.f32.mrf.mxu3 }
 0x1ab   :  { %v1429_v38 = vsub.f32 %v4779_v29, %v6077_v60  ;;  %6229 = vst [vmem:[#allocation121_spill] sm:$0xff] %v4801_v31  ;;  %v4815_v28 = vpop.f32.mrf.mxu1 }
 0x1ac   :  { %v1182_v18 = vsel %vm997_vm0, %v990_v0, 0  ;;  %v1694_v52 = vand.u32 4294901760, %v1693_v33  ;;  %6231 = vst [vmem:[#allocation123_spill] sm:$0xff] %v4806_v42 }
 0x1ad   :  { %v4804_v44 = vand.u32 4294901760, %v1182_v18  ;;  %v1430_v35 = vand.u32 4294901760, %v1429_v38  ;;  %v4813_v31 = vpop.f32.mrf.mxu0  ;;  %6234 = vst [vmem:[#allocation126_spill] sm:$0xff] %v4815_v28 }
 0x1ae   :  { %1695 = vmatmul.f32.gmra.mxu2 %v1694_v52  ;;  %6233 = vst [vmem:[#allocation125_spill] sm:$0xff] %v4813_v31  ;;  %v543_v52 = vpop.permute.xlu2 %542 }
 0x1af   :  { %6230 = vst [vmem:[#allocation122_spill] sm:$0xff] %v4804_v44  ;;  %v4809_v24 = vsub.f32 %v1182_v18, %v4804_v44  ;;  %v787_v60 = vpop.permute.xlu0 %786  ;;  %1431 = vmatmul.f32.gmra.mxu0 %v1430_v35  ;;  %2004 = vmatmul.f32.gmra.mxu3 %v4804_v44 }
 0x1b0   :  { %v957_v49 = vadd.f32 %v787_v60, %v573_v62  ;;  %v539_v47 = vpop.permute.xlu1 %538  ;;  %v4826_v18 = vpop.f32.mrf.mxu2  ;;  %v190_v60 = vld [vmem:[%s5878_s2 + $0xe8] sm:$0xff] }
 0x1b1   :  { %6232 = vst [vmem:[#allocation124_spill] sm:$0xff] %v4809_v24  ;;  %v6085_v0 = vand.u32 4294901760, %v4809_v24  ;;  %v607_v35 = vmul.f32 %v539_v47, %v223_v34 }
 0x1b2   :  { %v1083_v38 = vsel %vm997_vm0, %v957_v49, 0  ;;  %6236 = vst [vmem:[#allocation128_spill] sm:$0xff] %v4826_v18  ;;  %v4836_v28 = vpop.f32.mrf.mxu3 }
 0x1b3   :  { %v4818_v33 = vand.u32 4294901760, %v1083_v38  ;;  %v1701_v62 = vsub.f32 %v4809_v24, %v6085_v0  ;;  %6238 = vst [vmem:[#allocation130_spill] sm:$0xff] %v4836_v28  ;;  %v574_v0 = vmul.f32 %v407_v58, %v190_v60  ;;  %v4843_v29 = vpop.f32.mrf.mxu1  ;;  %v224_v58 = vld [vmem:[%s5878_s2 + $0x1f8] sm:$0xff] }
 0x1b4   :  { %6240 = vst [vmem:[#allocation132_spill] sm:$0xff] %v4843_v29 }
 0x1b5   :  { %6235 = vst [vmem:[#allocation127_spill] sm:$0xff] %v4818_v33  ;;  %v4832_v14 = vsub.f32 %v1083_v38, %v4818_v33  ;;  %1872 = vmatmul.f32.gmra.mxu1 %v4818_v33  ;;  %v1702_v49 = vand.u32 4294901760, %v1701_v62  ;;  %v4841_v38 = vpop.f32.mrf.mxu0 }
 0x1b6   :  { %6239 = vst [vmem:[#allocation131_spill] sm:$0xff] %v4841_v38 }
 0x1b7   :  { %6237 = vst [vmem:[#allocation129_spill] sm:$0xff] %v4832_v14  ;;  %v923_v42 = vpop.permute.xlu0 %922  ;;  %1703 = vmatmul.f32.gmra.mxu2 %v1702_v49  ;;  %v6092_v44 = vand.u32 4294901760, %v4832_v14 }
 0x1b8   :  { %v991_v18 = vadd.f32 %v923_v42, %v607_v35  ;;  %v791_v24 = vpop.permute.xlu1 %790 }
 0x1b9   :  { %v1437_v31 = vsub.f32 %v4832_v14, %v6092_v44  ;;  %v958_v34 = vadd.f32 %v791_v24, %v574_v0  ;;  %v191_v24 = vld [vmem:[%s5878_s2 + $0xf0] sm:$0xff]  ;;  %v4861_v0 = vpop.f32.mrf.mxu2  ;;  %v795_v44 = vpop.permute.xlu2 %794 }
 0x1ba   :  { %v1185_v47 = vsel %vm997_vm0, %v991_v18, 0  ;;  %6244 = vst [vmem:[#allocation136_spill] sm:$0xff] %v4861_v0 }
 0x1bb   :  { %v4846_v62 = vand.u32 4294901760, %v1185_v47  ;;  %v1438_v49 = vand.u32 4294901760, %v1437_v31  ;;  %v1086_v33 = vsel %vm997_vm0, %v958_v34, 0  ;;  %v608_v34 = vmul.f32 %v543_v52, %v224_v58 }
 0x1bc   :  { %v4855_v60 = vand.u32 4294901760, %v1086_v33 }
 0x1bd   :  { %6241 = vst [vmem:[#allocation133_spill] sm:$0xff] %v4846_v62  ;;  %v4853_v42 = vsub.f32 %v1185_v47, %v4846_v62  ;;  %1439 = vmatmul.f32.gmra.mxu0 %v1438_v49  ;;  %2008 = vmatmul.f32.gmra.mxu3 %v4846_v62  ;;  %v4868_v47 = vpop.f32.mrf.mxu3  ;;  %v4874_v29 = vpop.f32.mrf.mxu0 }
 0x1be   :  { %6243 = vst [vmem:[#allocation135_spill] sm:$0xff] %v4855_v60  ;;  %v4864_v31 = vsub.f32 %v1086_v33, %v4855_v60  ;;  %1876 = vmatmul.f32.gmra.mxu1 %v4855_v60 }
 0x1bf   :  { %6242 = vst [vmem:[#allocation134_spill] sm:$0xff] %v4853_v42  ;;  %v411_v18 = vpop.permute.xlu0 %410  ;;  %v6099_v35 = vand.u32 4294901760, %v4853_v42 }
 0x1c0   :  { %6245 = vst [vmem:[#allocation137_spill] sm:$0xff] %v4868_v47  ;;  %v575_v49 = vmul.f32 %v411_v18, %v191_v24  ;;  %v927_v28 = vpop.permute.xlu1 %926  ;;  %v6100_v0 = vand.u32 4294901760, %v4864_v31  ;;  %v4879_v47 = vpop.f32.mrf.mxu1 }
 0x1c1   :  { %v1709_v62 = vsub.f32 %v4853_v42, %v6099_v35  ;;  %v992_v38 = vadd.f32 %v927_v28, %v608_v34  ;;  %6246 = vst [vmem:[#allocation138_spill] sm:$0xff] %v4879_v47 }
 0x1c2   :  { %v959_v33 = vadd.f32 %v795_v44, %v575_v49  ;;  %v1445_v60 = vsub.f32 %v4864_v31, %v6100_v0  ;;  %v192_v44 = vld [vmem:[%s5878_s2 + $0xf8] sm:$0xff] }
 0x1c3   :  { %v1710_v14 = vand.u32 4294901760, %v1709_v62  ;;  %v1188_v58 = vsel %vm997_vm0, %v992_v38, 0  ;;  %v4890_v62 = vpop.f32.mrf.mxu2 }
 0x1c4   :  { %v1089_v52 = vsel %vm997_vm0, %v959_v33, 0  ;;  %v4885_v18 = vand.u32 4294901760, %v1188_v58  ;;  %v1446_v28 = vand.u32 4294901760, %v1445_v60  ;;  %6248 = vst [vmem:[#allocation140_spill] sm:$0xff] %v4890_v62 }
 0x1c5   :  { %v4883_v24 = vand.u32 4294901760, %v1089_v52  ;;  %1711 = vmatmul.f32.gmra.mxu2 %v1710_v14  ;;  %v4900_v14 = vpop.f32.mrf.mxu3 }
 0x1c6   :  { %6247 = vst [vmem:[#allocation139_spill] sm:$0xff] %v4885_v18  ;;  %v4896_v49 = vsub.f32 %v1188_v58, %v4885_v18  ;;  %1447 = vmatmul.f32.gmra.mxu0 %v1446_v28  ;;  %2012 = vmatmul.f32.gmra.mxu3 %v4885_v18  ;;  %v4910_v28 = vpop.f32.mrf.mxu0 }
 0x1c7   :  { %v4893_v34 = vsub.f32 %v1089_v52, %v4883_v24  ;;  %v415_v33 = vpop.permute.xlu0 %414  ;;  %1880 = vmatmul.f32.gmra.mxu1 %v4883_v24  ;;  %6250 = vst [vmem:[#allocation142_spill] sm:$0xff] %v4900_v14 }
 0x1c8   :  { %6249 = vst [vmem:[#allocation141_spill] sm:$0xff] %v4896_v49  ;;  %v576_v38 = vmul.f32 %v415_v33, %v192_v44  ;;  %v799_v35 = vpop.permute.xlu1 %798  ;;  %v6105_v0 = vand.u32 4294901760, %v4896_v49  ;;  %v4912_v44 = vpop.f32.mrf.mxu1 }
 0x1c9   :  { %v6106_v60 = vand.u32 4294901760, %v4893_v34 }
 0x1ca   :  { %v960_v62 = vadd.f32 %v799_v35, %v576_v38  ;;  %v1717_v58 = vsub.f32 %v4896_v49, %v6105_v0  ;;  %v6252_v38 = vand.u32 4294901760, %v3726_v36 }
 0x1cb   :  { %v1453_v52 = vsub.f32 %v4893_v34, %v6106_v60  ;;  %v4917_v47 = vpop.f32.mrf.mxu2 }
 0x1cc   :  { %v1092_v33 = vsel %vm997_vm0, %v960_v62, 0  ;;  %v1718_v42 = vand.u32 4294901760, %v1717_v58  ;;  %6251 = vst [vmem:[#allocation143_spill] sm:$0xff] %v4917_v47 }
 0x1cd   :  { %v4915_v14 = vand.u32 4294901760, %v1092_v33  ;;  %v1454_v18 = vand.u32 4294901760, %v1453_v52  ;;  %v4926_v60 = vpop.f32.mrf.mxu3 }
 0x1ce   :  { %1719 = vmatmul.f32.gmra.mxu2 %v1718_v42  ;;  %2384 = vmatmul.f32.vlgmr.msrb.gmra.mxu3 %v6252_v38  ;;  %6253 = vst [vmem:[#allocation144_spill] sm:$0xff] %v4926_v60  ;;  %v4931_v52 = vpop.f32.mrf.mxu0 }
 0x1cf   :  { %v4920_v35 = vsub.f32 %v1092_v33, %v4915_v14  ;;  %1455 = vmatmul.f32.gmra.mxu0 %v1454_v18  ;;  %1884 = vmatmul.f32.gmra.mxu1 %v4915_v14  ;;  %v6255_v18 = vand.u32 4294901760, %v3769_v8 }
 0x1d0   :  { %v4933_v58 = vpop.f32.mrf.mxu1 }
 0x1d1   :  { %v6107_v0 = vand.u32 4294901760, %v4920_v35 }
 0x1d3   :  { %v1461_v62 = vsub.f32 %v4920_v35, %v6107_v0  ;;  %v4936_v42 = vpop.f32.mrf.mxu2 }
 0x1d4   :  { %6254 = vst [vmem:[#allocation145_spill] sm:$0xff] %v4936_v42 }
 0x1d5   :  { %v1462_v33 = vand.u32 4294901760, %v1461_v62  ;;  %v4941_v38 = vpop.f32.mrf.mxu3 }
 0x1d6   :  { %2042 = vmatmul.f32.vlgmr.msrb.gmra.mxu2 %v3726_v36  ;;  %2390 = vmatmul.f32.gmra.mxu3 %v6255_v18  ;;  %6256 = vst [vmem:[#allocation146_spill] sm:$0xff] %v4941_v38  ;;  %v4943_v60 = vpop.f32.mrf.mxu0  ;;  %v6258_v36 = vand.u32 4294901760, %v3804_v48 }
 0x1d7   :  { %1463 = vmatmul.f32.gmra.mxu0 %v1462_v33  ;;  %3072 = vmatmul.f32.vlgmr.msrb.gmra.mxu1 %v3721_v30 }
 0x1d8   :  { %v4945_v0 = vpop.f32.mrf.mxu1 }
 0x1db   :  { %v4949_v62 = vpop.f32.mrf.mxu2 }
 0x1dc   :  { %6257 = vst [vmem:[#allocation147_spill] sm:$0xff] %v4949_v62 }
 0x1dd   :  { %v4954_v33 = vpop.f32.mrf.mxu3 }
 0x1de   :  { %2047 = vmatmul.f32.gmra.mxu2 %v3769_v8  ;;  %2396 = vmatmul.f32.gmra.mxu3 %v6258_v36  ;;  %6259 = vst [vmem:[#allocation148_spill] sm:$0xff] %v4954_v33  ;;  %v4956_v18 = vpop.f32.mrf.mxu0 }
 0x1df   :  { %2795 = vmatmul.f32.vlgmr.msrb.gmra.mxu0 %v3721_v30  ;;  %3076 = vmatmul.f32.gmra.mxu1 %v3759_v4  ;;  %v6261_v30 = vand.u32 4294901760, %v3837_v17 }
 0x1e0   :  { %v4958_v38 = vpop.f32.mrf.mxu1 }
 0x1e3   :  { %v4962_v8 = vpop.f32.mrf.mxu2 }
 0x1e4   :  { %6260 = vst [vmem:[#allocation149_spill] sm:$0xff] %v4962_v8 }
 0x1e5   :  { %v4967_v36 = vpop.f32.mrf.mxu3 }
 0x1e6   :  { %2052 = vmatmul.f32.gmra.mxu2 %v3804_v48  ;;  %2402 = vmatmul.f32.gmra.mxu3 %v6261_v30  ;;  %6262 = vst [vmem:[#allocation150_spill] sm:$0xff] %v4967_v36  ;;  %v4969_v62 = vpop.f32.mrf.mxu0  ;;  %v6263_v48 = vand.u32 4294901760, %v3896_v23 }
 0x1e7   :  { %2799 = vmatmul.f32.gmra.mxu0 %v3759_v4  ;;  %3080 = vmatmul.f32.gmra.mxu1 %v3796_v43 }
 0x1e8   :  { %v4971_v33 = vpop.f32.mrf.mxu1 }
 0x1eb   :  { %v4978_v4 = vpop.f32.mrf.mxu2 }
 0x1ec   :  { %6264 = vst [vmem:[#allocation151_spill] sm:$0xff] %v4978_v4 }
 0x1ed   :  { %v4980_v30 = vpop.f32.mrf.mxu3 }
 0x1ee   :  { %2057 = vmatmul.f32.gmra.mxu2 %v3837_v17  ;;  %2408 = vmatmul.f32.gmra.mxu3 %v6263_v48  ;;  %6265 = vst [vmem:[#allocation152_spill] sm:$0xff] %v4980_v30  ;;  %v4982_v8 = vpop.f32.mrf.mxu0  ;;  %v6266_v17 = vand.u32 4294901760, %v3932_v22 }
 0x1ef   :  { %2803 = vmatmul.f32.gmra.mxu0 %v3796_v43  ;;  %3084 = vmatmul.f32.gmra.mxu1 %v3828_v12 }
 0x1f0   :  { %v4986_v36 = vpop.f32.mrf.mxu1 }
 0x1f3   :  { %v4991_v43 = vpop.f32.mrf.mxu2 }
 0x1f4   :  { %6267 = vst [vmem:[#allocation153_spill] sm:$0xff] %v4991_v43 }
 0x1f5   :  { %v4993_v48 = vpop.f32.mrf.mxu3 }
 0x1f6   :  { %2062 = vmatmul.f32.gmra.mxu2 %v3896_v23  ;;  %2414 = vmatmul.f32.gmra.mxu3 %v6266_v17  ;;  %6268 = vst [vmem:[#allocation154_spill] sm:$0xff] %v4993_v48  ;;  %v4997_v30 = vpop.f32.mrf.mxu0  ;;  %v6272_v48 = vand.u32 4294901760, %v4009_v53 }
 0x1f7   :  { %2807 = vmatmul.f32.gmra.mxu0 %v3828_v12  ;;  %3088 = vmatmul.f32.gmra.mxu1 %v3883_v7  ;;  %v6269_v12 = vand.u32 4294901760, %v3960_v40 }
 0x1f8   :  { %v4999_v23 = vpop.f32.mrf.mxu1 }
 0x1fb   :  { %v5004_v17 = vpop.f32.mrf.mxu2 }
 0x1fc   :  { %6270 = vst [vmem:[#allocation155_spill] sm:$0xff] %v5004_v17 }
 0x1fd   :  { %v5006_v4 = vpop.f32.mrf.mxu3 }
 0x1fe   :  { %2067 = vmatmul.f32.gmra.mxu2 %v3932_v22  ;;  %2420 = vmatmul.f32.gmra.mxu3 %v6269_v12  ;;  %6271 = vst [vmem:[#allocation156_spill] sm:$0xff] %v5006_v4  ;;  %v5010_v22 = vpop.f32.mrf.mxu0 }
 0x1ff   :  { %2811 = vmatmul.f32.gmra.mxu0 %v3883_v7  ;;  %3092 = vmatmul.f32.gmra.mxu1 %v3924_v37 }
 0x200   :  { %v5012_v7 = vpop.f32.mrf.mxu1 }
 0x203   :  { %v5017_v12 = vpop.f32.mrf.mxu2 }
 0x204   :  { %6273 = vst [vmem:[#allocation157_spill] sm:$0xff] %v5017_v12 }
 0x205   :  { %v5019_v43 = vpop.f32.mrf.mxu3 }
 0x206   :  { %2072 = vmatmul.f32.gmra.mxu2 %v3960_v40  ;;  %2426 = vmatmul.f32.gmra.mxu3 %v6272_v48  ;;  %6274 = vst [vmem:[#allocation158_spill] sm:$0xff] %v5019_v43  ;;  %v5023_v40 = vpop.f32.mrf.mxu0 }
 0x207   :  { %2815 = vmatmul.f32.gmra.mxu0 %v3924_v37  ;;  %3096 = vmatmul.f32.gmra.mxu1 %v3951_v26  ;;  %v6275_v37 = vand.u32 4294901760, %v4040_v25 }
 0x208   :  { %v5028_v4 = vpop.f32.mrf.mxu1 }
 0x20b   :  { %v5030_v48 = vpop.f32.mrf.mxu2 }
 0x20c   :  { %6276 = vst [vmem:[#allocation159_spill] sm:$0xff] %v5030_v48 }
 0x20d   :  { %v5032_v17 = vpop.f32.mrf.mxu3 }
 0x20e   :  { %2077 = vmatmul.f32.gmra.mxu2 %v4009_v53  ;;  %2432 = vmatmul.f32.gmra.mxu3 %v6275_v37  ;;  %6277 = vst [vmem:[#allocation160_spill] sm:$0xff] %v5032_v17  ;;  %v6278_v53 = vand.u32 4294901760, %v4068_v39  ;;  %v6280_v17 = vand.u32 4294901760, %v4117_v5 }
 0x20f   :  { %2819 = vmatmul.f32.gmra.mxu0 %v3951_v26  ;;  %3100 = vmatmul.f32.gmra.mxu1 %v3997_v16  ;;  %v5039_v26 = vpop.f32.mrf.mxu0 }
 0x212   :  { %v5041_v37 = vpop.f32.mrf.mxu1 }
 0x213   :  { %v5043_v43 = vpop.f32.mrf.mxu2 }
 0x214   :  { %6279 = vst [vmem:[#allocation161_spill] sm:$0xff] %v5043_v43 }
 0x216   :  { %2082 = vmatmul.f32.gmra.mxu2 %v4040_v25  ;;  %2438 = vmatmul.f32.gmra.mxu3 %v6278_v53 }
 0x217   :  { %2823 = vmatmul.f32.gmra.mxu0 %v3997_v16  ;;  %3104 = vmatmul.f32.gmra.mxu1 %v4032_v51  ;;  %v5050_v16 = vpop.f32.mrf.mxu3 }
 0x218   :  { %6281 = vst [vmem:[#allocation162_spill] sm:$0xff] %v5050_v16 }
 0x21a   :  { %v5052_v25 = vpop.f32.mrf.mxu0 }
 0x21b   :  { %v5054_v53 = vpop.f32.mrf.mxu1  ;;  %v5056_v48 = vpop.f32.mrf.mxu2 }
 0x21c   :  { %6282 = vst [vmem:[#allocation163_spill] sm:$0xff] %v5056_v48 }
 0x21e   :  { %2087 = vmatmul.f32.gmra.mxu2 %v4068_v39  ;;  %2444 = vmatmul.f32.gmra.mxu3 %v6280_v17  ;;  %v6283_v39 = vand.u32 4294901760, %v4153_v11 }
 0x21f   :  { %2827 = vmatmul.f32.gmra.mxu0 %v4032_v51  ;;  %3108 = vmatmul.f32.gmra.mxu1 %v4059_v50 }
 0x220   :  { %v5063_v51 = vpop.f32.mrf.mxu3 }
 0x221   :  { %6284 = vst [vmem:[#allocation164_spill] sm:$0xff] %v5063_v51 }
 0x223   :  { %v5065_v17 = vpop.f32.mrf.mxu0 }
 0x224   :  { %v5067_v16 = vpop.f32.mrf.mxu1 }
 0x226   :  { %2092 = vmatmul.f32.gmra.mxu2 %v4117_v5  ;;  %2450 = vmatmul.f32.gmra.mxu3 %v6283_v39  ;;  %v6286_v5 = vand.u32 4294901760, %v4194_v15 }
 0x227   :  { %2831 = vmatmul.f32.gmra.mxu0 %v4059_v50  ;;  %3112 = vmatmul.f32.gmra.mxu1 %v4105_v32 }
 0x228   :  { %v5069_v43 = vpop.f32.mrf.mxu2 }
 0x229   :  { %6285 = vst [vmem:[#allocation165_spill] sm:$0xff] %v5069_v43  ;;  %v5076_v50 = vpop.f32.mrf.mxu3 }
 0x22a   :  { %6287 = vst [vmem:[#allocation166_spill] sm:$0xff] %v5076_v50 }
 0x22c   :  { %v5078_v39 = vpop.f32.mrf.mxu0 }
 0x22e   :  { %2097 = vmatmul.f32.gmra.mxu2 %v4153_v11  ;;  %2456 = vmatmul.f32.gmra.mxu3 %v6286_v5  ;;  %v6289_v11 = vand.u32 4294901760, %v4245_v46 }
 0x22f   :  { %2835 = vmatmul.f32.gmra.mxu0 %v4105_v32  ;;  %3116 = vmatmul.f32.gmra.mxu1 %v4145_v41 }
 0x231   :  { %v5082_v48 = vpop.f32.mrf.mxu2 }
 0x232   :  { %v5080_v51 = vpop.f32.mrf.mxu1  ;;  %6288 = vst [vmem:[#allocation167_spill] sm:$0xff] %v5082_v48  ;;  %v5089_v32 = vpop.f32.mrf.mxu3 }
 0x233   :  { %6290 = vst [vmem:[#allocation168_spill] sm:$0xff] %v5089_v32 }
 0x236   :  { %2102 = vmatmul.f32.gmra.mxu2 %v4194_v15  ;;  %2462 = vmatmul.f32.gmra.mxu3 %v6289_v11  ;;  %v6292_v15 = vand.u32 4294901760, %v4277_v27 }
 0x237   :  { %2839 = vmatmul.f32.gmra.mxu0 %v4145_v41  ;;  %3120 = vmatmul.f32.gmra.mxu1 %v4179_v2 }
 0x23a   :  { %v5091_v5 = vpop.f32.mrf.mxu0  ;;  %v5097_v48 = vpop.f32.mrf.mxu2 }
 0x23b   :  { %v5093_v50 = vpop.f32.mrf.mxu1  ;;  %6291 = vst [vmem:[#allocation169_spill] sm:$0xff] %v5097_v48 }
 0x23e   :  { %2107 = vmatmul.f32.gmra.mxu2 %v4245_v46  ;;  %2468 = vmatmul.f32.gmra.mxu3 %v6292_v15  ;;  %v6293_v46 = vand.u32 4294901760, %v4305_v9 }
 0x23f   :  { %2843 = vmatmul.f32.gmra.mxu0 %v4179_v2  ;;  %3124 = vmatmul.f32.gmra.mxu1 %v4233_v45 }
 0x240   :  { %v2009_v41 = vpop.f32.mrf.mxu3 }
 0x243   :  { %v5102_v11 = vpop.f32.mrf.mxu0 }
 0x244   :  { %v5104_v43 = vpop.f32.mrf.mxu1 }
 0x246   :  { %2112 = vmatmul.f32.gmra.mxu2 %v4277_v27  ;;  %2474 = vmatmul.f32.gmra.mxu3 %v6293_v46  ;;  %v6295_v27 = vand.u32 4294901760, %v4353_v56 }
 0x247   :  { %2847 = vmatmul.f32.gmra.mxu0 %v4233_v45  ;;  %3128 = vmatmul.f32.gmra.mxu1 %v4268_v6 }
 0x248   :  { %v1712_v2 = vpop.f32.mrf.mxu2 }
 0x249   :  { %v5111_v32 = vadd.f32 %v2009_v41, %v1712_v2  ;;  %v2013_v15 = vpop.f32.mrf.mxu3 }
 0x24b   :  { %6294 = vst [vmem:[#allocation170_spill] sm:$0xff] %v5111_v32 }
 0x24c   :  { %v5113_v48 = vpop.f32.mrf.mxu0  ;;  %v5115_v12 = vpop.f32.mrf.mxu1 }
 0x24e   :  { %2117 = vmatmul.f32.gmra.mxu2 %v4305_v9  ;;  %2480 = vmatmul.f32.gmra.mxu3 %v6295_v27  ;;  %v6297_v9 = vand.u32 4294901760, %v4387_v10 }
 0x24f   :  { %2851 = vmatmul.f32.gmra.mxu0 %v4268_v6  ;;  %3132 = vmatmul.f32.gmra.mxu1 %v4295_v61  ;;  %v1762_v6 = vadd.f32 %v4401_v13, %v4427_v19 }
 0x251   :  { %v1720_v45 = vpop.f32.mrf.mxu2  ;;  %v2385_v42 = vpop.f32.mrf.mxu3 }
 0x252   :  { %v5122_v46 = vadd.f32 %v2013_v15, %v1720_v45 }
 0x254   :  { %6296 = vst [vmem:[#allocation171_spill] sm:$0xff] %v5122_v46  ;;  %v5124_v41 = vpop.f32.mrf.mxu0  ;;  %v3073_v2 = vpop.f32.mrf.mxu1 }
 0x256   :  { %2122 = vmatmul.f32.gmra.mxu2 %v4353_v56  ;;  %2486 = vmatmul.f32.gmra.mxu3 %v6297_v9  ;;  %v1766_v56 = vadd.f32 %v4435_v63, %v4461_v3  ;;  %v6299_v63 = vand.u32 4294901760, %v4482_v59  ;;  %v6300_v3 = vld [vmem:[#allocation43_spill] sm:$0xff] }
 0x257   :  { %2855 = vmatmul.f32.gmra.mxu0 %v4295_v61  ;;  %3136 = vmatmul.f32.gmra.mxu1 %v4341_v57  ;;  %v6298_v61 = vand.u32 4294901760, %v4421_v54 }
 0x259   :  { %v2043_v27 = vpop.f32.mrf.mxu2  ;;  %v2391_v15 = vpop.f32.mrf.mxu3 }
 0x25a   :  { %v2044_v32 = vadd.f32 %v2043_v27, %v1762_v6 }
 0x25c   :  { %v2796_v45 = vpop.f32.mrf.mxu0  ;;  %v2386_v46 = vadd.f32 %v2385_v42, %v2044_v32  ;;  %v3077_v47 = vpop.f32.mrf.mxu1 }
 0x25e   :  { %v2797_v49 = vadd.f32 %v2796_v45, %v2386_v46  ;;  %2127 = vmatmul.f32.gmra.mxu2 %v4387_v10  ;;  %2492 = vmatmul.f32.gmra.mxu3 %v6298_v61 }
 0x25f   :  { %2859 = vmatmul.f32.gmra.mxu0 %v4341_v57  ;;  %3140 = vmatmul.f32.gmra.mxu1 %v4378_v21 }
 0x260   :  { %v3074_v13 = vadd.f32 %v3073_v2, %v2797_v49  ;;  %v6301_v49 = vld [vmem:[#allocation50_spill] sm:$0xff] }
 0x261   :  { %v2048_v19 = vpop.f32.mrf.mxu2  ;;  %v2397_v32 = vpop.f32.mrf.mxu3  ;;  %v1770_v2 = vadd.f32 %v6301_v49, %v4492_v20  ;;  %v6302_v20 = vand.u32 4294901760, %v4517_v55 }
 0x262   :  { %3328 = vst [vmem:[%s5879_s4] sm:$0xff] %v3074_v13  ;;  %v2049_v42 = vadd.f32 %v2048_v19, %v1766_v56  ;;  %v6305_v19 = vld [vmem:[#allocation55_spill] sm:$0xff] }
 0x263   :  { %3461 = vst [vmem:[%s5879_s4 + $0x8] sm:$0xff] %v3074_v13  ;;  %v6304_v13 = vld [vmem:[#allocation60_spill] sm:$0xff] }
 0x264   :  { %v2800_v57 = vpop.f32.mrf.mxu0  ;;  %v2392_v10 = vadd.f32 %v2391_v15, %v2049_v42  ;;  %v3081_v46 = vpop.f32.mrf.mxu1  ;;  %v1774_v42 = vadd.f32 %v6305_v19, %v6304_v13 }
 0x266   :  { %v2801_v9 = vadd.f32 %v2800_v57, %v2392_v10  ;;  %2132 = vmatmul.f32.gmra.mxu2 %v4421_v54  ;;  %2498 = vmatmul.f32.gmra.mxu3 %v6299_v63 }
 0x267   :  { %2863 = vmatmul.f32.gmra.mxu0 %v4378_v21  ;;  %3144 = vmatmul.f32.gmra.mxu1 %v6300_v3 }
 0x268   :  { %v3078_v6 = vadd.f32 %v3077_v47, %v2801_v9  ;;  %v6303_v47 = vld [vmem:[#allocation51_spill] sm:$0xff] }
 0x269   :  { %v2053_v27 = vpop.f32.mrf.mxu2  ;;  %v2403_v45 = vpop.f32.mrf.mxu3 }
 0x26a   :  { %3329 = vst [vmem:[%s5879_s4 + $0x10] sm:$0xff] %v3078_v6  ;;  %v2054_v15 = vadd.f32 %v2053_v27, %v1770_v2  ;;  %v6309_v27 = vld [vmem:[#allocation68_spill] sm:$0xff] }
 0x26b   :  { %3462 = vst [vmem:[%s5879_s4 + $0x18] sm:$0xff] %v3078_v6  ;;  %v6308_v6 = vld [vmem:[#allocation57_spill] sm:$0xff] }
 0x26c   :  { %v2804_v21 = vpop.f32.mrf.mxu0  ;;  %v2398_v54 = vadd.f32 %v2397_v32, %v2054_v15  ;;  %v3085_v61 = vpop.f32.mrf.mxu1  ;;  %v6310_v15 = vld [vmem:[#allocation61_spill] sm:$0xff] }
 0x26e   :  { %v2805_v56 = vadd.f32 %v2804_v21, %v2398_v54  ;;  %2137 = vmatmul.f32.gmra.mxu2 %v4482_v59  ;;  %2504 = vmatmul.f32.gmra.mxu3 %v6302_v20  ;;  %v1778_v21 = vadd.f32 %v6310_v15, %v6309_v27 }
 0x26f   :  { %2867 = vmatmul.f32.gmra.mxu0 %v6300_v3  ;;  %3148 = vmatmul.f32.gmra.mxu1 %v6303_v47 }
 0x270   :  { %v3082_v57 = vadd.f32 %v3081_v46, %v2805_v56  ;;  %v6306_v46 = vld [vmem:[#allocation65_spill] sm:$0xff] }
 0x271   :  { %v2058_v10 = vpop.f32.mrf.mxu2  ;;  %v2409_v9 = vpop.f32.mrf.mxu3  ;;  %v6307_v2 = vand.u32 4294901760, %v6306_v46 }
 0x272   :  { %3330 = vst [vmem:[%s5879_s4 + $0x20] sm:$0xff] %v3082_v57  ;;  %v2059_v32 = vadd.f32 %v2058_v10, %v1774_v42  ;;  %v6314_v10 = vld [vmem:[#allocation75_spill] sm:$0xff] }
 0x273   :  { %3463 = vst [vmem:[%s5879_s4 + $0x28] sm:$0xff] %v3082_v57  ;;  %v6313_v57 = vld [vmem:[#allocation62_spill] sm:$0xff] }
 0x274   :  { %v2808_v59 = vpop.f32.mrf.mxu0  ;;  %v2404_v63 = vadd.f32 %v2403_v45, %v2059_v32  ;;  %v3089_v3 = vpop.f32.mrf.mxu1  ;;  %v6315_v32 = vld [vmem:[#allocation69_spill] sm:$0xff] }
 0x276   :  { %v2809_v49 = vadd.f32 %v2808_v59, %v2404_v63  ;;  %2142 = vmatmul.f32.gmra.mxu2 %v4517_v55  ;;  %2510 = vmatmul.f32.gmra.mxu3 %v6307_v2  ;;  %v1782_v59 = vadd.f32 %v6315_v32, %v6314_v10 }
 0x277   :  { %2871 = vmatmul.f32.gmra.mxu0 %v6303_v47  ;;  %3152 = vmatmul.f32.gmra.mxu1 %v6308_v6 }
 0x278   :  { %v3086_v54 = vadd.f32 %v3085_v61, %v2809_v49  ;;  %v6311_v61 = vld [vmem:[#allocation76_spill] sm:$0xff] }
 0x279   :  { %v2063_v56 = vpop.f32.mrf.mxu2  ;;  %v2415_v20 = vpop.f32.mrf.mxu3  ;;  %v6312_v42 = vand.u32 4294901760, %v6311_v61 }
 0x27a   :  { %3331 = vst [vmem:[%s5879_s4 + $0x30] sm:$0xff] %v3086_v54  ;;  %v2064_v45 = vadd.f32 %v2063_v56, %v1778_v21  ;;  %v6319_v56 = vld [vmem:[#allocation83_spill] sm:$0xff] }
 0x27b   :  { %3464 = vst [vmem:[%s5879_s4 + $0x38] sm:$0xff] %v3086_v54  ;;  %v6318_v54 = vld [vmem:[#allocation74_spill] sm:$0xff] }
 0x27c   :  { %v2812_v55 = vpop.f32.mrf.mxu0  ;;  %v2410_v47 = vadd.f32 %v2409_v9, %v2064_v45  ;;  %v3093_v13 = vpop.f32.mrf.mxu1  ;;  %v6320_v45 = vld [vmem:[#allocation77_spill] sm:$0xff] }
 0x27e   :  { %v2813_v19 = vadd.f32 %v2812_v55, %v2410_v47  ;;  %2147 = vmatmul.f32.gmra.mxu2 %v6306_v46  ;;  %2516 = vmatmul.f32.gmra.mxu3 %v6312_v42  ;;  %v1786_v55 = vadd.f32 %v6320_v45, %v6319_v56 }
 0x27f   :  { %2875 = vmatmul.f32.gmra.mxu0 %v6308_v6  ;;  %3156 = vmatmul.f32.gmra.mxu1 %v6313_v57 }
 0x280   :  { %v3090_v63 = vadd.f32 %v3089_v3, %v2813_v19  ;;  %v6316_v3 = vld [vmem:[#allocation85_spill] sm:$0xff] }
 0x281   :  { %v2068_v49 = vpop.f32.mrf.mxu2  ;;  %v2421_v2 = vpop.f32.mrf.mxu3  ;;  %v6317_v21 = vand.u32 4294901760, %v6316_v3 }
 0x282   :  { %3332 = vst [vmem:[%s5879_s4 + $0x40] sm:$0xff] %v3090_v63  ;;  %v2069_v9 = vadd.f32 %v2068_v49, %v1782_v59  ;;  %v6324_v49 = vld [vmem:[#allocation90_spill] sm:$0xff] }
 0x283   :  { %3465 = vst [vmem:[%s5879_s4 + $0x48] sm:$0xff] %v3090_v63  ;;  %v6323_v63 = vld [vmem:[#allocation82_spill] sm:$0xff] }
 0x284   :  { %v2816_v46 = vpop.f32.mrf.mxu0  ;;  %v2416_v6 = vadd.f32 %v2415_v20, %v2069_v9  ;;  %v3097_v27 = vpop.f32.mrf.mxu1  ;;  %v6325_v9 = vld [vmem:[#allocation84_spill] sm:$0xff] }
 0x286   :  { %v2817_v15 = vadd.f32 %v2816_v46, %v2416_v6  ;;  %2152 = vmatmul.f32.gmra.mxu2 %v6311_v61  ;;  %2522 = vmatmul.f32.gmra.mxu3 %v6317_v21  ;;  %v1790_v46 = vadd.f32 %v6325_v9, %v6324_v49 }
 0x287   :  { %2879 = vmatmul.f32.gmra.mxu0 %v6313_v57  ;;  %3160 = vmatmul.f32.gmra.mxu1 %v6318_v54 }
 0x288   :  { %v3094_v47 = vadd.f32 %v3093_v13, %v2817_v15  ;;  %v6321_v13 = vld [vmem:[#allocation92_spill] sm:$0xff] }
 0x289   :  { %v2073_v19 = vpop.f32.mrf.mxu2  ;;  %v2427_v42 = vpop.f32.mrf.mxu3  ;;  %v6322_v59 = vand.u32 4294901760, %v6321_v13 }
 0x28a   :  { %3333 = vst [vmem:[%s5879_s4 + $0x50] sm:$0xff] %v3094_v47  ;;  %v2074_v20 = vadd.f32 %v2073_v19, %v1786_v55  ;;  %v6329_v19 = vld [vmem:[#allocation97_spill] sm:$0xff] }
 0x28b   :  { %3466 = vst [vmem:[%s5879_s4 + $0x58] sm:$0xff] %v3094_v47  ;;  %v6328_v47 = vld [vmem:[#allocation88_spill] sm:$0xff] }
 0x28c   :  { %v2820_v61 = vpop.f32.mrf.mxu0  ;;  %v2422_v57 = vadd.f32 %v2421_v2, %v2074_v20  ;;  %v3101_v10 = vpop.f32.mrf.mxu1  ;;  %v6330_v20 = vld [vmem:[#allocation91_spill] sm:$0xff] }
 0x28e   :  { %v2821_v32 = vadd.f32 %v2820_v61, %v2422_v57  ;;  %2157 = vmatmul.f32.gmra.mxu2 %v6316_v3  ;;  %2528 = vmatmul.f32.gmra.mxu3 %v6322_v59  ;;  %v1794_v61 = vadd.f32 %v6330_v20, %v6329_v19 }
 0x28f   :  { %2883 = vmatmul.f32.gmra.mxu0 %v6318_v54  ;;  %3164 = vmatmul.f32.gmra.mxu1 %v6323_v63 }
 0x290   :  { %v3098_v6 = vadd.f32 %v3097_v27, %v2821_v32  ;;  %v6326_v27 = vld [vmem:[#allocation103_spill] sm:$0xff] }
 0x291   :  { %v2078_v15 = vpop.f32.mrf.mxu2  ;;  %v2433_v21 = vpop.f32.mrf.mxu3  ;;  %v6327_v55 = vand.u32 4294901760, %v6326_v27 }
 0x292   :  { %3334 = vst [vmem:[%s5879_s4 + $0x60] sm:$0xff] %v3098_v6  ;;  %v2079_v2 = vadd.f32 %v2078_v15, %v1790_v46  ;;  %v6332_v46 = vld [vmem:[#allocation101_spill] sm:$0xff]  ;;  %v6334_v15 = vld [vmem:[#allocation99_spill] sm:$0xff] }
 0x293   :  { %3467 = vst [vmem:[%s5879_s4 + $0x68] sm:$0xff] %v3098_v6  ;;  %v6333_v6 = vld [vmem:[#allocation104_spill] sm:$0xff] }
 0x294   :  { %v2824_v3 = vpop.f32.mrf.mxu0  ;;  %v2428_v54 = vadd.f32 %v2427_v42, %v2079_v2  ;;  %v3105_v56 = vpop.f32.mrf.mxu1  ;;  %v1798_v2 = vadd.f32 %v6334_v15, %v6333_v6 }
 0x296   :  { %v2825_v45 = vadd.f32 %v2824_v3, %v2428_v54  ;;  %2162 = vmatmul.f32.gmra.mxu2 %v6321_v13  ;;  %2534 = vmatmul.f32.gmra.mxu3 %v6327_v55 }
 0x297   :  { %2887 = vmatmul.f32.gmra.mxu0 %v6323_v63  ;;  %3168 = vmatmul.f32.gmra.mxu1 %v6328_v47 }
 0x298   :  { %v3102_v57 = vadd.f32 %v3101_v10, %v2825_v45  ;;  %v6331_v10 = vand.u32 4294901760, %v4750_v1 }
 0x299   :  { %v2083_v32 = vpop.f32.mrf.mxu2  ;;  %v2439_v59 = vpop.f32.mrf.mxu3 }
 0x29a   :  { %3335 = vst [vmem:[%s5879_s4 + $0x70] sm:$0xff] %v3102_v57  ;;  %v2084_v42 = vadd.f32 %v2083_v32, %v1794_v61  ;;  %v6337_v61 = vld [vmem:[#allocation109_spill] sm:$0xff] }
 0x29b   :  { %3468 = vst [vmem:[%s5879_s4 + $0x78] sm:$0xff] %v3102_v57  ;;  %v6338_v57 = vld [vmem:[#allocation111_spill] sm:$0xff]  ;;  %v6339_v32 = vld [vmem:[#allocation105_spill] sm:$0xff] }
 0x29c   :  { %v2828_v13 = vpop.f32.mrf.mxu0  ;;  %v2434_v63 = vadd.f32 %v2433_v21, %v2084_v42  ;;  %v3109_v49 = vpop.f32.mrf.mxu1  ;;  %v1802_v42 = vadd.f32 %v6339_v32, %v6338_v57  ;;  %v6346_v32 = vld [vmem:[#allocation127_spill] sm:$0xff] }
 0x29e   :  { %v2829_v9 = vadd.f32 %v2828_v13, %v2434_v63  ;;  %2167 = vmatmul.f32.gmra.mxu2 %v6326_v27  ;;  %2540 = vmatmul.f32.gmra.mxu3 %v6331_v10 }
 0x29f   :  { %2891 = vmatmul.f32.gmra.mxu0 %v6328_v47  ;;  %3172 = vmatmul.f32.gmra.mxu1 %v6332_v46 }
 0x2a0   :  { %v3106_v3 = vadd.f32 %v3105_v56, %v2829_v9  ;;  %v6335_v56 = vld [vmem:[#allocation117_spill] sm:$0xff] }
 0x2a1   :  { %v2088_v54 = vpop.f32.mrf.mxu2  ;;  %v2445_v45 = vpop.f32.mrf.mxu3  ;;  %v6336_v20 = vand.u32 4294901760, %v6335_v56 }
 0x2a2   :  { %3336 = vst [vmem:[%s5879_s4 + $0x80] sm:$0xff] %v3106_v3  ;;  %v2089_v21 = vadd.f32 %v2088_v54, %v1798_v2  ;;  %v6342_v2 = vld [vmem:[#allocation114_spill] sm:$0xff]  ;;  %v6344_v54 = vld [vmem:[#allocation112_spill] sm:$0xff] }
 0x2a3   :  { %3469 = vst [vmem:[%s5879_s4 + $0x88] sm:$0xff] %v3106_v3  ;;  %v6343_v3 = vld [vmem:[#allocation119_spill] sm:$0xff] }
 0x2a4   :  { %v2832_v27 = vpop.f32.mrf.mxu0  ;;  %v2440_v55 = vadd.f32 %v2439_v59, %v2089_v21  ;;  %v3113_v47 = vpop.f32.mrf.mxu1  ;;  %v1806_v21 = vadd.f32 %v6344_v54, %v6343_v3  ;;  %v6350_v3 = vld [vmem:[#allocation135_spill] sm:$0xff] }
 0x2a5   :  { %v6351_v54 = vld [vmem:[#allocation131_spill] sm:$0xff] }
 0x2a6   :  { %v2833_v19 = vadd.f32 %v2832_v27, %v2440_v55  ;;  %2172 = vmatmul.f32.gmra.mxu2 %v4750_v1  ;;  %2546 = vmatmul.f32.gmra.mxu3 %v6336_v20 }
 0x2a7   :  { %2895 = vmatmul.f32.gmra.mxu0 %v6332_v46  ;;  %3176 = vmatmul.f32.gmra.mxu1 %v6337_v61 }
 0x2a8   :  { %v3110_v13 = vadd.f32 %v3109_v49, %v2833_v19  ;;  %v6340_v49 = vld [vmem:[#allocation129_spill] sm:$0xff] }
 0x2a9   :  { %v2093_v63 = vpop.f32.mrf.mxu2  ;;  %v2451_v9 = vpop.f32.mrf.mxu3  ;;  %v6341_v15 = vand.u32 4294901760, %v6340_v49 }
 0x2aa   :  { %3337 = vst [vmem:[%s5879_s4 + $0x90] sm:$0xff] %v3110_v13  ;;  %v2094_v59 = vadd.f32 %v2093_v63, %v1802_v42  ;;  %v6347_v42 = vld [vmem:[#allocation125_spill] sm:$0xff] }
 0x2ab   :  { %3470 = vst [vmem:[%s5879_s4 + $0x98] sm:$0xff] %v3110_v13  ;;  %v6348_v13 = vld [vmem:[#allocation120_spill] sm:$0xff] }
 0x2ac   :  { %v2836_v1 = vpop.f32.mrf.mxu0  ;;  %v2446_v10 = vadd.f32 %v2445_v45, %v2094_v59  ;;  %v3117_v46 = vpop.f32.mrf.mxu1  ;;  %v1810_v63 = vadd.f32 %v6348_v13, %v6347_v42 }
 0x2ae   :  { %v2837_v6 = vadd.f32 %v2836_v1, %v2446_v10  ;;  %2177 = vmatmul.f32.gmra.mxu2 %v6335_v56  ;;  %2552 = vmatmul.f32.gmra.mxu3 %v6341_v15 }
 0x2af   :  { %2899 = vmatmul.f32.gmra.mxu0 %v6337_v61  ;;  %3180 = vmatmul.f32.gmra.mxu1 %v6342_v2 }
 0x2b0   :  { %v3114_v27 = vadd.f32 %v3113_v47, %v2837_v6  ;;  %v6345_v47 = vand.u32 4294901760, %v4864_v31 }
 0x2b1   :  { %v2098_v55 = vpop.f32.mrf.mxu2  ;;  %v2457_v19 = vpop.f32.mrf.mxu3 }
 0x2b2   :  { %3338 = vst [vmem:[%s5879_s4 + $0xa0] sm:$0xff] %v3114_v27  ;;  %v2099_v45 = vadd.f32 %v2098_v55, %v1806_v21  ;;  %v6352_v21 = vld [vmem:[#allocation126_spill] sm:$0xff] }
 0x2b3   :  { %3471 = vst [vmem:[%s5879_s4 + $0xa8] sm:$0xff] %v3114_v27  ;;  %v1814_v27 = vadd.f32 %v6352_v21, %v6351_v54 }
 0x2b4   :  { %v2840_v56 = vpop.f32.mrf.mxu0  ;;  %v2452_v20 = vadd.f32 %v2451_v9, %v2099_v45  ;;  %v3121_v61 = vpop.f32.mrf.mxu1 }
 0x2b6   :  { %v2841_v57 = vadd.f32 %v2840_v56, %v2452_v20  ;;  %2182 = vmatmul.f32.gmra.mxu2 %v6340_v49  ;;  %2558 = vmatmul.f32.gmra.mxu3 %v6345_v47 }
 0x2b7   :  { %2903 = vmatmul.f32.gmra.mxu0 %v6342_v2  ;;  %3184 = vmatmul.f32.gmra.mxu1 %v6346_v32 }
 0x2b8   :  { %v3118_v59 = vadd.f32 %v3117_v46, %v2841_v57  ;;  %v6349_v46 = vand.u32 4294901760, %v4893_v34 }
 0x2b9   :  { %v2103_v1 = vpop.f32.mrf.mxu2  ;;  %v2463_v10 = vpop.f32.mrf.mxu3 }
 0x2ba   :  { %3339 = vst [vmem:[%s5879_s4 + $0xb0] sm:$0xff] %v3118_v59  ;;  %v2104_v9 = vadd.f32 %v2103_v1, %v1810_v63 }
 0x2bb   :  { %3472 = vst [vmem:[%s5879_s4 + $0xb8] sm:$0xff] %v3118_v59 }
 0x2bc   :  { %v2844_v6 = vpop.f32.mrf.mxu0  ;;  %v2458_v49 = vadd.f32 %v2457_v19, %v2104_v9  ;;  %v3125_v15 = vpop.f32.mrf.mxu1 }
 0x2be   :  { %v2845_v2 = vadd.f32 %v2844_v6, %v2458_v49  ;;  %2187 = vmatmul.f32.gmra.mxu2 %v4864_v31  ;;  %2564 = vmatmul.f32.gmra.mxu3 %v6349_v46 }
 0x2bf   :  { %2907 = vmatmul.f32.gmra.mxu0 %v6346_v32  ;;  %3188 = vmatmul.f32.gmra.mxu1 %v6350_v3  ;;  %v6354_v32 = vld [vmem:[#allocation132_spill] sm:$0xff] }
 0x2c0   :  { %v3122_v55 = vadd.f32 %v3121_v61, %v2845_v2  ;;  %v6353_v61 = vand.u32 4294901760, %v4920_v35  ;;  %v1818_v42 = vadd.f32 %v6354_v32, %v4874_v29  ;;  %v6355_v29 = vld [vmem:[#allocation4_spill] sm:$0xff] }
 0x2c1   :  { %v2108_v45 = vpop.f32.mrf.mxu2  ;;  %v2469_v56 = vpop.f32.mrf.mxu3  ;;  %v6356_v49 = vand.u32 4294901760, %v6355_v29 }
 0x2c2   :  { %3340 = vst [vmem:[%s5879_s4 + $0xc0] sm:$0xff] %v3122_v55  ;;  %v2109_v19 = vadd.f32 %v2108_v45, %v1814_v27 }
 0x2c3   :  { %3473 = vst [vmem:[%s5879_s4 + $0xc8] sm:$0xff] %v3122_v55 }
 0x2c4   :  { %v2848_v31 = vpop.f32.mrf.mxu0  ;;  %v2464_v20 = vadd.f32 %v2463_v10, %v2109_v19  ;;  %v3129_v57 = vpop.f32.mrf.mxu1  ;;  %v6360_v19 = vld [vmem:[#allocation3_spill] sm:$0xff] }
 0x2c6   :  { %v2849_v47 = vadd.f32 %v2848_v31, %v2464_v20  ;;  %2192 = vmatmul.f32.gmra.mxu2 %v4893_v34  ;;  %2570 = vmatmul.f32.gmra.mxu3 %v6353_v61 }
 0x2c7   :  { %2911 = vmatmul.f32.gmra.mxu0 %v6350_v3  ;;  %3192 = vmatmul.f32.gmra.mxu1 %v4883_v24 }
 0x2c8   :  { %v3126_v13 = vadd.f32 %v3125_v15, %v2849_v47  ;;  %v6357_v15 = vld [vmem:[#allocation138_spill] sm:$0xff] }
 0x2c9   :  { %v2113_v63 = vpop.f32.mrf.mxu2  ;;  %v2475_v1 = vpop.f32.mrf.mxu3  ;;  %v1822_v2 = vadd.f32 %v6357_v15, %v4910_v28  ;;  %v6358_v28 = vld [vmem:[#allocation5_spill] sm:$0xff]  ;;  %v6366_v15 = vld [vmem:[#allocation6_spill] sm:$0xff] }
 0x2ca   :  { %3341 = vst [vmem:[%s5879_s4 + $0xd0] sm:$0xff] %v3126_v13  ;;  %v2114_v59 = vadd.f32 %v2113_v63, %v1818_v42  ;;  %v6359_v45 = vand.u32 4294901760, %v6358_v28  ;;  %v1830_v63 = vadd.f32 %v4933_v58, %v4943_v60  ;;  %v6364_v60 = vld [vmem:[#allocation9_spill] sm:$0xff] }
 0x2cb   :  { %3474 = vst [vmem:[%s5879_s4 + $0xd8] sm:$0xff] %v3126_v13  ;;  %v6363_v13 = vld [vmem:[#allocation2_spill] sm:$0xff]  ;;  %v6365_v58 = vand.u32 4294901760, %v6364_v60 }
 0x2cc   :  { %v2852_v34 = vpop.f32.mrf.mxu0  ;;  %v2470_v9 = vadd.f32 %v2469_v56, %v2114_v59  ;;  %v3133_v10 = vpop.f32.mrf.mxu1  ;;  %v1826_v56 = vadd.f32 %v4912_v44, %v4931_v52  ;;  %v6361_v44 = vld [vmem:[#allocation7_spill] sm:$0xff] }
 0x2cd   :  { %v6362_v52 = vand.u32 4294901760, %v6361_v44 }
 0x2ce   :  { %v2853_v6 = vadd.f32 %v2852_v34, %v2470_v9  ;;  %2197 = vmatmul.f32.gmra.mxu2 %v4920_v35  ;;  %2576 = vmatmul.f32.gmra.mxu3 %v6356_v49 }
 0x2cf   :  { %2915 = vmatmul.f32.gmra.mxu0 %v4883_v24  ;;  %3196 = vmatmul.f32.gmra.mxu1 %v4915_v14 }
 0x2d0   :  { %v3130_v46 = vadd.f32 %v3129_v57, %v2853_v6 }
 0x2d1   :  { %v2118_v3 = vpop.f32.mrf.mxu2  ;;  %v2481_v21 = vpop.f32.mrf.mxu3 }
 0x2d2   :  { %3342 = vst [vmem:[%s5879_s4 + $0xe0] sm:$0xff] %v3130_v46  ;;  %v2119_v54 = vadd.f32 %v2118_v3, %v1822_v2  ;;  %v1834_v2 = vadd.f32 %v4945_v0, %v4956_v18  ;;  %v6367_v0 = vld [vmem:[#allocation11_spill] sm:$0xff] }
 0x2d3   :  { %3475 = vst [vmem:[%s5879_s4 + $0xe8] sm:$0xff] %v3130_v46  ;;  %v6368_v18 = vand.u32 4294901760, %v6367_v0 }
 0x2d4   :  { %v2856_v24 = vpop.f32.mrf.mxu0  ;;  %v2476_v35 = vadd.f32 %v2475_v1, %v2119_v54  ;;  %v3137_v27 = vpop.f32.mrf.mxu1 }
 0x2d6   :  { %v2857_v55 = vadd.f32 %v2856_v24, %v2476_v35  ;;  %2202 = vmatmul.f32.gmra.mxu2 %v6355_v29  ;;  %2582 = vmatmul.f32.gmra.mxu3 %v6359_v45  ;;  %v1838_v45 = vadd.f32 %v4958_v38, %v4969_v62  ;;  %v6370_v38 = vld [vmem:[#allocation13_spill] sm:$0xff] }
 0x2d7   :  { %2919 = vmatmul.f32.gmra.mxu0 %v4915_v14  ;;  %3200 = vmatmul.f32.gmra.mxu1 %v6360_v19  ;;  %v6371_v62 = vand.u32 4294901760, %v6370_v38 }
 0x2d8   :  { %v3134_v31 = vadd.f32 %v3133_v10, %v2857_v55 }
 0x2d9   :  { %v2123_v20 = vpop.f32.mrf.mxu2  ;;  %v2487_v47 = vpop.f32.mrf.mxu3 }
 0x2da   :  { %3343 = vst [vmem:[%s5879_s4 + $0xf0] sm:$0xff] %v3134_v31  ;;  %v2124_v57 = vadd.f32 %v2123_v20, %v1826_v56 }
 0x2db   :  { %3476 = vst [vmem:[%s5879_s4 + $0xf8] sm:$0xff] %v3134_v31 }
 0x2dc   :  { %v2860_v14 = vpop.f32.mrf.mxu0  ;;  %v2482_v61 = vadd.f32 %v2481_v21, %v2124_v57  ;;  %v3141_v32 = vpop.f32.mrf.mxu1 }
 0x2de   :  { %v2861_v42 = vadd.f32 %v2860_v14, %v2482_v61  ;;  %2207 = vmatmul.f32.gmra.mxu2 %v6358_v28  ;;  %2588 = vmatmul.f32.gmra.mxu3 %v6362_v52  ;;  %v6369_v28 = vld [vmem:[#allocation8_spill] sm:$0xff] }
 0x2df   :  { %2923 = vmatmul.f32.gmra.mxu0 %v6360_v19  ;;  %3204 = vmatmul.f32.gmra.mxu1 %v6363_v13 }
 0x2e0   :  { %v3138_v59 = vadd.f32 %v3137_v27, %v2861_v42  ;;  %v1842_v42 = vadd.f32 %v4971_v33, %v4982_v8  ;;  %v6373_v33 = vld [vmem:[#allocation15_spill] sm:$0xff] }
 0x2e1   :  { %v2128_v1 = vpop.f32.mrf.mxu2  ;;  %v2493_v9 = vpop.f32.mrf.mxu3  ;;  %v6374_v8 = vand.u32 4294901760, %v6373_v33 }
 0x2e2   :  { %3344 = vst [vmem:[%s5879_s4 + $0x100] sm:$0xff] %v3138_v59  ;;  %v2129_v34 = vadd.f32 %v2128_v1, %v1830_v63 }
 0x2e3   :  { %3477 = vst [vmem:[%s5879_s4 + $0x108] sm:$0xff] %v3138_v59 }
 0x2e4   :  { %v2864_v10 = vpop.f32.mrf.mxu0  ;;  %v2488_v6 = vadd.f32 %v2487_v47, %v2129_v34  ;;  %v3145_v29 = vpop.f32.mrf.mxu1 }
 0x2e6   :  { %v2865_v49 = vadd.f32 %v2864_v10, %v2488_v6  ;;  %2212 = vmatmul.f32.gmra.mxu2 %v6361_v44  ;;  %2594 = vmatmul.f32.gmra.mxu3 %v6365_v58  ;;  %v6375_v10 = vld [vmem:[#allocation12_spill] sm:$0xff]  ;;  %v1846_v6 = vadd.f32 %v4986_v36, %v4997_v30  ;;  %v6376_v36 = vld [vmem:[#allocation17_spill] sm:$0xff] }
 0x2e7   :  { %2927 = vmatmul.f32.gmra.mxu0 %v6363_v13  ;;  %3208 = vmatmul.f32.gmra.mxu1 %v6366_v15  ;;  %v6377_v30 = vand.u32 4294901760, %v6376_v36 }
 0x2e8   :  { %v3142_v46 = vadd.f32 %v3141_v32, %v2865_v49  ;;  %v6372_v32 = vld [vmem:[#allocation10_spill] sm:$0xff] }
 0x2e9   :  { %v2133_v3 = vpop.f32.mrf.mxu2  ;;  %v2499_v21 = vpop.f32.mrf.mxu3 }
 0x2ea   :  { %3345 = vst [vmem:[%s5879_s4 + $0x110] sm:$0xff] %v3142_v46  ;;  %v2134_v54 = vadd.f32 %v2133_v3, %v1834_v2 }
 0x2eb   :  { %3478 = vst [vmem:[%s5879_s4 + $0x118] sm:$0xff] %v3142_v46 }
 0x2ec   :  { %v2868_v24 = vpop.f32.mrf.mxu0  ;;  %v2494_v35 = vadd.f32 %v2493_v9, %v2134_v54  ;;  %v3149_v27 = vpop.f32.mrf.mxu1  ;;  %v6378_v54 = vld [vmem:[#allocation14_spill] sm:$0xff] }
 0x2ee   :  { %v2869_v55 = vadd.f32 %v2868_v24, %v2494_v35  ;;  %2217 = vmatmul.f32.gmra.mxu2 %v6364_v60  ;;  %2600 = vmatmul.f32.gmra.mxu3 %v6368_v18 }
 0x2ef   :  { %2931 = vmatmul.f32.gmra.mxu0 %v6366_v15  ;;  %3212 = vmatmul.f32.gmra.mxu1 %v6369_v28 }
 0x2f0   :  { %v3146_v19 = vadd.f32 %v3145_v29, %v2869_v55 }
 0x2f1   :  { %v2138_v56 = vpop.f32.mrf.mxu2  ;;  %v2505_v20 = vpop.f32.mrf.mxu3 }
 0x2f2   :  { %3346 = vst [vmem:[%s5879_s4 + $0x120] sm:$0xff] %v3146_v19  ;;  %v2139_v31 = vadd.f32 %v2138_v56, %v1838_v45  ;;  %v1854_v56 = vadd.f32 %v5012_v7, %v5023_v40  ;;  %v6382_v7 = vld [vmem:[#allocation21_spill] sm:$0xff] }
 0x2f3   :  { %3479 = vst [vmem:[%s5879_s4 + $0x128] sm:$0xff] %v3146_v19  ;;  %v6381_v19 = vld [vmem:[#allocation16_spill] sm:$0xff]  ;;  %v6383_v40 = vand.u32 4294901760, %v6382_v7 }
 0x2f4   :  { %v2872_v57 = vpop.f32.mrf.mxu0  ;;  %v2500_v47 = vadd.f32 %v2499_v21, %v2139_v31  ;;  %v3153_v14 = vpop.f32.mrf.mxu1  ;;  %v1850_v21 = vadd.f32 %v4999_v23, %v5010_v22  ;;  %v6379_v23 = vld [vmem:[#allocation19_spill] sm:$0xff] }
 0x2f5   :  { %v6380_v22 = vand.u32 4294901760, %v6379_v23 }
 0x2f6   :  { %v2873_v61 = vadd.f32 %v2872_v57, %v2500_v47  ;;  %2222 = vmatmul.f32.gmra.mxu2 %v6367_v0  ;;  %2606 = vmatmul.f32.gmra.mxu3 %v6371_v62 }
 0x2f7   :  { %2935 = vmatmul.f32.gmra.mxu0 %v6369_v28  ;;  %3216 = vmatmul.f32.gmra.mxu1 %v6372_v32 }
 0x2f8   :  { %v3150_v44 = vadd.f32 %v3149_v27, %v2873_v61 }
 0x2f9   :  { %v2143_v52 = vpop.f32.mrf.mxu2  ;;  %v2511_v63 = vpop.f32.mrf.mxu3 }
 0x2fa   :  { %3347 = vst [vmem:[%s5879_s4 + $0x130] sm:$0xff] %v3150_v44  ;;  %v2144_v13 = vadd.f32 %v2143_v52, %v1842_v42  ;;  %v1858_v42 = vadd.f32 %v5028_v4, %v5039_v26  ;;  %v6385_v4 = vld [vmem:[#allocation23_spill] sm:$0xff] }
 0x2fb   :  { %3480 = vst [vmem:[%s5879_s4 + $0x138] sm:$0xff] %v3150_v44  ;;  %v6386_v26 = vand.u32 4294901760, %v6385_v4 }
 0x2fc   :  { %v2876_v59 = vpop.f32.mrf.mxu0  ;;  %v2506_v1 = vadd.f32 %v2505_v20, %v2144_v13  ;;  %v3157_v34 = vpop.f32.mrf.mxu1 }
 0x2fe   :  { %v2877_v9 = vadd.f32 %v2876_v59, %v2506_v1  ;;  %2227 = vmatmul.f32.gmra.mxu2 %v6370_v38  ;;  %2612 = vmatmul.f32.gmra.mxu3 %v6374_v8  ;;  %v1862_v8 = vadd.f32 %v5041_v37, %v5052_v25  ;;  %v6388_v37 = vld [vmem:[#allocation25_spill] sm:$0xff] }
 0x2ff   :  { %2939 = vmatmul.f32.gmra.mxu0 %v6372_v32  ;;  %3220 = vmatmul.f32.gmra.mxu1 %v6375_v10  ;;  %v6384_v32 = vld [vmem:[#allocation18_spill] sm:$0xff]  ;;  %v6389_v25 = vand.u32 4294901760, %v6388_v37 }
 0x300   :  { %v3154_v29 = vadd.f32 %v3153_v14, %v2877_v9 }
 0x301   :  { %v2148_v49 = vpop.f32.mrf.mxu2  ;;  %v2517_v58 = vpop.f32.mrf.mxu3 }
 0x302   :  { %3348 = vst [vmem:[%s5879_s4 + $0x140] sm:$0xff] %v3154_v29  ;;  %v2149_v60 = vadd.f32 %v2148_v49, %v1846_v6 }
 0x303   :  { %3481 = vst [vmem:[%s5879_s4 + $0x148] sm:$0xff] %v3154_v29 }
 0x304   :  { %v2880_v15 = vpop.f32.mrf.mxu0  ;;  %v2512_v2 = vadd.f32 %v2511_v63, %v2149_v60  ;;  %v3161_v46 = vpop.f32.mrf.mxu1 }
 0x306   :  { %v2881_v3 = vadd.f32 %v2880_v15, %v2512_v2  ;;  %2232 = vmatmul.f32.gmra.mxu2 %v6373_v33  ;;  %2618 = vmatmul.f32.gmra.mxu3 %v6377_v30  ;;  %v6387_v33 = vld [vmem:[#allocation20_spill] sm:$0xff] }
 0x307   :  { %2943 = vmatmul.f32.gmra.mxu0 %v6375_v10  ;;  %3224 = vmatmul.f32.gmra.mxu1 %v6378_v54 }
 0x308   :  { %v3158_v24 = vadd.f32 %v3157_v34, %v2881_v3  ;;  %v1866_v3 = vadd.f32 %v5054_v53, %v5065_v17  ;;  %v6391_v53 = vld [vmem:[#allocation27_spill] sm:$0xff] }
 0x309   :  { %v2153_v35 = vpop.f32.mrf.mxu2  ;;  %v2523_v55 = vpop.f32.mrf.mxu3  ;;  %v6392_v17 = vand.u32 4294901760, %v6391_v53 }
 0x30a   :  { %3349 = vst [vmem:[%s5879_s4 + $0x150] sm:$0xff] %v3158_v24  ;;  %v2154_v27 = vadd.f32 %v2153_v35, %v1850_v21 }
 0x30b   :  { %3482 = vst [vmem:[%s5879_s4 + $0x158] sm:$0xff] %v3158_v24 }
 0x30c   :  { %v2884_v0 = vpop.f32.mrf.mxu0  ;;  %v2518_v18 = vadd.f32 %v2517_v58, %v2154_v27  ;;  %v3165_v28 = vpop.f32.mrf.mxu1 }
 0x30e   :  { %v2885_v45 = vadd.f32 %v2884_v0, %v2518_v18  ;;  %2237 = vmatmul.f32.gmra.mxu2 %v6376_v36  ;;  %2624 = vmatmul.f32.gmra.mxu3 %v6380_v22  ;;  %v6393_v0 = vld [vmem:[#allocation24_spill] sm:$0xff]  ;;  %v1870_v18 = vadd.f32 %v5067_v16, %v5078_v39  ;;  %v6394_v16 = vld [vmem:[#allocation29_spill] sm:$0xff] }
 0x30f   :  { %2947 = vmatmul.f32.gmra.mxu0 %v6378_v54  ;;  %3228 = vmatmul.f32.gmra.mxu1 %v6381_v19  ;;  %v6395_v39 = vand.u32 4294901760, %v6394_v16 }
 0x310   :  { %v3162_v31 = vadd.f32 %v3161_v46, %v2885_v45  ;;  %v6390_v46 = vld [vmem:[#allocation22_spill] sm:$0xff] }
 0x311   :  { %v2158_v20 = vpop.f32.mrf.mxu2  ;;  %v2529_v47 = vpop.f32.mrf.mxu3 }
 0x312   :  { %3350 = vst [vmem:[%s5879_s4 + $0x160] sm:$0xff] %v3162_v31  ;;  %v2159_v57 = vadd.f32 %v2158_v20, %v1854_v56 }
 0x313   :  { %3483 = vst [vmem:[%s5879_s4 + $0x168] sm:$0xff] %v3162_v31 }
 0x314   :  { %v2888_v14 = vpop.f32.mrf.mxu0  ;;  %v2524_v61 = vadd.f32 %v2523_v55, %v2159_v57  ;;  %v3169_v38 = vpop.f32.mrf.mxu1  ;;  %v6396_v57 = vld [vmem:[#allocation26_spill] sm:$0xff] }
 0x316   :  { %v2889_v62 = vadd.f32 %v2888_v14, %v2524_v61  ;;  %2242 = vmatmul.f32.gmra.mxu2 %v6379_v23  ;;  %2630 = vmatmul.f32.gmra.mxu3 %v6383_v40 }
 0x317   :  { %2951 = vmatmul.f32.gmra.mxu0 %v6381_v19  ;;  %3232 = vmatmul.f32.gmra.mxu1 %v6384_v32 }
 0x318   :  { %v3166_v44 = vadd.f32 %v3165_v28, %v2889_v62 }
 0x319   :  { %v2163_v52 = vpop.f32.mrf.mxu2  ;;  %v2535_v63 = vpop.f32.mrf.mxu3 }
 0x31a   :  { %3351 = vst [vmem:[%s5879_s4 + $0x170] sm:$0xff] %v3166_v44  ;;  %v2164_v13 = vadd.f32 %v2163_v52, %v1858_v42  ;;  %v1878_v52 = vadd.f32 %v5093_v50, %v5102_v11  ;;  %v6400_v50 = vld [vmem:[#allocation33_spill] sm:$0xff] }
 0x31b   :  { %3484 = vst [vmem:[%s5879_s4 + $0x178] sm:$0xff] %v3166_v44  ;;  %v6399_v44 = vld [vmem:[#allocation28_spill] sm:$0xff]  ;;  %v6401_v11 = vand.u32 4294901760, %v6400_v50 }
 0x31c   :  { %v2892_v59 = vpop.f32.mrf.mxu0  ;;  %v2530_v1 = vadd.f32 %v2529_v47, %v2164_v13  ;;  %v3173_v34 = vpop.f32.mrf.mxu1  ;;  %v1874_v47 = vadd.f32 %v5080_v51, %v5091_v5  ;;  %v6397_v51 = vld [vmem:[#allocation31_spill] sm:$0xff] }
 0x31d   :  { %v6398_v5 = vand.u32 4294901760, %v6397_v51 }
 0x31e   :  { %v2893_v9 = vadd.f32 %v2892_v59, %v2530_v1  ;;  %2247 = vmatmul.f32.gmra.mxu2 %v6382_v7  ;;  %2636 = vmatmul.f32.gmra.mxu3 %v6386_v26 }
 0x31f   :  { %2955 = vmatmul.f32.gmra.mxu0 %v6384_v32  ;;  %3236 = vmatmul.f32.gmra.mxu1 %v6387_v33 }
 0x320   :  { %v3170_v10 = vadd.f32 %v3169_v38, %v2893_v9 }
 0x321   :  { %v2168_v6 = vpop.f32.mrf.mxu2  ;;  %v2541_v49 = vpop.f32.mrf.mxu3 }
 0x322   :  { %3352 = vst [vmem:[%s5879_s4 + $0x180] sm:$0xff] %v3170_v10  ;;  %v2169_v29 = vadd.f32 %v2168_v6, %v1862_v8  ;;  %v1882_v8 = vadd.f32 %v5104_v43, %v5113_v48  ;;  %v6403_v43 = vld [vmem:[#allocation35_spill] sm:$0xff] }
 0x323   :  { %3485 = vst [vmem:[%s5879_s4 + $0x188] sm:$0xff] %v3170_v10  ;;  %v6404_v48 = vand.u32 4294901760, %v6403_v43 }
 0x324   :  { %v2896_v60 = vpop.f32.mrf.mxu0  ;;  %v2536_v58 = vadd.f32 %v2535_v63, %v2169_v29  ;;  %v3177_v15 = vpop.f32.mrf.mxu1 }
 0x326   :  { %v2897_v2 = vadd.f32 %v2896_v60, %v2536_v58  ;;  %2252 = vmatmul.f32.gmra.mxu2 %v6385_v4  ;;  %2642 = vmatmul.f32.gmra.mxu3 %v6389_v25  ;;  %v1886_v25 = vadd.f32 %v5115_v12, %v5124_v41  ;;  %v6406_v12 = vld [vmem:[#allocation37_spill] sm:$0xff] }
 0x327   :  { %2959 = vmatmul.f32.gmra.mxu0 %v6387_v33  ;;  %3240 = vmatmul.f32.gmra.mxu1 %v6390_v46  ;;  %v6402_v33 = vld [vmem:[#allocation30_spill] sm:$0xff]  ;;  %v6407_v41 = vand.u32 4294901760, %v6406_v12 }
 0x328   :  { %v3174_v36 = vadd.f32 %v3173_v34, %v2897_v2 }
 0x329   :  { %v2173_v30 = vpop.f32.mrf.mxu2  ;;  %v2547_v21 = vpop.f32.mrf.mxu3 }
 0x32a   :  { %3353 = vst [vmem:[%s5879_s4 + $0x190] sm:$0xff] %v3174_v36  ;;  %v2174_v54 = vadd.f32 %v2173_v30, %v1866_v3 }
 0x32b   :  { %3486 = vst [vmem:[%s5879_s4 + $0x198] sm:$0xff] %v3174_v36 }
 0x32c   :  { %v2900_v24 = vpop.f32.mrf.mxu0  ;;  %v2542_v35 = vadd.f32 %v2541_v49, %v2174_v54  ;;  %v3181_v27 = vpop.f32.mrf.mxu1 }
 0x32e   :  { %v2901_v55 = vadd.f32 %v2900_v24, %v2542_v35  ;;  %2257 = vmatmul.f32.gmra.mxu2 %v6388_v37  ;;  %2648 = vmatmul.f32.gmra.mxu3 %v6392_v17  ;;  %v6405_v37 = vld [vmem:[#allocation32_spill] sm:$0xff] }
 0x32f   :  { %2963 = vmatmul.f32.gmra.mxu0 %v6390_v46  ;;  %3244 = vmatmul.f32.gmra.mxu1 %v6393_v0 }
 0x330   :  { %v3178_v28 = vadd.f32 %v3177_v15, %v2901_v55  ;;  %v6409_v55 = vld [vmem:[#allocation41_spill] sm:$0xff] }
 0x331   :  { %v2178_v45 = vpop.f32.mrf.mxu2  ;;  %v2553_v22 = vpop.f32.mrf.mxu3 }
 0x332   :  { %3354 = vst [vmem:[%s5879_s4 + $0x1a0] sm:$0xff] %v3178_v28  ;;  %v2179_v23 = vadd.f32 %v2178_v45, %v1870_v18 }
 0x333   :  { %3487 = vst [vmem:[%s5879_s4 + $0x1a8] sm:$0xff] %v3178_v28 }
 0x334   :  { %v2904_v19 = vpop.f32.mrf.mxu0  ;;  %v2548_v56 = vadd.f32 %v2547_v21, %v2179_v23  ;;  %v3185_v31 = vpop.f32.mrf.mxu1 }
 0x336   :  { %v2905_v20 = vadd.f32 %v2904_v19, %v2548_v56  ;;  %2262 = vmatmul.f32.gmra.mxu2 %v6391_v53  ;;  %2654 = vmatmul.f32.gmra.mxu3 %v6395_v39  ;;  %v6410_v53 = vld [vmem:[#allocation38_spill] sm:$0xff] }
 0x337   :  { %2967 = vmatmul.f32.gmra.mxu0 %v6393_v0  ;;  %3248 = vmatmul.f32.gmra.mxu1 %v6396_v57  ;;  %v1890_v17 = vadd.f32 %v6410_v53, %v6409_v55  ;;  %v6414_v39 = vld [vmem:[#allocation46_spill] sm:$0xff] }
 0x338   :  { %v3182_v14 = vadd.f32 %v3181_v27, %v2905_v20  ;;  %v6408_v27 = vld [vmem:[#allocation34_spill] sm:$0xff] }
 0x339   :  { %v2183_v61 = vpop.f32.mrf.mxu2  ;;  %v2559_v62 = vpop.f32.mrf.mxu3 }
 0x33a   :  { %3355 = vst [vmem:[%s5879_s4 + $0x1b0] sm:$0xff] %v3182_v14  ;;  %v2184_v38 = vadd.f32 %v2183_v61, %v1874_v47 }
 0x33b   :  { %3488 = vst [vmem:[%s5879_s4 + $0x1b8] sm:$0xff] %v3182_v14 }
 0x33c   :  { %v2908_v7 = vpop.f32.mrf.mxu0  ;;  %v2554_v40 = vadd.f32 %v2553_v22, %v2184_v38  ;;  %v3189_v32 = vpop.f32.mrf.mxu1 }
 0x33e   :  { %v2909_v42 = vadd.f32 %v2908_v7, %v2554_v40  ;;  %2267 = vmatmul.f32.gmra.mxu2 %v6394_v16  ;;  %2660 = vmatmul.f32.gmra.mxu3 %v6398_v5  ;;  %v6413_v16 = vld [vmem:[#allocation36_spill] sm:$0xff] }
 0x33f   :  { %2971 = vmatmul.f32.gmra.mxu0 %v6396_v57  ;;  %3252 = vmatmul.f32.gmra.mxu1 %v6399_v44  ;;  %v6415_v57 = vld [vmem:[#allocation42_spill] sm:$0xff] }
 0x340   :  { %v3186_v13 = vadd.f32 %v3185_v31, %v2909_v42  ;;  %v6411_v31 = vld [vmem:[#allocation40_spill] sm:$0xff]  ;;  %v1894_v47 = vadd.f32 %v6415_v57, %v6414_v39 }
 0x341   :  { %v2188_v63 = vpop.f32.mrf.mxu2  ;;  %v2565_v1 = vpop.f32.mrf.mxu3  ;;  %v6412_v20 = vand.u32 4294901760, %v6411_v31 }
 0x342   :  { %3356 = vst [vmem:[%s5879_s4 + $0x1c0] sm:$0xff] %v3186_v13  ;;  %v2189_v59 = vadd.f32 %v2188_v63, %v1878_v52  ;;  %v6419_v52 = vld [vmem:[#allocation52_spill] sm:$0xff] }
 0x343   :  { %3489 = vst [vmem:[%s5879_s4 + $0x1c8] sm:$0xff] %v3186_v13  ;;  %v6420_v13 = vld [vmem:[#allocation48_spill] sm:$0xff] }
 0x344   :  { %v2912_v34 = vpop.f32.mrf.mxu0  ;;  %v2560_v9 = vadd.f32 %v2559_v62, %v2189_v59  ;;  %v3193_v4 = vpop.f32.mrf.mxu1  ;;  %v1898_v63 = vadd.f32 %v6420_v13, %v6419_v52 }
 0x346   :  { %v2913_v26 = vadd.f32 %v2912_v34, %v2560_v9  ;;  %2272 = vmatmul.f32.gmra.mxu2 %v6397_v51  ;;  %2666 = vmatmul.f32.gmra.mxu3 %v6401_v11  ;;  %v6416_v51 = vld [vmem:[#allocation45_spill] sm:$0xff] }
 0x347   :  { %2975 = vmatmul.f32.gmra.mxu0 %v6399_v44  ;;  %3256 = vmatmul.f32.gmra.mxu1 %v6402_v33  ;;  %v6417_v5 = vand.u32 4294901760, %v6416_v51  ;;  %v6418_v44 = vld [vmem:[#allocation39_spill] sm:$0xff] }
 0x348   :  { %v3190_v10 = vadd.f32 %v3189_v32, %v2913_v26 }
 0x349   :  { %v2193_v6 = vpop.f32.mrf.mxu2  ;;  %v2571_v49 = vpop.f32.mrf.mxu3 }
 0x34a   :  { %3357 = vst [vmem:[%s5879_s4 + $0x1d0] sm:$0xff] %v3190_v10  ;;  %v2194_v29 = vadd.f32 %v2193_v6, %v1882_v8  ;;  %v6424_v6 = vld [vmem:[#allocation58_spill] sm:$0xff] }
 0x34b   :  { %3490 = vst [vmem:[%s5879_s4 + $0x1d8] sm:$0xff] %v3190_v10  ;;  %v6423_v10 = vld [vmem:[#allocation44_spill] sm:$0xff] }
 0x34c   :  { %v2916_v60 = vpop.f32.mrf.mxu0  ;;  %v2566_v58 = vadd.f32 %v2565_v1, %v2194_v29  ;;  %v3197_v15 = vpop.f32.mrf.mxu1  ;;  %v6425_v29 = vld [vmem:[#allocation53_spill] sm:$0xff] }
 0x34e   :  { %v2917_v2 = vadd.f32 %v2916_v60, %v2566_v58  ;;  %2277 = vmatmul.f32.gmra.mxu2 %v6400_v50  ;;  %2672 = vmatmul.f32.gmra.mxu3 %v6404_v48 }
 0x34f   :  { %2979 = vmatmul.f32.gmra.mxu0 %v6402_v33  ;;  %3260 = vmatmul.f32.gmra.mxu1 %v6405_v37  ;;  %v6421_v33 = vld [vmem:[#allocation49_spill] sm:$0xff] }
 0x350   :  { %v3194_v46 = vadd.f32 %v3193_v4, %v2917_v2  ;;  %v6422_v8 = vand.u32 4294901760, %v6421_v33 }
 0x351   :  { %v2198_v3 = vpop.f32.mrf.mxu2  ;;  %v2577_v30 = vpop.f32.mrf.mxu3 }
 0x352   :  { %3358 = vst [vmem:[%s5879_s4 + $0x1e0] sm:$0xff] %v3194_v46  ;;  %v2199_v36 = vadd.f32 %v2198_v3, %v1886_v25 }
 0x353   :  { %3491 = vst [vmem:[%s5879_s4 + $0x1e8] sm:$0xff] %v3194_v46  ;;  %v6426_v46 = vld [vmem:[#allocation56_spill] sm:$0xff] }
 0x354   :  { %v2920_v54 = vpop.f32.mrf.mxu0  ;;  %v2572_v21 = vadd.f32 %v2571_v49, %v2199_v36  ;;  %v3201_v24 = vpop.f32.mrf.mxu1  ;;  %v1902_v49 = vadd.f32 %v6425_v29, %v6424_v6  ;;  %v6427_v3 = vand.u32 4294901760, %v6426_v46  ;;  %v6428_v36 = vld [vmem:[#allocation47_spill] sm:$0xff] }
 0x356   :  { %v2921_v35 = vadd.f32 %v2920_v54, %v2572_v21  ;;  %2282 = vmatmul.f32.gmra.mxu2 %v6403_v43  ;;  %2678 = vmatmul.f32.gmra.mxu3 %v6407_v41  ;;  %v6430_v54 = vld [vmem:[#allocation59_spill] sm:$0xff] }
 0x357   :  { %2983 = vmatmul.f32.gmra.mxu0 %v6405_v37  ;;  %3264 = vmatmul.f32.gmra.mxu1 %v6408_v27 }
 0x358   :  { %v3198_v0 = vadd.f32 %v3197_v15, %v2921_v35 }
 0x359   :  { %v2203_v18 = vpop.f32.mrf.mxu2  ;;  %v2583_v45 = vpop.f32.mrf.mxu3 }
 0x35a   :  { %3359 = vst [vmem:[%s5879_s4 + $0x1f0] sm:$0xff] %v3198_v0  ;;  %v2204_v28 = vadd.f32 %v2203_v18, %v1890_v17 }
 0x35b   :  { %3492 = vst [vmem:[%s5879_s4 + $0x1f8] sm:$0xff] %v3198_v0  ;;  %v6431_v0 = vld [vmem:[#allocation66_spill] sm:$0xff] }
 0x35c   :  { %v2924_v23 = vpop.f32.mrf.mxu0  ;;  %v2578_v22 = vadd.f32 %v2577_v30, %v2204_v28  ;;  %v3205_v19 = vpop.f32.mrf.mxu1  ;;  %v6429_v30 = vld [vmem:[#allocation64_spill] sm:$0xff]  ;;  %v6432_v18 = vand.u32 4294901760, %v6431_v0  ;;  %v6433_v28 = vld [vmem:[#allocation54_spill] sm:$0xff] }
 0x35d   :  { %v1906_v21 = vadd.f32 %v6430_v54, %v6429_v30 }
 0x35e   :  { %v2925_v56 = vadd.f32 %v2924_v23, %v2578_v22  ;;  %2287 = vmatmul.f32.gmra.mxu2 %v6406_v12  ;;  %2684 = vmatmul.f32.gmra.mxu3 %v6412_v20  ;;  %v6435_v23 = vld [vmem:[#allocation67_spill] sm:$0xff] }
 0x35f   :  { %2987 = vmatmul.f32.gmra.mxu0 %v6408_v27  ;;  %3268 = vmatmul.f32.gmra.mxu1 %v6413_v16 }
 0x360   :  { %v3202_v14 = vadd.f32 %v3201_v24, %v2925_v56 }
 0x361   :  { %v2208_v61 = vpop.f32.mrf.mxu2  ;;  %v2589_v62 = vpop.f32.mrf.mxu3 }
 0x362   :  { %3360 = vst [vmem:[%s5879_s4 + $0x200] sm:$0xff] %v3202_v14  ;;  %v2209_v38 = vadd.f32 %v2208_v61, %v1894_v47 }
 0x363   :  { %3493 = vst [vmem:[%s5879_s4 + $0x208] sm:$0xff] %v3202_v14  ;;  %v6436_v14 = vld [vmem:[#allocation71_spill] sm:$0xff] }
 0x364   :  { %v2928_v7 = vpop.f32.mrf.mxu0  ;;  %v2584_v40 = vadd.f32 %v2583_v45, %v2209_v38  ;;  %v3209_v32 = vpop.f32.mrf.mxu1  ;;  %v6434_v45 = vld [vmem:[#allocation72_spill] sm:$0xff]  ;;  %v6437_v61 = vand.u32 4294901760, %v6436_v14  ;;  %v6438_v38 = vld [vmem:[#allocation63_spill] sm:$0xff] }
 0x365   :  { %v1910_v22 = vadd.f32 %v6435_v23, %v6434_v45 }
 0x366   :  { %v2929_v42 = vadd.f32 %v2928_v7, %v2584_v40  ;;  %2292 = vmatmul.f32.gmra.mxu2 %v6411_v31  ;;  %2690 = vmatmul.f32.gmra.mxu3 %v6417_v5  ;;  %v6440_v7 = vld [vmem:[#allocation73_spill] sm:$0xff] }
 0x367   :  { %2991 = vmatmul.f32.gmra.mxu0 %v6413_v16  ;;  %3272 = vmatmul.f32.gmra.mxu1 %v6418_v44 }
 0x368   :  { %v3206_v59 = vadd.f32 %v3205_v19, %v2929_v42 }
 0x369   :  { %v2213_v1 = vpop.f32.mrf.mxu2  ;;  %v2595_v9 = vpop.f32.mrf.mxu3 }
 0x36a   :  { %3361 = vst [vmem:[%s5879_s4 + $0x210] sm:$0xff] %v3206_v59  ;;  %v2214_v34 = vadd.f32 %v2213_v1, %v1898_v63 }
 0x36b   :  { %3494 = vst [vmem:[%s5879_s4 + $0x218] sm:$0xff] %v3206_v59  ;;  %v6441_v59 = vld [vmem:[#allocation81_spill] sm:$0xff] }
 0x36c   :  { %v2932_v4 = vpop.f32.mrf.mxu0  ;;  %v2590_v26 = vadd.f32 %v2589_v62, %v2214_v34  ;;  %v3213_v50 = vpop.f32.mrf.mxu1  ;;  %v6439_v62 = vld [vmem:[#allocation78_spill] sm:$0xff]  ;;  %v6442_v1 = vand.u32 4294901760, %v6441_v59 }
 0x36d   :  { %v1914_v40 = vadd.f32 %v6440_v7, %v6439_v62  ;;  %v6443_v34 = vld [vmem:[#allocation70_spill] sm:$0xff] }
 0x36e   :  { %v2933_v11 = vadd.f32 %v2932_v4, %v2590_v26  ;;  %2297 = vmatmul.f32.gmra.mxu2 %v6416_v51  ;;  %2696 = vmatmul.f32.gmra.mxu3 %v6422_v8  ;;  %v6445_v4 = vld [vmem:[#allocation79_spill] sm:$0xff] }
 0x36f   :  { %2995 = vmatmul.f32.gmra.mxu0 %v6418_v44  ;;  %3276 = vmatmul.f32.gmra.mxu1 %v6423_v10 }
 0x370   :  { %v3210_v60 = vadd.f32 %v3209_v32, %v2933_v11 }
 0x371   :  { %v2218_v58 = vpop.f32.mrf.mxu2  ;;  %v2601_v2 = vpop.f32.mrf.mxu3 }
 0x372   :  { %3362 = vst [vmem:[%s5879_s4 + $0x220] sm:$0xff] %v3210_v60  ;;  %v2219_v15 = vadd.f32 %v2218_v58, %v1902_v49 }
 0x373   :  { %3495 = vst [vmem:[%s5879_s4 + $0x228] sm:$0xff] %v3210_v60  ;;  %v6446_v60 = vld [vmem:[#allocation93_spill] sm:$0xff] }
 0x374   :  { %v2936_v43 = vpop.f32.mrf.mxu0  ;;  %v2596_v48 = vadd.f32 %v2595_v9, %v2219_v15  ;;  %v3217_v37 = vpop.f32.mrf.mxu1  ;;  %v6444_v9 = vld [vmem:[#allocation86_spill] sm:$0xff]  ;;  %v6447_v58 = vand.u32 4294901760, %v6446_v60  ;;  %v6448_v15 = vld [vmem:[#allocation80_spill] sm:$0xff] }
 0x375   :  { %v1918_v26 = vadd.f32 %v6445_v4, %v6444_v9 }
 0x376   :  { %v2937_v25 = vadd.f32 %v2936_v43, %v2596_v48  ;;  %2302 = vmatmul.f32.gmra.mxu2 %v6421_v33  ;;  %2702 = vmatmul.f32.gmra.mxu3 %v6427_v3  ;;  %v6450_v43 = vld [vmem:[#allocation87_spill] sm:$0xff] }
 0x377   :  { %2999 = vmatmul.f32.gmra.mxu0 %v6423_v10  ;;  %3280 = vmatmul.f32.gmra.mxu1 %v6428_v36 }
 0x378   :  { %v3214_v24 = vadd.f32 %v3213_v50, %v2937_v25 }
 0x379   :  { %v2223_v35 = vpop.f32.mrf.mxu2  ;;  %v2607_v41 = vpop.f32.mrf.mxu3 }
 0x37a   :  { %3363 = vst [vmem:[%s5879_s4 + $0x230] sm:$0xff] %v3214_v24  ;;  %v2224_v12 = vadd.f32 %v2223_v35, %v1906_v21 }
 0x37b   :  { %3496 = vst [vmem:[%s5879_s4 + $0x238] sm:$0xff] %v3214_v24  ;;  %v6451_v24 = vld [vmem:[#allocation98_spill] sm:$0xff] }
 0x37c   :  { %v2940_v27 = vpop.f32.mrf.mxu0  ;;  %v2602_v55 = vadd.f32 %v2601_v2, %v2224_v12  ;;  %v3221_v53 = vpop.f32.mrf.mxu1  ;;  %v6449_v2 = vld [vmem:[#allocation94_spill] sm:$0xff]  ;;  %v6452_v35 = vand.u32 4294901760, %v6451_v24  ;;  %v6453_v12 = vld [vmem:[#allocation89_spill] sm:$0xff] }
 0x37d   :  { %v1922_v48 = vadd.f32 %v6450_v43, %v6449_v2 }
 0x37e   :  { %v2941_v17 = vadd.f32 %v2940_v27, %v2602_v55  ;;  %2307 = vmatmul.f32.gmra.mxu2 %v6426_v46  ;;  %2708 = vmatmul.f32.gmra.mxu3 %v6432_v18  ;;  %v6455_v27 = vld [vmem:[#allocation95_spill] sm:$0xff] }
 0x37f   :  { %3003 = vmatmul.f32.gmra.mxu0 %v6428_v36  ;;  %3284 = vmatmul.f32.gmra.mxu1 %v6433_v28 }
 0x380   :  { %v3218_v19 = vadd.f32 %v3217_v37, %v2941_v17 }
 0x381   :  { %v2228_v56 = vpop.f32.mrf.mxu2  ;;  %v2613_v20 = vpop.f32.mrf.mxu3 }
 0x382   :  { %3364 = vst [vmem:[%s5879_s4 + $0x240] sm:$0xff] %v3218_v19  ;;  %v2229_v31 = vadd.f32 %v2228_v56, %v1910_v22 }
 0x383   :  { %3497 = vst [vmem:[%s5879_s4 + $0x248] sm:$0xff] %v3218_v19  ;;  %v6456_v19 = vld [vmem:[#allocation108_spill] sm:$0xff] }
 0x384   :  { %v2944_v16 = vpop.f32.mrf.mxu0  ;;  %v2608_v39 = vadd.f32 %v2607_v41, %v2229_v31  ;;  %v3225_v57 = vpop.f32.mrf.mxu1  ;;  %v6454_v41 = vld [vmem:[#allocation100_spill] sm:$0xff]  ;;  %v6457_v56 = vand.u32 4294901760, %v6456_v19 }
 0x385   :  { %v1926_v55 = vadd.f32 %v6455_v27, %v6454_v41  ;;  %v6458_v31 = vld [vmem:[#allocation96_spill] sm:$0xff] }
 0x386   :  { %v2945_v47 = vadd.f32 %v2944_v16, %v2608_v39  ;;  %2312 = vmatmul.f32.gmra.mxu2 %v6431_v0  ;;  %2714 = vmatmul.f32.gmra.mxu3 %v6437_v61  ;;  %v6460_v16 = vld [vmem:[#allocation102_spill] sm:$0xff] }
 0x387   :  { %3007 = vmatmul.f32.gmra.mxu0 %v6433_v28  ;;  %3288 = vmatmul.f32.gmra.mxu1 %v6438_v38 }
 0x388   :  { %v3222_v32 = vadd.f32 %v3221_v53, %v2945_v47 }
 0x389   :  { %v2233_v42 = vpop.f32.mrf.mxu2  ;;  %v2619_v5 = vpop.f32.mrf.mxu3 }
 0x38a   :  { %3365 = vst [vmem:[%s5879_s4 + $0x250] sm:$0xff] %v3222_v32  ;;  %v2234_v51 = vadd.f32 %v2233_v42, %v1914_v40 }
 0x38b   :  { %3498 = vst [vmem:[%s5879_s4 + $0x258] sm:$0xff] %v3222_v32  ;;  %v6461_v32 = vld [vmem:[#allocation118_spill] sm:$0xff] }
 0x38c   :  { %v2948_v44 = vpop.f32.mrf.mxu0  ;;  %v2614_v52 = vadd.f32 %v2613_v20, %v2234_v51  ;;  %v3229_v13 = vpop.f32.mrf.mxu1  ;;  %v6459_v20 = vld [vmem:[#allocation106_spill] sm:$0xff]  ;;  %v6462_v42 = vand.u32 4294901760, %v6461_v32  ;;  %v6463_v51 = vld [vmem:[#allocation107_spill] sm:$0xff] }
 0x38d   :  { %v1930_v39 = vadd.f32 %v6460_v16, %v6459_v20 }
 0x38e   :  { %v2949_v63 = vadd.f32 %v2948_v44, %v2614_v52  ;;  %2317 = vmatmul.f32.gmra.mxu2 %v6436_v14  ;;  %2720 = vmatmul.f32.gmra.mxu3 %v6442_v1  ;;  %v6465_v44 = vld [vmem:[#allocation110_spill] sm:$0xff] }
 0x38f   :  { %3011 = vmatmul.f32.gmra.mxu0 %v6438_v38  ;;  %3292 = vmatmul.f32.gmra.mxu1 %v6443_v34 }
 0x390   :  { %v3226_v50 = vadd.f32 %v3225_v57, %v2949_v63 }
 0x391   :  { %v2238_v11 = vpop.f32.mrf.mxu2  ;;  %v2625_v8 = vpop.f32.mrf.mxu3 }
 0x392   :  { %3366 = vst [vmem:[%s5879_s4 + $0x260] sm:$0xff] %v3226_v50  ;;  %v2239_v33 = vadd.f32 %v2238_v11, %v1918_v26 }
 0x393   :  { %3499 = vst [vmem:[%s5879_s4 + $0x268] sm:$0xff] %v3226_v50  ;;  %v6466_v50 = vld [vmem:[#allocation124_spill] sm:$0xff] }
 0x394   :  { %v2952_v10 = vpop.f32.mrf.mxu0  ;;  %v2620_v6 = vadd.f32 %v2619_v5, %v2239_v33  ;;  %v3233_v29 = vpop.f32.mrf.mxu1  ;;  %v6464_v5 = vld [vmem:[#allocation113_spill] sm:$0xff]  ;;  %v6467_v11 = vand.u32 4294901760, %v6466_v50  ;;  %v6468_v33 = vld [vmem:[#allocation115_spill] sm:$0xff] }
 0x395   :  { %v1934_v52 = vadd.f32 %v6465_v44, %v6464_v5  ;;  %v6484_v44 = vld [vmem:[#allocation143_spill] sm:$0xff] }
 0x396   :  { %v2953_v49 = vadd.f32 %v2952_v10, %v2620_v6  ;;  %2322 = vmatmul.f32.gmra.mxu2 %v6441_v59  ;;  %2726 = vmatmul.f32.gmra.mxu3 %v6447_v58  ;;  %v6470_v10 = vld [vmem:[#allocation116_spill] sm:$0xff] }
 0x397   :  { %3015 = vmatmul.f32.gmra.mxu0 %v6443_v34  ;;  %3296 = vmatmul.f32.gmra.mxu1 %v6448_v15 }
 0x398   :  { %v3230_v37 = vadd.f32 %v3229_v13, %v2953_v49 }
 0x399   :  { %v2243_v25 = vpop.f32.mrf.mxu2  ;;  %v2631_v3 = vpop.f32.mrf.mxu3 }
 0x39a   :  { %3367 = vst [vmem:[%s5879_s4 + $0x270] sm:$0xff] %v3230_v37  ;;  %v2244_v46 = vadd.f32 %v2243_v25, %v1922_v48 }
 0x39b   :  { %3500 = vst [vmem:[%s5879_s4 + $0x278] sm:$0xff] %v3230_v37  ;;  %v6471_v37 = vld [vmem:[#allocation134_spill] sm:$0xff] }
 0x39c   :  { %v2956_v36 = vpop.f32.mrf.mxu0  ;;  %v2626_v30 = vadd.f32 %v2625_v8, %v2244_v46  ;;  %v3237_v54 = vpop.f32.mrf.mxu1  ;;  %v6469_v8 = vld [vmem:[#allocation121_spill] sm:$0xff]  ;;  %v6472_v25 = vand.u32 4294901760, %v6471_v37  ;;  %v6473_v46 = vld [vmem:[#allocation122_spill] sm:$0xff] }
 0x39d   :  { %v1938_v6 = vadd.f32 %v6470_v10, %v6469_v8 }
 0x39e   :  { %v2957_v21 = vadd.f32 %v2956_v36, %v2626_v30  ;;  %2327 = vmatmul.f32.gmra.mxu2 %v6446_v60  ;;  %2732 = vmatmul.f32.gmra.mxu3 %v6452_v35  ;;  %v6475_v36 = vld [vmem:[#allocation123_spill] sm:$0xff] }
 0x39f   :  { %3019 = vmatmul.f32.gmra.mxu0 %v6448_v15  ;;  %3300 = vmatmul.f32.gmra.mxu1 %v6453_v12 }
 0x3a0   :  { %v3234_v53 = vadd.f32 %v3233_v29, %v2957_v21 }
 0x3a1   :  { %v2248_v17 = vpop.f32.mrf.mxu2  ;;  %v2637_v18 = vpop.f32.mrf.mxu3 }
 0x3a2   :  { %3368 = vst [vmem:[%s5879_s4 + $0x280] sm:$0xff] %v3234_v53  ;;  %v2249_v0 = vadd.f32 %v2248_v17, %v1926_v55 }
 0x3a3   :  { %3501 = vst [vmem:[%s5879_s4 + $0x288] sm:$0xff] %v3234_v53  ;;  %v6476_v53 = vld [vmem:[#allocation141_spill] sm:$0xff] }
 0x3a4   :  { %v2960_v28 = vpop.f32.mrf.mxu0  ;;  %v2632_v45 = vadd.f32 %v2631_v3, %v2249_v0  ;;  %v3241_v23 = vpop.f32.mrf.mxu1  ;;  %v6474_v3 = vld [vmem:[#allocation128_spill] sm:$0xff]  ;;  %v6477_v17 = vand.u32 4294901760, %v6476_v53  ;;  %v6478_v0 = vld [vmem:[#allocation133_spill] sm:$0xff] }
 0x3a5   :  { %v1942_v30 = vadd.f32 %v6475_v36, %v6474_v3 }
 0x3a6   :  { %v2961_v22 = vadd.f32 %v2960_v28, %v2632_v45  ;;  %2332 = vmatmul.f32.gmra.mxu2 %v6451_v24  ;;  %2738 = vmatmul.f32.gmra.mxu3 %v6457_v56  ;;  %v6480_v28 = vld [vmem:[#allocation130_spill] sm:$0xff] }
 0x3a7   :  { %3023 = vmatmul.f32.gmra.mxu0 %v6453_v12  ;;  %3304 = vmatmul.f32.gmra.mxu1 %v6458_v31 }
 0x3a8   :  { %v3238_v57 = vadd.f32 %v3237_v54, %v2961_v22 }
 0x3a9   :  { %v2253_v47 = vpop.f32.mrf.mxu2  ;;  %v2643_v61 = vpop.f32.mrf.mxu3 }
 0x3aa   :  { %3369 = vst [vmem:[%s5879_s4 + $0x290] sm:$0xff] %v3238_v57  ;;  %v2254_v14 = vadd.f32 %v2253_v47, %v1930_v39  ;;  %v6482_v47 = vld [vmem:[#allocation140_spill] sm:$0xff] }
 0x3ab   :  { %3502 = vst [vmem:[%s5879_s4 + $0x298] sm:$0xff] %v3238_v57  ;;  %v6481_v57 = vld [vmem:[#allocation139_spill] sm:$0xff] }
 0x3ac   :  { %v2964_v38 = vpop.f32.mrf.mxu0  ;;  %v2638_v62 = vadd.f32 %v2637_v18, %v2254_v14  ;;  %v3245_v7 = vpop.f32.mrf.mxu1  ;;  %v6479_v18 = vld [vmem:[#allocation136_spill] sm:$0xff]  ;;  %v6483_v14 = vld [vmem:[#allocation137_spill] sm:$0xff] }
 0x3ad   :  { %v1946_v45 = vadd.f32 %v6480_v28, %v6479_v18 }
 0x3ae   :  { %v2965_v40 = vadd.f32 %v2964_v38, %v2638_v62  ;;  %2337 = vmatmul.f32.gmra.mxu2 %v6456_v19  ;;  %2744 = vmatmul.f32.gmra.mxu3 %v6462_v42 }
 0x3af   :  { %3027 = vmatmul.f32.gmra.mxu0 %v6458_v31  ;;  %3308 = vmatmul.f32.gmra.mxu1 %v6463_v51 }
 0x3b0   :  { %v3242_v13 = vadd.f32 %v3241_v23, %v2965_v40 }
 0x3b1   :  { %v2258_v63 = vpop.f32.mrf.mxu2  ;;  %v2649_v1 = vpop.f32.mrf.mxu3 }
 0x3b2   :  { %3370 = vst [vmem:[%s5879_s4 + $0x2a0] sm:$0xff] %v3242_v13  ;;  %v2259_v59 = vadd.f32 %v2258_v63, %v1934_v52  ;;  %v6485_v52 = vld [vmem:[#allocation142_spill] sm:$0xff] }
 0x3b3   :  { %3503 = vst [vmem:[%s5879_s4 + $0x2a8] sm:$0xff] %v3242_v13  ;;  %v1954_v13 = vadd.f32 %v6485_v52, %v6484_v44 }
 0x3b4   :  { %v2968_v34 = vpop.f32.mrf.mxu0  ;;  %v2644_v9 = vadd.f32 %v2643_v61, %v2259_v59  ;;  %v3249_v4 = vpop.f32.mrf.mxu1  ;;  %v1950_v61 = vadd.f32 %v6483_v14, %v6482_v47 }
 0x3b6   :  { %v2969_v26 = vadd.f32 %v2968_v34, %v2644_v9  ;;  %2342 = vmatmul.f32.gmra.mxu2 %v6461_v32  ;;  %2750 = vmatmul.f32.gmra.mxu3 %v6467_v11  ;;  %v6486_v11 = vld [vmem:[#allocation145_spill] sm:$0xff] }
 0x3b7   :  { %3031 = vmatmul.f32.gmra.mxu0 %v6463_v51  ;;  %3312 = vmatmul.f32.gmra.mxu1 %v6468_v33 }
 0x3b8   :  { %v3246_v29 = vadd.f32 %v3245_v7, %v2969_v26 }
 0x3b9   :  { %v2263_v49 = vpop.f32.mrf.mxu2  ;;  %v2655_v58 = vpop.f32.mrf.mxu3 }
 0x3ba   :  { %3371 = vst [vmem:[%s5879_s4 + $0x2b0] sm:$0xff] %v3246_v29  ;;  %v2264_v60 = vadd.f32 %v2263_v49, %v1938_v6 }
 0x3bb   :  { %3504 = vst [vmem:[%s5879_s4 + $0x2b8] sm:$0xff] %v3246_v29 }
 0x3bc   :  { %v2972_v15 = vpop.f32.mrf.mxu0  ;;  %v2650_v2 = vadd.f32 %v2649_v1, %v2264_v60  ;;  %v3253_v43 = vpop.f32.mrf.mxu1 }
 0x3be   :  { %v2973_v48 = vadd.f32 %v2972_v15, %v2650_v2  ;;  %2347 = vmatmul.f32.gmra.mxu2 %v6466_v50  ;;  %2756 = vmatmul.f32.gmra.mxu3 %v6472_v25 }
 0x3bf   :  { %3035 = vmatmul.f32.gmra.mxu0 %v6468_v33  ;;  %3316 = vmatmul.f32.gmra.mxu1 %v6473_v46  ;;  %v6487_v33 = vld [vmem:[#allocation144_spill] sm:$0xff] }
 0x3c0   :  { %v3250_v54 = vadd.f32 %v3249_v4, %v2973_v48  ;;  %v1958_v8 = vadd.f32 %v6487_v33, %v6486_v11  ;;  %v6489_v48 = vld [vmem:[#allocation146_spill] sm:$0xff] }
 0x3c1   :  { %v2268_v21 = vpop.f32.mrf.mxu2  ;;  %v2661_v35 = vpop.f32.mrf.mxu3 }
 0x3c2   :  { %3372 = vst [vmem:[%s5879_s4 + $0x2c0] sm:$0xff] %v3250_v54  ;;  %v2269_v24 = vadd.f32 %v2268_v21, %v1942_v30 }
 0x3c3   :  { %3505 = vst [vmem:[%s5879_s4 + $0x2c8] sm:$0xff] %v3250_v54 }
 0x3c4   :  { %v2976_v12 = vpop.f32.mrf.mxu0  ;;  %v2656_v41 = vadd.f32 %v2655_v58, %v2269_v24  ;;  %v3257_v27 = vpop.f32.mrf.mxu1 }
 0x3c6   :  { %v2977_v55 = vadd.f32 %v2976_v12, %v2656_v41  ;;  %2352 = vmatmul.f32.gmra.mxu2 %v6471_v37  ;;  %2762 = vmatmul.f32.gmra.mxu3 %v6477_v17  ;;  %v6491_v12 = vld [vmem:[#allocation148_spill] sm:$0xff] }
 0x3c7   :  { %3039 = vmatmul.f32.gmra.mxu0 %v6473_v46  ;;  %3320 = vmatmul.f32.gmra.mxu1 %v6478_v0 }
 0x3c8   :  { %v3254_v23 = vadd.f32 %v3253_v43, %v2977_v55  ;;  %v6488_v43 = vld [vmem:[#allocation147_spill] sm:$0xff] }
 0x3c9   :  { %v2273_v22 = vpop.f32.mrf.mxu2  ;;  %v2667_v56 = vpop.f32.mrf.mxu3  ;;  %v1962_v37 = vadd.f32 %v6489_v48, %v6488_v43 }
 0x3ca   :  { %3373 = vst [vmem:[%s5879_s4 + $0x2d0] sm:$0xff] %v3254_v23  ;;  %v2274_v19 = vadd.f32 %v2273_v22, %v1946_v45  ;;  %v6493_v22 = vld [vmem:[#allocation150_spill] sm:$0xff] }
 0x3cb   :  { %3506 = vst [vmem:[%s5879_s4 + $0x2d8] sm:$0xff] %v3254_v23  ;;  %v6492_v23 = vld [vmem:[#allocation151_spill] sm:$0xff] }
 0x3cc   :  { %v2980_v31 = vpop.f32.mrf.mxu0  ;;  %v2662_v20 = vadd.f32 %v2661_v35, %v2274_v19  ;;  %v3261_v16 = vpop.f32.mrf.mxu1  ;;  %v6490_v35 = vld [vmem:[#allocation149_spill] sm:$0xff]  ;;  %v1970_v19 = vadd.f32 %v6493_v22, %v6492_v23 }
 0x3cd   :  { %v1966_v41 = vadd.f32 %v6491_v12, %v6490_v35 }
 0x3ce   :  { %v2981_v39 = vadd.f32 %v2980_v31, %v2662_v20  ;;  %2357 = vmatmul.f32.gmra.mxu2 %v6476_v53 }
 0x3cf   :  { %3043 = vmatmul.f32.gmra.mxu0 %v6478_v0  ;;  %3324 = vmatmul.f32.gmra.mxu1 %v6481_v57 }
 0x3d0   :  { %v3258_v38 = vadd.f32 %v3257_v27, %v2981_v39 }
 0x3d1   :  { %v2278_v62 = vpop.f32.mrf.mxu2  ;;  %v2673_v40 = vpop.f32.mrf.mxu3 }
 0x3d2   :  { %3374 = vst [vmem:[%s5879_s4 + $0x2e0] sm:$0xff] %v3258_v38  ;;  %v2279_v7 = vadd.f32 %v2278_v62, %v1950_v61  ;;  %v6494_v61 = vld [vmem:[#allocation153_spill] sm:$0xff] }
 0x3d3   :  { %3507 = vst [vmem:[%s5879_s4 + $0x2e8] sm:$0xff] %v3258_v38  ;;  %v6495_v38 = vld [vmem:[#allocation152_spill] sm:$0xff] }
 0x3d4   :  { %v2984_v32 = vpop.f32.mrf.mxu0  ;;  %v2668_v42 = vadd.f32 %v2667_v56, %v2279_v7  ;;  %v3265_v51 = vpop.f32.mrf.mxu1  ;;  %v1974_v62 = vadd.f32 %v6495_v38, %v6494_v61 }
 0x3d6   :  { %v2985_v5 = vadd.f32 %v2984_v32, %v2668_v42 }
 0x3d7   :  { %3047 = vmatmul.f32.gmra.mxu0 %v6481_v57 }
 0x3d8   :  { %v3262_v63 = vadd.f32 %v3261_v16, %v2985_v5 }
 0x3d9   :  { %v2283_v59 = vpop.f32.mrf.mxu2  ;;  %v2679_v34 = vpop.f32.mrf.mxu3 }
 0x3da   :  { %3375 = vst [vmem:[%s5879_s4 + $0x2f0] sm:$0xff] %v3262_v63  ;;  %v2284_v1 = vadd.f32 %v2283_v59, %v1954_v13  ;;  %v6496_v13 = vld [vmem:[#allocation155_spill] sm:$0xff] }
 0x3db   :  { %3508 = vst [vmem:[%s5879_s4 + $0x2f8] sm:$0xff] %v3262_v63  ;;  %v6497_v63 = vld [vmem:[#allocation154_spill] sm:$0xff] }
 0x3dc   :  { %v2988_v9 = vpop.f32.mrf.mxu0  ;;  %v2674_v4 = vadd.f32 %v2673_v40, %v2284_v1  ;;  %v3269_v26 = vpop.f32.mrf.mxu1  ;;  %v1978_v59 = vadd.f32 %v6497_v63, %v6496_v13  ;;  %v6508_v63 = vld [vmem:[#allocation167_spill] sm:$0xff] }
 0x3de   :  { %v2989_v50 = vadd.f32 %v2988_v9, %v2674_v4 }
 0x3e0   :  { %v3266_v10 = vadd.f32 %v3265_v51, %v2989_v50 }
 0x3e1   :  { %v2288_v6 = vpop.f32.mrf.mxu2  ;;  %v2685_v49 = vpop.f32.mrf.mxu3 }
 0x3e2   :  { %3376 = vst [vmem:[%s5879_s4 + $0x300] sm:$0xff] %v3266_v10  ;;  %v2289_v29 = vadd.f32 %v2288_v6, %v1958_v8  ;;  %v6498_v8 = vld [vmem:[#allocation157_spill] sm:$0xff] }
 0x3e3   :  { %3509 = vst [vmem:[%s5879_s4 + $0x308] sm:$0xff] %v3266_v10  ;;  %v6499_v10 = vld [vmem:[#allocation156_spill] sm:$0xff] }
 0x3e4   :  { %v2992_v60 = vpop.f32.mrf.mxu0  ;;  %v2680_v58 = vadd.f32 %v2679_v34, %v2289_v29  ;;  %v3273_v15 = vpop.f32.mrf.mxu1  ;;  %v1982_v6 = vadd.f32 %v6499_v10, %v6498_v8  ;;  %v6510_v10 = vld [vmem:[#allocation169_spill] sm:$0xff] }
 0x3e6   :  { %v2993_v2 = vadd.f32 %v2992_v60, %v2680_v58 }
 0x3e8   :  { %v3270_v25 = vadd.f32 %v3269_v26, %v2993_v2 }
 0x3e9   :  { %v2293_v46 = vpop.f32.mrf.mxu2  ;;  %v2691_v36 = vpop.f32.mrf.mxu3 }
 0x3ea   :  { %3377 = vst [vmem:[%s5879_s4 + $0x310] sm:$0xff] %v3270_v25  ;;  %v2294_v3 = vadd.f32 %v2293_v46, %v1962_v37  ;;  %v6500_v37 = vld [vmem:[#allocation159_spill] sm:$0xff] }
 0x3eb   :  { %3510 = vst [vmem:[%s5879_s4 + $0x318] sm:$0xff] %v3270_v25  ;;  %v6501_v25 = vld [vmem:[#allocation158_spill] sm:$0xff] }
 0x3ec   :  { %v2996_v30 = vpop.f32.mrf.mxu0  ;;  %v2686_v54 = vadd.f32 %v2685_v49, %v2294_v3  ;;  %v3277_v21 = vpop.f32.mrf.mxu1  ;;  %v1986_v46 = vadd.f32 %v6501_v25, %v6500_v37 }
 0x3ee   :  { %v2997_v24 = vadd.f32 %v2996_v30, %v2686_v54 }
 0x3f0   :  { %v3274_v27 = vadd.f32 %v3273_v15, %v2997_v24 }
 0x3f1   :  { %v2298_v55 = vpop.f32.mrf.mxu2  ;;  %v2697_v17 = vpop.f32.mrf.mxu3 }
 0x3f2   :  { %3378 = vst [vmem:[%s5879_s4 + $0x320] sm:$0xff] %v3274_v27  ;;  %v2299_v53 = vadd.f32 %v2298_v55, %v1966_v41  ;;  %v6502_v41 = vld [vmem:[#allocation161_spill] sm:$0xff] }
 0x3f3   :  { %3511 = vst [vmem:[%s5879_s4 + $0x328] sm:$0xff] %v3274_v27  ;;  %v6503_v27 = vld [vmem:[#allocation160_spill] sm:$0xff] }
 0x3f4   :  { %v3000_v0 = vpop.f32.mrf.mxu0  ;;  %v2692_v18 = vadd.f32 %v2691_v36, %v2299_v53  ;;  %v3281_v28 = vpop.f32.mrf.mxu1  ;;  %v1990_v55 = vadd.f32 %v6503_v27, %v6502_v41  ;;  %v6513_v41 = vld [vmem:[#allocation171_spill] sm:$0xff] }
 0x3f6   :  { %v3001_v45 = vadd.f32 %v3000_v0, %v2692_v18 }
 0x3f8   :  { %v3278_v56 = vadd.f32 %v3277_v21, %v3001_v45 }
 0x3f9   :  { %v2303_v31 = vpop.f32.mrf.mxu2  ;;  %v2703_v16 = vpop.f32.mrf.mxu3 }
 0x3fa   :  { %3379 = vst [vmem:[%s5879_s4 + $0x330] sm:$0xff] %v3278_v56  ;;  %v2304_v20 = vadd.f32 %v2303_v31, %v1970_v19  ;;  %v6504_v19 = vld [vmem:[#allocation163_spill] sm:$0xff] }
 0x3fb   :  { %3512 = vst [vmem:[%s5879_s4 + $0x338] sm:$0xff] %v3278_v56  ;;  %v6505_v56 = vld [vmem:[#allocation162_spill] sm:$0xff] }
 0x3fc   :  { %v3004_v39 = vpop.f32.mrf.mxu0  ;;  %v2698_v57 = vadd.f32 %v2697_v17, %v2304_v20  ;;  %v3285_v47 = vpop.f32.mrf.mxu1  ;;  %v1994_v31 = vadd.f32 %v6505_v56, %v6504_v19 }
 0x3fe   :  { %v3005_v14 = vadd.f32 %v3004_v39, %v2698_v57 }
 0x400   :  { %v3282_v7 = vadd.f32 %v3281_v28, %v3005_v14 }
 0x401   :  { %v2308_v40 = vpop.f32.mrf.mxu2  ;;  %v2709_v42 = vpop.f32.mrf.mxu3 }
 0x402   :  { %3380 = vst [vmem:[%s5879_s4 + $0x340] sm:$0xff] %v3282_v7  ;;  %v2309_v32 = vadd.f32 %v2308_v40, %v1974_v62  ;;  %v6506_v62 = vld [vmem:[#allocation165_spill] sm:$0xff] }
 0x403   :  { %3513 = vst [vmem:[%s5879_s4 + $0x348] sm:$0xff] %v3282_v7  ;;  %v6507_v7 = vld [vmem:[#allocation164_spill] sm:$0xff] }
 0x404   :  { %v3008_v51 = vpop.f32.mrf.mxu0  ;;  %v2704_v5 = vadd.f32 %v2703_v16, %v2309_v32  ;;  %v3289_v44 = vpop.f32.mrf.mxu1  ;;  %v1998_v40 = vadd.f32 %v6507_v7, %v6506_v62 }
 0x406   :  { %v3009_v52 = vadd.f32 %v3008_v51, %v2704_v5 }
 0x408   :  { %v3286_v1 = vadd.f32 %v3285_v47, %v3009_v52 }
 0x409   :  { %v2313_v34 = vpop.f32.mrf.mxu2  ;;  %v2715_v4 = vpop.f32.mrf.mxu3 }
 0x40a   :  { %3381 = vst [vmem:[%s5879_s4 + $0x350] sm:$0xff] %v3286_v1  ;;  %v2314_v9 = vadd.f32 %v2313_v34, %v1978_v59  ;;  %v6509_v59 = vld [vmem:[#allocation166_spill] sm:$0xff] }
 0x40b   :  { %3514 = vst [vmem:[%s5879_s4 + $0x358] sm:$0xff] %v3286_v1  ;;  %v2002_v1 = vadd.f32 %v6509_v59, %v6508_v63 }
 0x40c   :  { %v3012_v26 = vpop.f32.mrf.mxu0  ;;  %v2710_v50 = vadd.f32 %v2709_v42, %v2314_v9  ;;  %v3293_v11 = vpop.f32.mrf.mxu1 }
 0x40e   :  { %v3013_v33 = vadd.f32 %v3012_v26, %v2710_v50 }
 0x410   :  { %v3290_v29 = vadd.f32 %v3289_v44, %v3013_v33 }
 0x411   :  { %v2318_v49 = vpop.f32.mrf.mxu2  ;;  %v2721_v58 = vpop.f32.mrf.mxu3 }
 0x412   :  { %3382 = vst [vmem:[%s5879_s4 + $0x360] sm:$0xff] %v3290_v29  ;;  %v2319_v60 = vadd.f32 %v2318_v49, %v1982_v6  ;;  %v6511_v6 = vld [vmem:[#allocation168_spill] sm:$0xff] }
 0x413   :  { %3515 = vst [vmem:[%s5879_s4 + $0x368] sm:$0xff] %v3290_v29  ;;  %v2006_v29 = vadd.f32 %v6511_v6, %v6510_v10 }
 0x414   :  { %v3016_v15 = vpop.f32.mrf.mxu0  ;;  %v2716_v2 = vadd.f32 %v2715_v4, %v2319_v60  ;;  %v3297_v43 = vpop.f32.mrf.mxu1 }
 0x416   :  { %v3017_v48 = vadd.f32 %v3016_v15, %v2716_v2 }
 0x418   :  { %v3294_v3 = vadd.f32 %v3293_v11, %v3017_v48 }
 0x419   :  { %v2323_v36 = vpop.f32.mrf.mxu2  ;;  %v2727_v54 = vpop.f32.mrf.mxu3 }
 0x41a   :  { %3383 = vst [vmem:[%s5879_s4 + $0x370] sm:$0xff] %v3294_v3  ;;  %v2324_v30 = vadd.f32 %v2323_v36, %v1986_v46 }
 0x41b   :  { %3516 = vst [vmem:[%s5879_s4 + $0x378] sm:$0xff] %v3294_v3  ;;  %v6512_v3 = vld [vmem:[#allocation170_spill] sm:$0xff] }
 0x41c   :  { %v3020_v21 = vpop.f32.mrf.mxu0  ;;  %v2722_v24 = vadd.f32 %v2721_v58, %v2324_v30  ;;  %v3301_v35 = vpop.f32.mrf.mxu1 }
 0x41e   :  { %v3021_v12 = vadd.f32 %v3020_v21, %v2722_v24 }
 0x420   :  { %v3298_v53 = vadd.f32 %v3297_v43, %v3021_v12 }
 0x421   :  { %v2328_v17 = vpop.f32.mrf.mxu2  ;;  %v2733_v18 = vpop.f32.mrf.mxu3 }
 0x422   :  { %3384 = vst [vmem:[%s5879_s4 + $0x380] sm:$0xff] %v3298_v53  ;;  %v2329_v0 = vadd.f32 %v2328_v17, %v1990_v55 }
 0x423   :  { %3517 = vst [vmem:[%s5879_s4 + $0x388] sm:$0xff] %v3298_v53 }
 0x424   :  { %v3024_v28 = vpop.f32.mrf.mxu0  ;;  %v2728_v45 = vadd.f32 %v2727_v54, %v2329_v0  ;;  %v3305_v23 = vpop.f32.mrf.mxu1 }
 0x426   :  { %v3025_v22 = vadd.f32 %v3024_v28, %v2728_v45 }
 0x428   :  { %v3302_v20 = vadd.f32 %v3301_v35, %v3025_v22 }
 0x429   :  { %v2333_v16 = vpop.f32.mrf.mxu2  ;;  %v2739_v57 = vpop.f32.mrf.mxu3 }
 0x42a   :  { %3385 = vst [vmem:[%s5879_s4 + $0x390] sm:$0xff] %v3302_v20  ;;  %v2334_v39 = vadd.f32 %v2333_v16, %v1994_v31 }
 0x42b   :  { %3518 = vst [vmem:[%s5879_s4 + $0x398] sm:$0xff] %v3302_v20 }
 0x42c   :  { %v3028_v47 = vpop.f32.mrf.mxu0  ;;  %v2734_v14 = vadd.f32 %v2733_v18, %v2334_v39  ;;  %v3309_v38 = vpop.f32.mrf.mxu1 }
 0x42e   :  { %v3029_v61 = vadd.f32 %v3028_v47, %v2734_v14 }
 0x430   :  { %v3306_v32 = vadd.f32 %v3305_v23, %v3029_v61 }
 0x431   :  { %v2338_v42 = vpop.f32.mrf.mxu2  ;;  %v2745_v52 = vpop.f32.mrf.mxu3 }
 0x432   :  { %3386 = vst [vmem:[%s5879_s4 + $0x3a0] sm:$0xff] %v3306_v32  ;;  %v2339_v51 = vadd.f32 %v2338_v42, %v1998_v40 }
 0x433   :  { %3519 = vst [vmem:[%s5879_s4 + $0x3a8] sm:$0xff] %v3306_v32 }
 0x434   :  { %v3032_v5 = vpop.f32.mrf.mxu0  ;;  %v2740_v44 = vadd.f32 %v2739_v57, %v2339_v51  ;;  %v3313_v9 = vpop.f32.mrf.mxu1 }
 0x436   :  { %v3033_v13 = vadd.f32 %v3032_v5, %v2740_v44 }
 0x438   :  { %v3310_v34 = vadd.f32 %v3309_v38, %v3033_v13 }
 0x439   :  { %v2343_v4 = vpop.f32.mrf.mxu2  ;;  %v2751_v8 = vpop.f32.mrf.mxu3 }
 0x43a   :  { %3387 = vst [vmem:[%s5879_s4 + $0x3b0] sm:$0xff] %v3310_v34  ;;  %v2344_v26 = vadd.f32 %v2343_v4, %v2002_v1 }
 0x43b   :  { %3520 = vst [vmem:[%s5879_s4 + $0x3b8] sm:$0xff] %v3310_v34 }
 0x43c   :  { %v3036_v50 = vpop.f32.mrf.mxu0  ;;  %v2746_v11 = vadd.f32 %v2745_v52, %v2344_v26  ;;  %v3317_v15 = vpop.f32.mrf.mxu1 }
 0x43e   :  { %v3037_v33 = vadd.f32 %v3036_v50, %v2746_v11 }
 0x440   :  { %v3314_v49 = vadd.f32 %v3313_v9, %v3037_v33 }
 0x441   :  { %v2348_v60 = vpop.f32.mrf.mxu2  ;;  %v2757_v25 = vpop.f32.mrf.mxu3 }
 0x442   :  { %3388 = vst [vmem:[%s5879_s4 + $0x3c0] sm:$0xff] %v3314_v49  ;;  %v2349_v58 = vadd.f32 %v2348_v60, %v2006_v29 }
 0x443   :  { %3521 = vst [vmem:[%s5879_s4 + $0x3c8] sm:$0xff] %v3314_v49 }
 0x444   :  { %v3040_v2 = vpop.f32.mrf.mxu0  ;;  %v2752_v43 = vadd.f32 %v2751_v8, %v2349_v58  ;;  %v3321_v21 = vpop.f32.mrf.mxu1 }
 0x446   :  { %v3041_v48 = vadd.f32 %v3040_v2, %v2752_v43 }
 0x448   :  { %v3318_v37 = vadd.f32 %v3317_v15, %v3041_v48 }
 0x449   :  { %v2353_v46 = vpop.f32.mrf.mxu2  ;;  %v2763_v55 = vpop.f32.mrf.mxu3 }
 0x44a   :  { %3389 = vst [vmem:[%s5879_s4 + $0x3d0] sm:$0xff] %v3318_v37  ;;  %v2354_v36 = vadd.f32 %v2353_v46, %v6512_v3 }
 0x44b   :  { %3522 = vst [vmem:[%s5879_s4 + $0x3d8] sm:$0xff] %v3318_v37 }
 0x44c   :  { %v3044_v30 = vpop.f32.mrf.mxu0  ;;  %v2758_v54 = vadd.f32 %v2757_v25, %v2354_v36  ;;  %v3325_v18 = vpop.f32.mrf.mxu1 }
 0x44e   :  { %v3045_v24 = vadd.f32 %v3044_v30, %v2758_v54 }
 0x450   :  { %v3322_v35 = vadd.f32 %v3321_v21, %v3045_v24 }
 0x451   :  { %v2358_v12 = vpop.f32.mrf.mxu2 }
 0x452   :  { %3390 = vst [vmem:[%s5879_s4 + $0x3e0] sm:$0xff] %v3322_v35  ;;  %v2359_v27 = vadd.f32 %v2358_v12, %v6513_v41 }
 0x453   :  { %3523 = vst [vmem:[%s5879_s4 + $0x3e8] sm:$0xff] %v3322_v35 }
 0x454   :  { %v2764_v53 = vadd.f32 %v2763_v55, %v2359_v27  ;;  %v3048_v17 = vpop.f32.mrf.mxu0 }
 0x456   :  { %v3049_v0 = vadd.f32 %v3048_v17, %v2764_v53 }
 0x458   :  { %v3326_v28 = vadd.f32 %v3325_v18, %v3049_v0 }
 0x45a   :  { %3391 = vst [vmem:[%s5879_s4 + $0x3f0] sm:$0xff] %v3326_v28 }
 0x45b   :  { %3524 = vst [vmem:[%s5879_s4 + $0x3f8] sm:$0xff] %v3326_v28 }

</bundles_post_ra>
